<compile_context>
chip_gen: v5e
topology: v5e:2x2
jax: 0.10.0
libtpu: 0.0.40
codegen_flags: <defaults>
</compile_context>

<pallas_src>
import functools

import jax
import jax.numpy as jnp
from jax import lax
from jax.experimental import pallas as pl
from jax.experimental.pallas import tpu as pltpu


# ---------------------------------------------------------------------------
# Fused Pallas kernel (one image per grid step)
# ---------------------------------------------------------------------------
def _zero_halo(pad_ref, h, w):
    """Zero only the 1-pixel border of a (h+2, w+2, c) VMEM scratch."""
    c = pad_ref.shape[-1]
    dt = pad_ref.dtype
    row = jnp.zeros((1, w + 2, c), dt)
    col = jnp.zeros((h + 2, 1, c), dt)
    pad_ref[0:1, :, :] = row
    pad_ref[h + 1:h + 2, :, :] = row
    pad_ref[:, 0:1, :] = col
    pad_ref[:, w + 1:w + 2, :] = col


def _fused_resblock_kernel(x_ref, w1_ref, s1_ref, b1_ref,
                           w2_ref, s2_ref, b2_ref, o_ref,
                           xpad_ref, hpad_ref, *, th):
    _, H, W, Cin = x_ref.shape
    Cout = o_ref.shape[-1]

    # --- SAME-padding halos zeroed in VMEM (no HBM padding pass) ------------
    _zero_halo(xpad_ref, H, W)
    _zero_halo(hpad_ref, H, W)
    xpad_ref[1:H + 1, 1:W + 1, :] = x_ref[0].astype(xpad_ref.dtype)

    # Hoist weights / folded BN params out of the tile loops.
    w1 = w1_ref[...]                      # (9*Cin, Cout)  bf16
    w2 = w2_ref[...]                      # (9*Cout, Cout) bf16
    s1 = s1_ref[...]                      # (1, Cout) f32
    b1 = b1_ref[...]
    s2 = s2_ref[...]
    b2 = b2_ref[...]

    def conv3x3(pad_ref, row0, rows, w_flat, cin):
        # im2col: one (rows*W, 9*cin) bf16 patch, single MXU matmul, f32 acc.
        taps = []
        for kh in range(3):
            for kw in range(3):
                taps.append(pad_ref[row0 + kh:row0 + kh + rows, kw:kw + W, :])
        patch = jnp.concatenate(taps, axis=-1).reshape(rows * W, 9 * cin)
        return jnp.dot(patch, w_flat, preferred_element_type=jnp.float32)

    n_tiles = H // th

    # --- conv1 + BN + ReLU -> hpad (bf16) ------------------------------------
    for t in range(n_tiles):
        r0 = t * th
        acc = conv3x3(xpad_ref, r0, th, w1, Cin)            # (th*W, Cout) f32
        h = jnp.maximum(acc * s1 + b1, 0.0)
        hpad_ref[1 + r0:1 + r0 + th, 1:W + 1, :] = (
            h.reshape(th, W, Cout).astype(hpad_ref.dtype))

    # --- conv2 + BN + residual add + ReLU -> output ---------------------------
    for t in range(n_tiles):
        r0 = t * th
        acc = conv3x3(hpad_ref, r0, th, w2, Cout)            # (th*W, Cout) f32
        res = x_ref[0, r0:r0 + th, :, :].astype(jnp.float32).reshape(th * W, Cin)
        y = jnp.maximum(acc * s2 + b2 + res, 0.0)
        o_ref[0, r0:r0 + th, :, :] = y.reshape(th, W, Cout).astype(o_ref.dtype)


# ---------------------------------------------------------------------------
# Wrapper
# ---------------------------------------------------------------------------
def fold_bn(conv_bias, gamma, beta, running_mean, running_var, eps=1e-5):
    scale = gamma / jnp.sqrt(running_var + eps)
    bias = (conv_bias - running_mean) * scale + beta
    return scale, bias


def _pick_row_tile(h):
    for th in (32, 28, 16, 14, 8, 7, 4, 2, 1):
        if th <= h and h % th == 0:
            return th
    return h


def residual_block_forward(x_nchw, params):
    # NCHW -> NHWC (channels on the 128-lane axis inside the kernel).
    x = jnp.transpose(x_nchw, (0, 2, 3, 1))
    N, H, W, Cin = x.shape
    Cout = params["w1"].shape[-1]
    assert Cin == Cout, "identity residual path requires in_ch == out_ch"

    s1, b1 = fold_bn(params["b1"], params["g1"], params["beta1"],
                     params["rm1"], params["rv1"])
    s2, b2 = fold_bn(params["b2"], params["g2"], params["beta2"],
                     params["rm2"], params["rv2"])

    # HWIO (3,3,Cin,Cout) -> (9*Cin, Cout), bf16 operands for the MXU.
    w1f = params["w1"].reshape(9 * Cin, Cout).astype(jnp.bfloat16)
    w2f = params["w2"].reshape(9 * Cout, Cout).astype(jnp.bfloat16)

    th = _pick_row_tile(H)
    kernel = functools.partial(_fused_resblock_kernel, th=th)

    out = pl.pallas_call(
        kernel,
        out_shape=jax.ShapeDtypeStruct((N, H, W, Cout), x.dtype),
        grid_spec=pltpu.PrefetchScalarGridSpec(
            num_scalar_prefetch=0,
            grid=(N,),
            in_specs=[
                pl.BlockSpec((1, H, W, Cin), lambda n: (n, 0, 0, 0)),
                pl.BlockSpec((9 * Cin, Cout), lambda n: (0, 0)),
                pl.BlockSpec((1, Cout), lambda n: (0, 0)),
                pl.BlockSpec((1, Cout), lambda n: (0, 0)),
                pl.BlockSpec((9 * Cout, Cout), lambda n: (0, 0)),
                pl.BlockSpec((1, Cout), lambda n: (0, 0)),
                pl.BlockSpec((1, Cout), lambda n: (0, 0)),
            ],
            out_specs=pl.BlockSpec((1, H, W, Cout), lambda n: (n, 0, 0, 0)),
            scratch_shapes=[
                pltpu.VMEM((H + 2, W + 2, Cin), jnp.bfloat16),   # padded x
                pltpu.VMEM((H + 2, W + 2, Cout), jnp.bfloat16),  # padded h
            ],
        ),
        compiler_params=pltpu.CompilerParams(
            dimension_semantics=("parallel",),
            vmem_limit_bytes=48 * 1024 * 1024),
    )(x, w1f, s1.reshape(1, Cout), b1.reshape(1, Cout),
      w2f, s2.reshape(1, Cout), b2.reshape(1, Cout))

    # NHWC -> NCHW
    return jnp.transpose(out, (0, 3, 1, 2))


# ---------------------------------------------------------------------------
# Pure-JAX reference (f32 conv, for correctness check only)
# ---------------------------------------------------------------------------
def _ref_forward(x_nchw, params):
    x = jnp.transpose(x_nchw, (0, 2, 3, 1))

    def conv(inp, w):
        return lax.conv_general_dilated(
            inp, w, window_strides=(1, 1), padding="SAME",
            dimension_numbers=("NHWC", "HWIO", "NHWC"))

    s1, b1 = fold_bn(params["b1"], params["g1"], params["beta1"],
                     params["rm1"], params["rv1"])
    s2, b2 = fold_bn(params["b2"], params["g2"], params["beta2"],
                     params["rm2"], params["rv2"])
    h = jnp.maximum(conv(x, params["w1"]) * s1 + b1, 0.0)
    out = jnp.maximum(conv(h, params["w2"]) * s2 + b2 + x, 0.0)
    return jnp.transpose(out, (0, 3, 1, 2))


# ---------------------------------------------------------------------------
if __name__ == "__main__":
    key = jax.random.PRNGKey(0)
    N, C, H, W = 2, 4, 16, 16          # in_channels == out_channels (stride=1)
    Cin = Cout = C

    keys = jax.random.split(key, 8)
    x = jax.random.normal(keys[0], (N, C, H, W), jnp.float32)

    # Conv weights in HWIO layout (3, 3, Cin, Cout), deterministic init.
    params = {
        "w1": jax.random.normal(keys[1], (3, 3, Cin, Cout), jnp.float32) * 0.1,
        "b1": jax.random.normal(keys[2], (Cout,), jnp.float32) * 0.1,
        "g1": 1.0 + 0.1 * jax.random.normal(keys[3], (Cout,), jnp.float32),
        "beta1": 0.1 * jax.random.normal(keys[4], (Cout,), jnp.float32),
        "rm1": jnp.zeros((Cout,), jnp.float32),
        "rv1": jnp.ones((Cout,), jnp.float32),
        "w2": jax.random.normal(keys[5], (3, 3, Cout, Cout), jnp.float32) * 0.1,
        "b2": jax.random.normal(keys[6], (Cout,), jnp.float32) * 0.1,
        "g2": 1.0 + 0.1 * jax.random.normal(keys[7], (Cout,), jnp.float32),
        "beta2": jnp.zeros((Cout,), jnp.float32),
        "rm2": jnp.zeros((Cout,), jnp.float32),
        "rv2": jnp.ones((Cout,), jnp.float32),
    }

    out = jax.jit(residual_block_forward)(x, params)
    out = jax.block_until_ready(out)

    ref = _ref_forward(x, params)
    assert out.shape == (N, C, H, W)
    # Tolerance relaxed vs. the f32 reference because the conv matmuls use
    # bf16 operands (f32 accumulation).
    assert jnp.allclose(out, ref, atol=3e-2, rtol=3e-2), (
        float(jnp.max(jnp.abs(out - ref))))

    print("KERNEL_OK")
</pallas_src>

<mosaic_0001>
module attributes {stable_mosaic.version = 11 : i64} {
  func.func @_fused_resblock_kernel(%arg0: i32, %arg1: memref<1x16x16x4xf32, #tpu.memory_space<vmem>>, %arg2: memref<36x4xbf16, #tpu.memory_space<vmem>>, %arg3: memref<1x4xf32, #tpu.memory_space<vmem>>, %arg4: memref<1x4xf32, #tpu.memory_space<vmem>>, %arg5: memref<36x4xbf16, #tpu.memory_space<vmem>>, %arg6: memref<1x4xf32, #tpu.memory_space<vmem>>, %arg7: memref<1x4xf32, #tpu.memory_space<vmem>>, %arg8: memref<1x16x16x4xf32, #tpu.memory_space<vmem>>, %arg9: memref<18x18x4xbf16, #tpu.memory_space<vmem>>, %arg10: memref<18x18x4xbf16, #tpu.memory_space<vmem>>) attributes {dimension_semantics = [#tpu.dimension_semantics<parallel>], iteration_bounds = array<i64: 2>, scalar_prefetch = 0 : i64, scratch_operands = 2 : i64, tpu.core_type = #tpu.core_type<tc>, window_params = [{transform_indices = @transform_0, window_bounds = array<i64: 1, 16, 16, 4>}, {pipeline_mode = #tpu.pipeline_mode<synchronous>, transform_indices = @transform_1, window_bounds = array<i64: 36, 4>}, {pipeline_mode = #tpu.pipeline_mode<synchronous>, transform_indices = @transform_2, window_bounds = array<i64: 1, 4>}, {pipeline_mode = #tpu.pipeline_mode<synchronous>, transform_indices = @transform_3, window_bounds = array<i64: 1, 4>}, {pipeline_mode = #tpu.pipeline_mode<synchronous>, transform_indices = @transform_4, window_bounds = array<i64: 36, 4>}, {pipeline_mode = #tpu.pipeline_mode<synchronous>, transform_indices = @transform_5, window_bounds = array<i64: 1, 4>}, {pipeline_mode = #tpu.pipeline_mode<synchronous>, transform_indices = @transform_6, window_bounds = array<i64: 1, 4>}, {transform_indices = @transform_7, window_bounds = array<i64: 1, 16, 16, 4>}]} {
    %cst = arith.constant 0.000000e+00 : bf16
    %0 = vector.broadcast %cst : bf16 to vector<1x18x4xbf16>
    %cst_0 = arith.constant 0.000000e+00 : bf16
    %1 = vector.broadcast %cst_0 : bf16 to vector<18x1x4xbf16>
    %c0 = arith.constant 0 : index
    %c0_1 = arith.constant 0 : index
    %c0_2 = arith.constant 0 : index
    %2 = vector.load %arg9[%c0, %c0_1, %c0_2] : memref<18x18x4xbf16, #tpu.memory_space<vmem>>, vector<1x18x4xbf16>
    tpu.vector_store %arg9[%c0, %c0_1, %c0_2], %0 {strides = array<i32>} : memref<18x18x4xbf16, #tpu.memory_space<vmem>>, vector<1x18x4xbf16>,
    %c17 = arith.constant 17 : index
    %c0_3 = arith.constant 0 : index
    %c0_4 = arith.constant 0 : index
    %3 = vector.load %arg9[%c17, %c0_3, %c0_4] : memref<18x18x4xbf16, #tpu.memory_space<vmem>>, vector<1x18x4xbf16>
    tpu.vector_store %arg9[%c17, %c0_3, %c0_4], %0 {strides = array<i32>} : memref<18x18x4xbf16, #tpu.memory_space<vmem>>, vector<1x18x4xbf16>,
    %c0_5 = arith.constant 0 : index
    %c0_6 = arith.constant 0 : index
    %c0_7 = arith.constant 0 : index
    %4 = vector.load %arg9[%c0_5, %c0_6, %c0_7] : memref<18x18x4xbf16, #tpu.memory_space<vmem>>, vector<18x1x4xbf16>
    tpu.vector_store %arg9[%c0_5, %c0_6, %c0_7], %1 {strides = array<i32>} : memref<18x18x4xbf16, #tpu.memory_space<vmem>>, vector<18x1x4xbf16>,
    %c0_8 = arith.constant 0 : index
    %c17_9 = arith.constant 17 : index
    %c0_10 = arith.constant 0 : index
    %5 = vector.load %arg9[%c0_8, %c17_9, %c0_10] : memref<18x18x4xbf16, #tpu.memory_space<vmem>>, vector<18x1x4xbf16>
    tpu.vector_store %arg9[%c0_8, %c17_9, %c0_10], %1 {strides = array<i32>} : memref<18x18x4xbf16, #tpu.memory_space<vmem>>, vector<18x1x4xbf16>,
    %cst_11 = arith.constant 0.000000e+00 : bf16
    %6 = vector.broadcast %cst_11 : bf16 to vector<1x18x4xbf16>
    %cst_12 = arith.constant 0.000000e+00 : bf16
    %7 = vector.broadcast %cst_12 : bf16 to vector<18x1x4xbf16>
    %c0_13 = arith.constant 0 : index
    %c0_14 = arith.constant 0 : index
    %c0_15 = arith.constant 0 : index
    %8 = vector.load %arg10[%c0_13, %c0_14, %c0_15] : memref<18x18x4xbf16, #tpu.memory_space<vmem>>, vector<1x18x4xbf16>
    tpu.vector_store %arg10[%c0_13, %c0_14, %c0_15], %6 {strides = array<i32>} : memref<18x18x4xbf16, #tpu.memory_space<vmem>>, vector<1x18x4xbf16>,
    %c17_16 = arith.constant 17 : index
    %c0_17 = arith.constant 0 : index
    %c0_18 = arith.constant 0 : index
    %9 = vector.load %arg10[%c17_16, %c0_17, %c0_18] : memref<18x18x4xbf16, #tpu.memory_space<vmem>>, vector<1x18x4xbf16>
    tpu.vector_store %arg10[%c17_16, %c0_17, %c0_18], %6 {strides = array<i32>} : memref<18x18x4xbf16, #tpu.memory_space<vmem>>, vector<1x18x4xbf16>,
    %c0_19 = arith.constant 0 : index
    %c0_20 = arith.constant 0 : index
    %c0_21 = arith.constant 0 : index
    %10 = vector.load %arg10[%c0_19, %c0_20, %c0_21] : memref<18x18x4xbf16, #tpu.memory_space<vmem>>, vector<18x1x4xbf16>
    tpu.vector_store %arg10[%c0_19, %c0_20, %c0_21], %7 {strides = array<i32>} : memref<18x18x4xbf16, #tpu.memory_space<vmem>>, vector<18x1x4xbf16>,
    %c0_22 = arith.constant 0 : index
    %c17_23 = arith.constant 17 : index
    %c0_24 = arith.constant 0 : index
    %11 = vector.load %arg10[%c0_22, %c17_23, %c0_24] : memref<18x18x4xbf16, #tpu.memory_space<vmem>>, vector<18x1x4xbf16>
    tpu.vector_store %arg10[%c0_22, %c17_23, %c0_24], %7 {strides = array<i32>} : memref<18x18x4xbf16, #tpu.memory_space<vmem>>, vector<18x1x4xbf16>,
    %c0_25 = arith.constant 0 : index
    %c0_26 = arith.constant 0 : index
    %c0_27 = arith.constant 0 : index
    %c0_28 = arith.constant 0 : index
    %12 = vector.load %arg1[%c0_25, %c0_26, %c0_27, %c0_28] : memref<1x16x16x4xf32, #tpu.memory_space<vmem>>, vector<1x16x16x4xf32>
    %13 = vector.shape_cast %12 : vector<1x16x16x4xf32> to vector<16x16x4xf32>
    %14 = arith.truncf %13 : vector<16x16x4xf32> to vector<16x16x4xbf16>
    %c1 = arith.constant 1 : index
    %c1_29 = arith.constant 1 : index
    %c0_30 = arith.constant 0 : index
    %15 = vector.load %arg9[%c1, %c1_29, %c0_30] : memref<18x18x4xbf16, #tpu.memory_space<vmem>>, vector<16x16x4xbf16>
    tpu.vector_store %arg9[%c1, %c1_29, %c0_30], %14 {strides = array<i32>} : memref<18x18x4xbf16, #tpu.memory_space<vmem>>, vector<16x16x4xbf16>,
    %c0_31 = arith.constant 0 : index
    %c0_32 = arith.constant 0 : index
    %16 = vector.load %arg2[%c0_31, %c0_32] : memref<36x4xbf16, #tpu.memory_space<vmem>>, vector<36x4xbf16>
    %c0_33 = arith.constant 0 : index
    %c0_34 = arith.constant 0 : index
    %17 = vector.load %arg5[%c0_33, %c0_34] : memref<36x4xbf16, #tpu.memory_space<vmem>>, vector<36x4xbf16>
    %c0_35 = arith.constant 0 : index
    %c0_36 = arith.constant 0 : index
    %18 = vector.load %arg3[%c0_35, %c0_36] : memref<1x4xf32, #tpu.memory_space<vmem>>, vector<1x4xf32>
    %c0_37 = arith.constant 0 : index
    %c0_38 = arith.constant 0 : index
    %19 = vector.load %arg4[%c0_37, %c0_38] : memref<1x4xf32, #tpu.memory_space<vmem>>, vector<1x4xf32>
    %c0_39 = arith.constant 0 : index
    %c0_40 = arith.constant 0 : index
    %20 = vector.load %arg6[%c0_39, %c0_40] : memref<1x4xf32, #tpu.memory_space<vmem>>, vector<1x4xf32>
    %c0_41 = arith.constant 0 : index
    %c0_42 = arith.constant 0 : index
    %21 = vector.load %arg7[%c0_41, %c0_42] : memref<1x4xf32, #tpu.memory_space<vmem>>, vector<1x4xf32>
    %c0_43 = arith.constant 0 : index
    %c0_44 = arith.constant 0 : index
    %c0_45 = arith.constant 0 : index
    %22 = vector.load %arg9[%c0_43, %c0_44, %c0_45] : memref<18x18x4xbf16, #tpu.memory_space<vmem>>, vector<16x16x4xbf16>
    %c0_46 = arith.constant 0 : index
    %c1_47 = arith.constant 1 : index
    %c0_48 = arith.constant 0 : index
    %23 = vector.load %arg9[%c0_46, %c1_47, %c0_48] : memref<18x18x4xbf16, #tpu.memory_space<vmem>>, vector<16x16x4xbf16>
    %c0_49 = arith.constant 0 : index
    %c2 = arith.constant 2 : index
    %c0_50 = arith.constant 0 : index
    %24 = vector.load %arg9[%c0_49, %c2, %c0_50] : memref<18x18x4xbf16, #tpu.memory_space<vmem>>, vector<16x16x4xbf16>
    %c1_51 = arith.constant 1 : index
    %c0_52 = arith.constant 0 : index
    %c0_53 = arith.constant 0 : index
    %25 = vector.load %arg9[%c1_51, %c0_52, %c0_53] : memref<18x18x4xbf16, #tpu.memory_space<vmem>>, vector<16x16x4xbf16>
    %c1_54 = arith.constant 1 : index
    %c1_55 = arith.constant 1 : index
    %c0_56 = arith.constant 0 : index
    %26 = vector.load %arg9[%c1_54, %c1_55, %c0_56] : memref<18x18x4xbf16, #tpu.memory_space<vmem>>, vector<16x16x4xbf16>
    %c1_57 = arith.constant 1 : index
    %c2_58 = arith.constant 2 : index
    %c0_59 = arith.constant 0 : index
    %27 = vector.load %arg9[%c1_57, %c2_58, %c0_59] : memref<18x18x4xbf16, #tpu.memory_space<vmem>>, vector<16x16x4xbf16>
    %c2_60 = arith.constant 2 : index
    %c0_61 = arith.constant 0 : index
    %c0_62 = arith.constant 0 : index
    %28 = vector.load %arg9[%c2_60, %c0_61, %c0_62] : memref<18x18x4xbf16, #tpu.memory_space<vmem>>, vector<16x16x4xbf16>
    %c2_63 = arith.constant 2 : index
    %c1_64 = arith.constant 1 : index
    %c0_65 = arith.constant 0 : index
    %29 = vector.load %arg9[%c2_63, %c1_64, %c0_65] : memref<18x18x4xbf16, #tpu.memory_space<vmem>>, vector<16x16x4xbf16>
    %c2_66 = arith.constant 2 : index
    %c2_67 = arith.constant 2 : index
    %c0_68 = arith.constant 0 : index
    %30 = vector.load %arg9[%c2_66, %c2_67, %c0_68] : memref<18x18x4xbf16, #tpu.memory_space<vmem>>, vector<16x16x4xbf16>
    %31 = tpu.concatenate %22, %23, %24, %25, %26, %27, %28, %29, %30 in 2 : vector<16x16x4xbf16>, vector<16x16x4xbf16>, vector<16x16x4xbf16>, vector<16x16x4xbf16>, vector<16x16x4xbf16>, vector<16x16x4xbf16>, vector<16x16x4xbf16>, vector<16x16x4xbf16>, vector<16x16x4xbf16> -> vector<16x16x36xbf16>
    %32 = vector.shape_cast %31 : vector<16x16x36xbf16> to vector<256x36xbf16>
    %cst_69 = arith.constant dense<0.000000e+00> : vector<256x4xf32>
    %33 = tpu.matmul %32, %16, %cst_69 {dimension_numbers = #tpu.dot_dimension_numbers<[1], [0], [0], [1], [0, 0, 1, 1], [], []>} : vector<256x36xbf16>, vector<36x4xbf16>, vector<256x4xf32> -> vector<256x4xf32>
    %34 = vector.broadcast %18 : vector<1x4xf32> to vector<256x4xf32>
    %35 = arith.mulf %33, %34 : vector<256x4xf32>
    %36 = vector.broadcast %19 : vector<1x4xf32> to vector<256x4xf32>
    %37 = arith.addf %35, %36 : vector<256x4xf32>
    %cst_70 = arith.constant 0.000000e+00 : f32
    %38 = vector.broadcast %cst_70 : f32 to vector<256x4xf32>
    %39 = arith.maximumf %37, %38 : vector<256x4xf32>
    %40 = vector.shape_cast %39 : vector<256x4xf32> to vector<16x16x4xf32>
    %41 = arith.truncf %40 : vector<16x16x4xf32> to vector<16x16x4xbf16>
    %c1_71 = arith.constant 1 : index
    %c1_72 = arith.constant 1 : index
    %c0_73 = arith.constant 0 : index
    %42 = vector.load %arg10[%c1_71, %c1_72, %c0_73] : memref<18x18x4xbf16, #tpu.memory_space<vmem>>, vector<16x16x4xbf16>
    tpu.vector_store %arg10[%c1_71, %c1_72, %c0_73], %41 {strides = array<i32>} : memref<18x18x4xbf16, #tpu.memory_space<vmem>>, vector<16x16x4xbf16>,
    %c0_74 = arith.constant 0 : index
    %c0_75 = arith.constant 0 : index
    %c0_76 = arith.constant 0 : index
    %43 = vector.load %arg10[%c0_74, %c0_75, %c0_76] : memref<18x18x4xbf16, #tpu.memory_space<vmem>>, vector<16x16x4xbf16>
    %c0_77 = arith.constant 0 : index
    %c1_78 = arith.constant 1 : index
    %c0_79 = arith.constant 0 : index
    %44 = vector.load %arg10[%c0_77, %c1_78, %c0_79] : memref<18x18x4xbf16, #tpu.memory_space<vmem>>, vector<16x16x4xbf16>
    %c0_80 = arith.constant 0 : index
    %c2_81 = arith.constant 2 : index
    %c0_82 = arith.constant 0 : index
    %45 = vector.load %arg10[%c0_80, %c2_81, %c0_82] : memref<18x18x4xbf16, #tpu.memory_space<vmem>>, vector<16x16x4xbf16>
    %c1_83 = arith.constant 1 : index
    %c0_84 = arith.constant 0 : index
    %c0_85 = arith.constant 0 : index
    %46 = vector.load %arg10[%c1_83, %c0_84, %c0_85] : memref<18x18x4xbf16, #tpu.memory_space<vmem>>, vector<16x16x4xbf16>
    %c1_86 = arith.constant 1 : index
    %c1_87 = arith.constant 1 : index
    %c0_88 = arith.constant 0 : index
    %47 = vector.load %arg10[%c1_86, %c1_87, %c0_88] : memref<18x18x4xbf16, #tpu.memory_space<vmem>>, vector<16x16x4xbf16>
    %c1_89 = arith.constant 1 : index
    %c2_90 = arith.constant 2 : index
    %c0_91 = arith.constant 0 : index
    %48 = vector.load %arg10[%c1_89, %c2_90, %c0_91] : memref<18x18x4xbf16, #tpu.memory_space<vmem>>, vector<16x16x4xbf16>
    %c2_92 = arith.constant 2 : index
    %c0_93 = arith.constant 0 : index
    %c0_94 = arith.constant 0 : index
    %49 = vector.load %arg10[%c2_92, %c0_93, %c0_94] : memref<18x18x4xbf16, #tpu.memory_space<vmem>>, vector<16x16x4xbf16>
    %c2_95 = arith.constant 2 : index
    %c1_96 = arith.constant 1 : index
    %c0_97 = arith.constant 0 : index
    %50 = vector.load %arg10[%c2_95, %c1_96, %c0_97] : memref<18x18x4xbf16, #tpu.memory_space<vmem>>, vector<16x16x4xbf16>
    %c2_98 = arith.constant 2 : index
    %c2_99 = arith.constant 2 : index
    %c0_100 = arith.constant 0 : index
    %51 = vector.load %arg10[%c2_98, %c2_99, %c0_100] : memref<18x18x4xbf16, #tpu.memory_space<vmem>>, vector<16x16x4xbf16>
    %52 = tpu.concatenate %43, %44, %45, %46, %47, %48, %49, %50, %51 in 2 : vector<16x16x4xbf16>, vector<16x16x4xbf16>, vector<16x16x4xbf16>, vector<16x16x4xbf16>, vector<16x16x4xbf16>, vector<16x16x4xbf16>, vector<16x16x4xbf16>, vector<16x16x4xbf16>, vector<16x16x4xbf16> -> vector<16x16x36xbf16>
    %53 = vector.shape_cast %52 : vector<16x16x36xbf16> to vector<256x36xbf16>
    %cst_101 = arith.constant dense<0.000000e+00> : vector<256x4xf32>
    %54 = tpu.matmul %53, %17, %cst_101 {dimension_numbers = #tpu.dot_dimension_numbers<[1], [0], [0], [1], [0, 0, 1, 1], [], []>} : vector<256x36xbf16>, vector<36x4xbf16>, vector<256x4xf32> -> vector<256x4xf32>
    %c0_102 = arith.constant 0 : index
    %c0_103 = arith.constant 0 : index
    %c0_104 = arith.constant 0 : index
    %c0_105 = arith.constant 0 : index
    %55 = vector.load %arg1[%c0_102, %c0_103, %c0_104, %c0_105] : memref<1x16x16x4xf32, #tpu.memory_space<vmem>>, vector<1x16x16x4xf32>
    %56 = vector.shape_cast %55 : vector<1x16x16x4xf32> to vector<16x16x4xf32>
    %57 = vector.shape_cast %56 : vector<16x16x4xf32> to vector<256x4xf32>
    %58 = vector.broadcast %20 : vector<1x4xf32> to vector<256x4xf32>
    %59 = arith.mulf %54, %58 : vector<256x4xf32>
    %60 = vector.broadcast %21 : vector<1x4xf32> to vector<256x4xf32>
    %61 = arith.addf %59, %60 : vector<256x4xf32>
    %62 = arith.addf %61, %57 : vector<256x4xf32>
    %cst_106 = arith.constant 0.000000e+00 : f32
    %63 = vector.broadcast %cst_106 : f32 to vector<256x4xf32>
    %64 = arith.maximumf %62, %63 : vector<256x4xf32>
    %65 = vector.shape_cast %64 : vector<256x4xf32> to vector<16x16x4xf32>
    %c0_107 = arith.constant 0 : index
    %c0_108 = arith.constant 0 : index
    %c0_109 = arith.constant 0 : index
    %c0_110 = arith.constant 0 : index
    %66 = vector.load %arg8[%c0_107, %c0_108, %c0_109, %c0_110] : memref<1x16x16x4xf32, #tpu.memory_space<vmem>>, vector<1x16x16x4xf32>
    %67 = vector.shape_cast %66 : vector<1x16x16x4xf32> to vector<16x16x4xf32>
    %68 = vector.shape_cast %65 : vector<16x16x4xf32> to vector<1x16x16x4xf32>
    tpu.vector_store %arg8[%c0_107, %c0_108, %c0_109, %c0_110], %68 {strides = array<i32>} : memref<1x16x16x4xf32, #tpu.memory_space<vmem>>, vector<1x16x16x4xf32>,
    return
  }
  func.func @transform_0(%arg0: i32) -> (i32, i32, i32, i32) {
    %c0_i32 = arith.constant 0 : i32
    %c0_i32_0 = arith.constant 0 : i32
    %c0_i32_1 = arith.constant 0 : i32
    %c0_i32_2 = arith.constant 0 : i32
    return %arg0, %c0_i32, %c0_i32_0, %c0_i32_1 : i32, i32, i32, i32
  }
  func.func @transform_1(%arg0: i32) -> (i32, i32) {
    %c0_i32 = arith.constant 0 : i32
    %c0_i32_0 = arith.constant 0 : i32
    %c0_i32_1 = arith.constant 0 : i32
    return %c0_i32, %c0_i32_0 : i32, i32
  }
  func.func @transform_2(%arg0: i32) -> (i32, i32) {
    %c0_i32 = arith.constant 0 : i32
    %c0_i32_0 = arith.constant 0 : i32
    %c0_i32_1 = arith.constant 0 : i32
    return %c0_i32, %c0_i32_0 : i32, i32
  }
  func.func @transform_3(%arg0: i32) -> (i32, i32) {
    %c0_i32 = arith.constant 0 : i32
    %c0_i32_0 = arith.constant 0 : i32
    %c0_i32_1 = arith.constant 0 : i32
    return %c0_i32, %c0_i32_0 : i32, i32
  }
  func.func @transform_4(%arg0: i32) -> (i32, i32) {
    %c0_i32 = arith.constant 0 : i32
    %c0_i32_0 = arith.constant 0 : i32
    %c0_i32_1 = arith.constant 0 : i32
    return %c0_i32, %c0_i32_0 : i32, i32
  }
  func.func @transform_5(%arg0: i32) -> (i32, i32) {
    %c0_i32 = arith.constant 0 : i32
    %c0_i32_0 = arith.constant 0 : i32
    %c0_i32_1 = arith.constant 0 : i32
    return %c0_i32, %c0_i32_0 : i32, i32
  }
  func.func @transform_6(%arg0: i32) -> (i32, i32) {
    %c0_i32 = arith.constant 0 : i32
    %c0_i32_0 = arith.constant 0 : i32
    %c0_i32_1 = arith.constant 0 : i32
    return %c0_i32, %c0_i32_0 : i32, i32
  }
  func.func @transform_7(%arg0: i32) -> (i32, i32, i32, i32) {
    %c0_i32 = arith.constant 0 : i32
    %c0_i32_0 = arith.constant 0 : i32
    %c0_i32_1 = arith.constant 0 : i32
    %c0_i32_2 = arith.constant 0 : i32
    return %arg0, %c0_i32, %c0_i32_0, %c0_i32_1 : i32, i32, i32, i32
  }
}

</mosaic_0001>

<bundles_post_ra>
// kernel: residual_block_forward.1
= control target key start
LH: loop header
LB: loop body
LE: loop exit
PB: predicated region body
PF: predicated region fallthrough
CT: control target
= control target key end

     0   :  { %s6740_s24 = smov 0   ;;  %s9211_s0 = inlined_call_operand.vmem [shape: f32[2,16,16,4], index: 0, kind: input, shape index: {}]   ;;  %s9212_s1 = inlined_call_operand.vmem [shape: bf16[36,4], index: 1, kind: input, shape index: {}]   ;;  %s9213_s2 = inlined_call_operand.vmem [shape: f32[1,4], index: 2, kind: input, shape index: {}]   ;;  %s9214_s3 = inlined_call_operand.vmem [shape: f32[1,4], index: 3, kind: input, shape index: {}]   ;;  %s9215_s4 = inlined_call_operand.vmem [shape: bf16[36,4], index: 4, kind: input, shape index: {}]   ;;  %s9216_s5 = inlined_call_operand.vmem [shape: f32[1,4], index: 5, kind: input, shape index: {}]   ;;  %s9217_s6 = inlined_call_operand.vmem [shape: f32[1,4], index: 6, kind: input, shape index: {}]   ;;  %s9218_s7 = inlined_call_operand.vmem [shape: f32[2,16,16,4], index: 7, kind: output, shape index: {}]  }
   0x1 LB: > { %s6048_s25 = sadd.s32 4294967295, %s6689_s24   ;;  %p6052_p0 = scmp.ge.s32.totalorder %s6689_s24, 1  ;;  %s6689_s24 = sphi %s6740_s24, %s17_s24  }
   0x2   : > { %p237_p1 = scmp.lt.s32.totalorder %s6689_s24, 3 }
   0x4   : > { %p238_p2 = pnand %p6052_p0, %p237_p1 }
   0x6   : > { %241 = sbr.rel (%p238_p2) target bundleno = 1246 (0x4de), region = 48 }
   0xb   : > { %vm280_vm0 = vcmask 27648   ;;  %vm283_vm1 = vcmask 24576   ;;  %vm290_vm2 = vsmask.f32 256  ;;  %v6691_v0 = vmov 0   ;;  %p269_p3 = scmp.lt.s32.totalorder %s6048_s25, 1 }
   0xc   : > { %281 = vst.msk [vmem:[#allocation2] sm:$0xf] %vm280_vm0, %v6691_v0  ;;  %vm346_vm3 = vsmask.f32 7938  ;;  %vm6753_vm4 = vmand %vm283_vm1, %vm290_vm2  ;;  %v304_v2 = vld [vmem:[#allocation2 + $0x30] sm:$0x1] }
   0xd   : > { %282 = vst.msk [vmem:[#allocation2 + $0x4] sm:$0xf] %vm280_vm0, %v6691_v0  ;;  %vm6759_vm5 = vmand %vm283_vm1, %vm346_vm3  ;;  %s9317_s25 = smov (!%p269_p3, %s6048_s25), 1  ;;  %v360_v4 = vld [vmem:[#allocation2 + $0x38] sm:$0x1]  ;;  %v305_v6 = vsel %vm6753_vm4, 0, %v304_v2 }
   0xe   : > { %284 = vst.msk [vmem:[#allocation2 + $0x8] sm:$0x1] %vm283_vm1, %v6691_v0  ;;  %vm581_vm6 = vsmask.f32 4368  ;;  %v6767_v5 = vld [vmem:[#allocation2 + $0x18] sm:$0x1]  ;;  %vm6846_vm9 = vmand %vm280_vm0, %vm346_vm3 }
   0xf   : > { %286 = vst.msk [vmem:[#allocation2 + $0xcc] sm:$0xf] %vm280_vm0, %v6691_v0  ;;  %s6107_s26 = sshll.u32 %s9317_s25, 8  ;;  %v6773_v7 = vld [vmem:[#allocation2 + $0x20] sm:$0x1]  ;;  %v361_v8 = vsel %vm6759_vm5, 0, %v360_v4  ;;  %vm6817_vm7 = vmor %vm290_vm2, %vm581_vm6 }
  0x10   : > { %287 = vst.msk [vmem:[#allocation2 + $0xd0] sm:$0xf] %vm280_vm0, %v6691_v0  ;;  %s6781_s29 = scalar_lea.vmem %s9211_s0, %s6107_s26  ;;  %v299_v9 = vsel %vm6753_vm4, 0, %v6767_v5  ;;  %v6788_v10 = vld [vmem:[#allocation2 + $0x48] sm:$0x1]  ;;  %v355_v17 = vsel %vm6759_vm5, 0, %v6773_v7 }
  0x11   : > { %288 = vst.msk [vmem:[#allocation2 + $0xd4] sm:$0x1] %vm283_vm1, %v6691_v0  ;;  %v523_v12 = vld [vmem:[%s6781_s29 + $0x30] sm:$0xff]  ;;  %v524_v13 = vld [vmem:[%s6781_s29 + $0x38] sm:$0xff]  ;;  %v311_v24 = vsel %vm6753_vm4, 0, %v6788_v10  ;;  %v9235_v39 = vmov 0 }
  0x12   : > { %402 = vst.msk [vmem:[#allocation3] sm:$0xf] %vm280_vm0, %v6691_v0  ;;  %v555_v15 = vpack.c.bf16 %v523_v12, %v523_v12  ;;  %v556_v16 = vpack.c.bf16 %v524_v13, %v524_v13  ;;  %v519_v18 = vld [vmem:[%s6781_s29 + $0x10] sm:$0xff]  ;;  %v520_v19 = vld [vmem:[%s6781_s29 + $0x18] sm:$0xff]  ;;  %v9236_v39 = vsel %vm6817_vm7, 4294967295, %v9235_v39  ;;  %v9238_v12 = vmov 0 }
  0x13   : > { %v292_v11 = vld [vmem:[#allocation2] sm:$0x1]  ;;  %403 = vst.msk [vmem:[#allocation3 + $0x4] sm:$0xf] %vm280_vm0, %v6691_v0  ;;  %v6801_v20 = vld [vmem:[#allocation2 + $0x50] sm:$0x1]  ;;  %v551_v22 = vpack.c.bf16 %v519_v18, %v519_v18  ;;  %v552_v23 = vpack.c.bf16 %v520_v19, %v520_v19 }
  0x14   : > { %v293_v14 = vsel %vm6753_vm4, 0, %v292_v11  ;;  %404 = vst.msk [vmem:[#allocation3 + $0x8] sm:$0x1] %vm283_vm1, %v6691_v0  ;;  %v527_v25 = vld [vmem:[%s6781_s29 + $0x50] sm:$0xff]  ;;  %v635_v27 = vshrl.u32 %v555_v15, 16  ;;  %v638_v28 = vshll.u32 %v555_v15, 16 }
  0x15   : > { %294 = vst [vmem:[#allocation2] sm:$0x1] %v293_v14  ;;  %v348_v21 = vld [vmem:[#allocation2 + $0x8] sm:$0x1]  ;;  %v643_v29 = vshrl.u32 %v556_v16, 16  ;;  %v646_v30 = vshll.u32 %v556_v16, 16  ;;  %v559_v38 = vpack.c.bf16 %v527_v25, %v527_v25 }
  0x16   : > { %v349_v26 = vsel %vm6759_vm5, 0, %v348_v21  ;;  %406 = vst.msk [vmem:[#allocation3 + $0xcc] sm:$0xf] %vm280_vm0, %v6691_v0  ;;  %v601_v31 = vshrl.u32 %v551_v22, 16  ;;  %v604_v32 = vshll.u32 %v551_v22, 16  ;;  %v609_v33 = vshrl.u32 %v552_v23, 16 }
  0x17   : > { %350 = vst [vmem:[#allocation2 + $0x8] sm:$0x1] %v349_v26  ;;  %v637_v34 = vrot.slane %v635_v27, 7  ;;  %v6811_v35 = vrot.slane %v643_v29, 7  ;;  %v612_v36 = vshll.u32 %v552_v23, 16  ;;  %v528_v37 = vld [vmem:[%s6781_s29 + $0x58] sm:$0xff] }
  0x18   : > { %407 = vst.msk [vmem:[#allocation3 + $0xd0] sm:$0xf] %vm280_vm0, %v6691_v0  ;;  %v603_v40 = vrot.slane %v601_v31, 7  ;;  %v6821_v41 = vrot.slane %v609_v33, 7  ;;  %v367_v42 = vsel %vm6759_vm5, 0, %v6801_v20  ;;  %v560_v43 = vpack.c.bf16 %v528_v37, %v528_v37  ;;  %v531_v54 = vld [vmem:[%s6781_s29 + $0x70] sm:$0xff] }
  0x19   : > { %408 = vst.msk [vmem:[#allocation3 + $0xd4] sm:$0x1] %vm283_vm1, %v6691_v0  ;;  %v640_v44 = vor.u32 %v638_v28, %v637_v34  ;;  %v641_v45 = vrot.slane %v637_v34, 4  ;;  %v648_v46 = vor.u32 %v646_v30, %v6811_v35  ;;  %v650_v47 = vrot.slane %v6811_v35, 4  ;;  %v316_v48 = vld [vmem:[#allocation2 + $0x60] sm:$0x1] }
  0x1a   : > { %9237 = vst [vmem:[#allocation4_spill] sm:$0xff] %v9236_v39  ;;  %v6828_v49 = vld [vmem:[#allocation2 + $0x68] sm:$0x1]  ;;  %v6830_v50 = vor.u32 %v604_v32, %v603_v40  ;;  %v607_v51 = vrot.slane %v603_v40, 4  ;;  %v614_v52 = vor.u32 %v612_v36, %v6821_v41  ;;  %v616_v53 = vrot.slane %v6821_v41, 4  ;;  %v532_v55 = vld [vmem:[%s6781_s29 + $0x78] sm:$0xff] }
  0x1b   : > { %306 = vst [vmem:[#allocation2 + $0x30] sm:$0x1] %v305_v6  ;;  %vm1353_vm8 = vsmask.f32 7424  ;;  %v649_v57 = vsel %vm6817_vm7, %v641_v45, %v648_v46  ;;  %v669_v58 = vshrl.u32 %v559_v38, 16  ;;  %v672_v59 = vshll.u32 %v559_v38, 16 }
  0x1c   : > { %362 = vst [vmem:[#allocation2 + $0x38] sm:$0x1] %v361_v8  ;;  %v6114_v56 = vld [vmem:[#allocation2] sm:$0xff]   ;;  %v677_v60 = vshrl.u32 %v560_v43, 16  ;;  %v615_v63 = vsel %vm6817_vm7, %v607_v51, %v614_v52  ;;  %v680_v0 = vshll.u32 %v560_v43, 16  ;;  %v563_v6 = vpack.c.bf16 %v531_v54, %v531_v54  ;;  %v535_v8 = vld [vmem:[%s6781_s29 + $0x90] sm:$0xff] }
  0x1d   : > { %300 = vst [vmem:[#allocation2 + $0x18] sm:$0x1] %v299_v9  ;;  %v1355_v61 = vshrl.u32 %v6114_v56, 16  ;;  %v1357_v62 = vshll.u32 %v6114_v56, 16  ;;  %v671_v4 = vrot.slane %v669_v58, 7  ;;  %v564_v7 = vpack.c.bf16 %v532_v55, %v532_v55  ;;  %v536_v15 = vld [vmem:[%s6781_s29 + $0x98] sm:$0xff] }
  0x1e   : > { %930 = vst.msk [vmem:[#allocation2 + $0x34] sm:$0xf] %vm280_vm0, %v649_v57  ;;  %v1064_v2 = vld [vmem:[#allocation2 + $0x8] sm:$0x1]  ;;  %v6841_v5 = vrot.slane %v677_v60, 7  ;;  %v9239_v12 = vsel %vm6846_vm9, 4294967295, %v9238_v12  ;;  %v567_v34 = vpack.c.bf16 %v535_v8, %v535_v8  ;;  %v568_v40 = vpack.c.bf16 %v536_v15, %v536_v15 }
  0x1f   : > { %356 = vst [vmem:[#allocation2 + $0x20] sm:$0x1] %v355_v17  ;;  %v1321_v9 = vunpack.c.l.b16 %v1064_v2  ;;  %v1359_v11 = vrot.slane %v1357_v62, 1  ;;  %v317_v13 = vsel %vm6753_vm4, 0, %v316_v48  ;;  %v373_v14 = vsel %vm6759_vm5, 0, %v6828_v49  ;;  %s6692_s30 = smov 4  }
  0x20   : > { %9240 = vst [vmem:[#allocation5_spill] sm:$0xff] %v9239_v12  ;;  %v674_v16 = vor.u32 %v672_v59, %v671_v4  ;;  %v675_v17 = vrot.slane %v671_v4, 4  ;;  %v682_v18 = vor.u32 %v680_v0, %v6841_v5  ;;  %v684_v19 = vrot.slane %v6841_v5, 4  ;;  %v6863_v20 = vld [vmem:[#allocation2 + $0x78] sm:$0x1]  ;;  %v539_v15 = vld [vmem:[%s6781_s29 + $0xb0] sm:$0xff] }
  0x21   : > { %916 = vst.msk [vmem:[#allocation2 + $0x1c] sm:$0xf] %vm280_vm0, %v615_v63  ;;  %v6865_v21 = vpack.c.b16 %v1321_v9, %v1321_v9  ;;  %v1360_v22 = vor.u32 %v1359_v11, %v1355_v61  ;;  %v703_v25 = vshrl.u32 %v563_v6, 16  ;;  %v706_v26 = vshll.u32 %v563_v6, 16  ;;  %v378_v38 = vld [vmem:[#allocation2 + $0x80] sm:$0x1] }
  0x22   : > { %312 = vst [vmem:[#allocation2 + $0x48] sm:$0x1] %v311_v24  ;;  %v927_v23 = vld [vmem:[#allocation2 + $0x30] sm:$0xf]  ;;  %v683_v24 = vsel %vm6817_vm7, %v675_v17, %v682_v18  ;;  %v711_v28 = vshrl.u32 %v564_v7, 16  ;;  %v714_v29 = vshll.u32 %v564_v7, 16 }
  0x23   : > { %368 = vst [vmem:[#allocation2 + $0x50] sm:$0x1] %v367_v42  ;;  %v928_v27 = vsel %vm6846_vm9, %v640_v44, %v927_v23  ;;  %v931_v10 = vld [vmem:[#allocation2 + $0x38] sm:$0x1]  ;;  %v1362_v30 = vshll.u32 %v6865_v21, 16  ;;  %v705_v33 = vrot.slane %v703_v25, 7 }
  0x24   : > { %318 = vst [vmem:[#allocation2 + $0x60] sm:$0x1] %v317_v13  ;;  %v932_v31 = vsel %vm6753_vm4, %v650_v47, %v931_v10  ;;  %v913_v32 = vld [vmem:[#allocation2 + $0x18] sm:$0xf]  ;;  %v6877_v36 = vrot.slane %v711_v28, 7  ;;  %v323_v37 = vsel %vm6753_vm4, 0, %v6863_v20 }
  0x25   : > { %929 = vst [vmem:[#allocation2 + $0x30] sm:$0xf] %v928_v27  ;;  %v914_v35 = vsel %vm6846_vm9, %v6830_v50, %v913_v32  ;;  %v1364_v42 = vrot.slane %v1362_v30, 1  ;;  %v708_v44 = vor.u32 %v706_v26, %v705_v33  ;;  %v709_v45 = vrot.slane %v705_v33, 4  ;;  %v328_v50 = vld [vmem:[#allocation2 + $0x90] sm:$0x1] }
  0x26   : > { %933 = vst [vmem:[#allocation2 + $0x38] sm:$0x1] %v932_v31  ;;  %v917_v43 = vld [vmem:[#allocation2 + $0x20] sm:$0x1]  ;;  %v716_v47 = vor.u32 %v714_v29, %v6877_v36  ;;  %v718_v48 = vrot.slane %v6877_v36, 4  ;;  %v379_v49 = vsel %vm6759_vm5, 0, %v378_v38  ;;  %v571_v27 = vpack.c.bf16 %v539_v15, %v539_v15 }
  0x27   : > { %915 = vst [vmem:[#allocation2 + $0x18] sm:$0xf] %v914_v35  ;;  %v918_v46 = vsel %vm6753_vm4, %v616_v53, %v917_v43  ;;  %v1365_v51 = vsel %vm1353_vm8, %v1360_v22, %v1364_v42  ;;  %v737_v54 = vshrl.u32 %v567_v34, 16  ;;  %v740_v55 = vshll.u32 %v567_v34, 16  ;;  %v384_v4 = vld [vmem:[#allocation2 + $0x98] sm:$0x1] }
  0x28   : > { %944 = vst.msk [vmem:[#allocation2 + $0x4c] sm:$0xf] %vm280_vm0, %v683_v24  ;;  %1546 = vrot.lane.b32.xlu0 %v1365_v51, %s6692_s30  ;;  %v745_v56 = vshrl.u32 %v568_v40, 16  ;;  %v748_v57 = vshll.u32 %v568_v40, 16  ;;  %v717_v59 = vsel %vm6817_vm7, %v709_v45, %v716_v47  ;;  %v329_v62 = vsel %vm6753_vm4, 0, %v328_v50  ;;  %v540_v26 = vld [vmem:[%s6781_s29 + $0xb8] sm:$0xff] }
  0x29   : > { %919 = vst [vmem:[#allocation2 + $0x20] sm:$0x1] %v918_v46  ;;  %v941_v52 = vld [vmem:[#allocation2 + $0x48] sm:$0xf]  ;;  %v739_v61 = vrot.slane %v737_v54, 7  ;;  %v385_v25 = vsel %vm6759_vm5, 0, %v384_v4  ;;  %v572_v30 = vpack.c.bf16 %v540_v26, %v540_v26 }
  0x2a   : > { %v942_v41 = vsel %vm6846_vm9, %v674_v16, %v941_v52  ;;  %v945_v53 = vld [vmem:[#allocation2 + $0x50] sm:$0x1]  ;;  %374 = vst [vmem:[#allocation2 + $0x68] sm:$0x1] %v373_v14  ;;  %v6903_v2 = vrot.slane %v745_v56, 7  ;;  %v771_v35 = vshrl.u32 %v571_v27, 16 }
  0x2b   : > { %943 = vst [vmem:[#allocation2 + $0x48] sm:$0xf] %v942_v41  ;;  %v946_v58 = vsel %vm6753_vm4, %v684_v19, %v945_v53  ;;  %v955_v60 = vld [vmem:[#allocation2 + $0x60] sm:$0xf]  ;;  %v742_v11 = vor.u32 %v740_v55, %v739_v61  ;;  %v743_v13 = vrot.slane %v739_v61, 4  ;;  %v543_v31 = vld [vmem:[%s6781_s29 + $0xd0] sm:$0xff] }
  0x2c   : > { %v6306_v63 = vld [vmem:[#allocation2 + $0x30] sm:$0xff]   ;;  %947 = vst [vmem:[#allocation2 + $0x50] sm:$0x1] %v946_v58  ;;  %v956_v0 = vsel %vm6846_vm9, %v708_v44, %v955_v60  ;;  %v750_v14 = vor.u32 %v748_v57, %v6903_v2  ;;  %v752_v19 = vrot.slane %v6903_v2, 4  ;;  %v774_v36 = vshll.u32 %v571_v27, 16  ;;  %v544_v52 = vld [vmem:[%s6781_s29 + $0xd8] sm:$0xff] }
  0x2d   : > { %v1068_v5 = vld [vmem:[#allocation2 + $0x38] sm:$0x1]  ;;  %v1403_v6 = vshrl.u32 %v6306_v63, 16  ;;  %v1405_v7 = vshll.u32 %v6306_v63, 16  ;;  %957 = vst [vmem:[#allocation2 + $0x60] sm:$0xf] %v956_v0  ;;  %v575_v54 = vpack.c.bf16 %v543_v31, %v543_v31 }
  0x2e   : > { %v1325_v8 = vunpack.c.l.b16 %v1068_v5  ;;  %v6305_v9 = vld [vmem:[#allocation2 + $0x18] sm:$0xff]   ;;  %958 = vst.msk [vmem:[#allocation2 + $0x64] sm:$0xf] %vm280_vm0, %v717_v59  ;;  %v751_v23 = vsel %vm6817_vm7, %v743_v13, %v750_v14  ;;  %v773_v46 = vrot.slane %v771_v35, 7  ;;  %v779_v47 = vshrl.u32 %v572_v30, 16  ;;  %v521_v15 = vld [vmem:[%s6781_s29 + $0x20] sm:$0xff] }
  0x2f   : > { %v1407_v16 = vrot.slane %v1405_v7, 1  ;;  %v1379_v17 = vshrl.u32 %v6305_v9, 16  ;;  %v1381_v18 = vshll.u32 %v6305_v9, 16  ;;  %324 = vst [vmem:[#allocation2 + $0x78] sm:$0x1] %v323_v37  ;;  %v782_v51 = vshll.u32 %v572_v30, 16 }
  0x30   : > { %v6909_v20 = vpack.c.b16 %v1325_v8, %v1325_v8  ;;  %v1066_v22 = vld [vmem:[#allocation2 + $0x20] sm:$0x1]  ;;  %380 = vst [vmem:[#allocation2 + $0x80] sm:$0x1] %v379_v49  ;;  %v334_v58 = vld [vmem:[#allocation2 + $0xa8] sm:$0x1]  ;;  %v776_v63 = vor.u32 %v774_v36, %v773_v46  ;;  %v576_v13 = vpack.c.bf16 %v544_v52, %v544_v52 }
  0x31   : > { %v1408_v10 = vor.u32 %v1407_v16, %v1403_v6  ;;  %v1323_v24 = vunpack.c.l.b16 %v1066_v22  ;;  %v1383_v28 = vrot.slane %v1381_v18, 1  ;;  %v959_v29 = vld [vmem:[#allocation2 + $0x68] sm:$0x1]  ;;  %972 = vst.msk [vmem:[#allocation2 + $0x7c] sm:$0xf] %vm280_vm0, %v751_v23  ;;  %v777_v6 = vrot.slane %v773_v46, 4 }
  0x32   : > { %v1410_v32 = vshll.u32 %v6909_v20, 16  ;;  %v6307_v33 = vld [vmem:[#allocation2 + $0x48] sm:$0xff]   ;;  %v960_v34 = vsel %vm6753_vm4, %v718_v48, %v959_v29  ;;  %330 = vst [vmem:[#allocation2 + $0x90] sm:$0x1] %v329_v62  ;;  %v390_v0 = vld [vmem:[#allocation2 + $0xb0] sm:$0x1] }
  0x33   : > { %v6921_v37 = vpack.c.b16 %v1323_v24, %v1323_v24  ;;  %v1384_v38 = vor.u32 %v1383_v28, %v1379_v17  ;;  %v1070_v40 = vld [vmem:[#allocation2 + $0x50] sm:$0x1]  ;;  %v1427_v42 = vshrl.u32 %v6307_v33, 16  ;;  %v1429_v43 = vshll.u32 %v6307_v33, 16  ;;  %961 = vst [vmem:[#allocation2 + $0x68] sm:$0x1] %v960_v34 }
  0x34   : > { %v1412_v44 = vrot.slane %v1410_v32, 1  ;;  %v1327_v45 = vunpack.c.l.b16 %v1070_v40  ;;  %386 = vst [vmem:[#allocation2 + $0x98] sm:$0x1] %v385_v25  ;;  %v781_v8 = vrot.slane %v779_v47, 7  ;;  %v301_v14 = vld [vmem:[#allocation2 + $0x24] sm:$0x1] }
  0x35   : > { %v1386_v49 = vshll.u32 %v6921_v37, 16  ;;  %v1431_v50 = vrot.slane %v1429_v43, 1  ;;  %v6308_v48 = vld [vmem:[#allocation2 + $0x60] sm:$0xff]   ;;  %v391_v22 = vsel %vm6759_vm5, 0, %v390_v0  ;;  %v808_v28 = vshll.u32 %v575_v54, 16  ;;  %v522_v31 = vld [vmem:[%s6781_s29 + $0x28] sm:$0xff] }
  0x36   : > { %v1413_v55 = vsel %vm1353_vm8, %v1408_v10, %v1412_v44  ;;  %v6926_v41 = vpack.c.b16 %v1327_v45, %v1327_v45  ;;  %v1451_v53 = vshrl.u32 %v6308_v48, 16  ;;  %v1453_v56 = vshll.u32 %v6308_v48, 16  ;;  %v969_v57 = vld [vmem:[#allocation2 + $0x78] sm:$0xf]  ;;  %392 = vst [vmem:[#allocation2 + $0xb0] sm:$0x1] %v391_v22 }
  0x37   : > { %1554 = vrot.lane.b32.xlu2 %v1413_v55, %s6692_s30  ;;  %v1388_v59 = vrot.slane %v1386_v49, 1  ;;  %v1432_v60 = vor.u32 %v1431_v50, %v1427_v42  ;;  %v970_v61 = vsel %vm6846_vm9, %v742_v11, %v969_v57  ;;  %v973_v62 = vld [vmem:[#allocation2 + $0x80] sm:$0x1]  ;;  %v335_v11 = vsel %vm6753_vm4, 0, %v334_v58  ;;  %v357_v36 = vld [vmem:[#allocation2 + $0x2c] sm:$0x1] }
  0x38   : > { %v1434_v2 = vshll.u32 %v6926_v41, 16  ;;  %v1455_v4 = vrot.slane %v1453_v56, 1  ;;  %971 = vst [vmem:[#allocation2 + $0x78] sm:$0xf] %v970_v61  ;;  %v974_v5 = vsel %vm6753_vm4, %v752_v19, %v973_v62  ;;  %v784_v25 = vor.u32 %v782_v51, %v781_v8  ;;  %v517_v44 = vld [vmem:[%s6781_s29] sm:$0xff]  ;;  %s6693_s8 = smov 8  }
  0x39   : > { %v1389_v7 = vsel %vm1353_vm8, %v1384_v38, %v1388_v59  ;;  %975 = vst [vmem:[#allocation2 + $0x80] sm:$0x1] %v974_v5  ;;  %v983_v9 = vld [vmem:[#allocation2 + $0x90] sm:$0xf]  ;;  %v786_v26 = vrot.slane %v781_v8, 4  ;;  %v805_v10 = vshrl.u32 %v575_v54, 16  ;;  %v553_v43 = vpack.c.bf16 %v521_v15, %v521_v15 }
  0x3a   : > { %1550 = vrot.lane.b32.xlu1 %v1389_v7, %s6692_s30  ;;  %v1436_v16 = vrot.slane %v1434_v2, 1  ;;  %v1072_v17 = vld [vmem:[#allocation2 + $0x68] sm:$0x1]  ;;  %v1456_v18 = vor.u32 %v1455_v4, %v1451_v53  ;;  %v984_v19 = vsel %vm6846_vm9, %v776_v63, %v983_v9  ;;  %336 = vst [vmem:[#allocation2 + $0xa8] sm:$0x1] %v335_v11  ;;  %v813_v29 = vshrl.u32 %v576_v13, 16 }
  0x3b   : > { %v1329_v23 = vunpack.c.l.b16 %v1072_v17  ;;  %985 = vst [vmem:[#allocation2 + $0x90] sm:$0xf] %v984_v19  ;;  %v987_v27 = vld [vmem:[#allocation2 + $0x98] sm:$0x1]  ;;  %v816_v30 = vshll.u32 %v576_v13, 16  ;;  %v785_v33 = vsel %vm6817_vm7, %v777_v6, %v784_v25  ;;  %v807_v35 = vrot.slane %v805_v10, 7 }
  0x3c   : > { %v1437_v24 = vsel %vm1353_vm8, %v1432_v60, %v1436_v16  ;;  %v988_v34 = vsel %vm6753_vm4, %v786_v26, %v987_v27  ;;  %986 = vst.msk [vmem:[#allocation2 + $0x94] sm:$0xf] %vm280_vm0, %v785_v33  ;;  %v815_v38 = vrot.slane %v813_v29, 7  ;;  %v302_v40 = vsel %vm6753_vm4, 0, %v301_v14  ;;  %v295_v48 = vld [vmem:[#allocation2 + $0xc] sm:$0x1] }
  0x3d   : > { %1558 = vrot.lane.b32.xlu0 %v1437_v24, %s6692_s30  ;;  %v6946_v32 = vpack.c.b16 %v1329_v23, %v1329_v23  ;;  %v358_v42 = vsel %vm6759_vm5, 0, %v357_v36  ;;  %989 = vst [vmem:[#allocation2 + $0x98] sm:$0x1] %v988_v34  ;;  %v810_v47 = vor.u32 %v808_v28, %v807_v35  ;;  %v811_v49 = vrot.slane %v807_v35, 4  ;;  %v518_v2 = vld [vmem:[%s6781_s29 + $0x8] sm:$0xff]  ;;  %v525_v4 = vld [vmem:[%s6781_s29 + $0x40] sm:$0xff] }
  0x3e   : > { %v554_v50 = vpack.c.bf16 %v522_v31, %v522_v31  ;;  %v818_v55 = vor.u32 %v816_v30, %v815_v38  ;;  %v820_v53 = vrot.slane %v815_v38, 4  ;;  %303 = vst [vmem:[#allocation2 + $0x24] sm:$0x1] %v302_v40  ;;  %v618_v59 = vshrl.u32 %v553_v43, 16  ;;  %v1001_v7 = vld [vmem:[#allocation2 + $0xb0] sm:$0x1] }
  0x3f   : > { %v1458_v45 = vshll.u32 %v6946_v32, 16  ;;  %v6309_v46 = vld [vmem:[#allocation2 + $0x78] sm:$0xff]   ;;  %v6959_v60 = vpack.c.bf16 %v517_v44, %v517_v44  ;;  %359 = vst [vmem:[#allocation2 + $0x2c] sm:$0x1] %v358_v42  ;;  %v621_v0 = vshll.u32 %v553_v43, 16  ;;  %v296_v15 = vsel %vm6753_vm4, 0, %v295_v48 }
  0x40   : > { %v1074_v51 = vld [vmem:[#allocation2 + $0x80] sm:$0x1]  ;;  %v1475_v52 = vshrl.u32 %v6309_v46, 16  ;;  %v1477_v54 = vshll.u32 %v6309_v46, 16  ;;  %v819_v62 = vsel %vm6817_vm7, %v811_v49, %v818_v55  ;;  %v620_v8 = vrot.slane %v618_v59, 7  ;;  %v526_v34 = vld [vmem:[%s6781_s29 + $0x48] sm:$0xff] }
  0x41   : > { %v1460_v56 = vrot.slane %v1458_v45, 1  ;;  %v1331_v57 = vunpack.c.l.b16 %v1074_v51  ;;  %v997_v58 = vld [vmem:[#allocation2 + $0xa8] sm:$0xf]  ;;  %v626_v9 = vshrl.u32 %v554_v50, 16  ;;  %1000 = vst.msk [vmem:[#allocation2 + $0xac] sm:$0xf] %vm280_vm0, %v819_v62  ;;  %v1002_v13 = vsel %vm6753_vm4, %v820_v53, %v1001_v7 }
  0x42   : > { %v1479_v61 = vrot.slane %v1477_v54, 1  ;;  %v998_v63 = vsel %vm6846_vm9, %v810_v47, %v997_v58  ;;  %v629_v14 = vshll.u32 %v554_v50, 16  ;;  %v351_v16 = vld [vmem:[#allocation2 + $0x14] sm:$0x1]  ;;  %1003 = vst [vmem:[#allocation2 + $0xb0] sm:$0x1] %v1002_v13  ;;  %v623_v19 = vor.u32 %v621_v0, %v620_v8 }
  0x43   : > { %v1461_v5 = vsel %vm1353_vm8, %v1456_v18, %v1460_v56  ;;  %v6968_v6 = vpack.c.b16 %v1331_v57, %v1331_v57  ;;  %999 = vst [vmem:[#allocation2 + $0xa8] sm:$0xf] %v998_v63  ;;  %v6310_v18 = vld [vmem:[#allocation2 + $0x90] sm:$0xff]   ;;  %v624_v22 = vrot.slane %v620_v8, 4  ;;  %v628_v23 = vrot.slane %v626_v9, 7  ;;  %v529_v49 = vld [vmem:[%s6781_s29 + $0x60] sm:$0xff] }
  0x44   : > { %1562 = vrot.lane.b32.xlu2 %v1461_v5, %s6692_s30  ;;  %v1480_v11 = vor.u32 %v1479_v61, %v1475_v52  ;;  %v1076_v25 = vld [vmem:[#allocation2 + $0x98] sm:$0x1]  ;;  %v1499_v26 = vshrl.u32 %v6310_v18, 16  ;;  %v1501_v27 = vshll.u32 %v6310_v18, 16  ;;  %297 = vst [vmem:[#allocation2 + $0xc] sm:$0x1] %v296_v15  ;;  %v550_v10 = vpack.c.bf16 %v518_v2, %v518_v2 }
  0x45   : > { %v1482_v17 = vshll.u32 %v6968_v6, 16  ;;  %v6977_v24 = vpack.c.bf16 %v525_v4, %v525_v4  ;;  %v1333_v29 = vunpack.c.l.b16 %v1076_v25  ;;  %v631_v30 = vor.u32 %v629_v14, %v628_v23  ;;  %v307_v33 = vld [vmem:[#allocation2 + $0x3c] sm:$0x1]  ;;  %v920_v36 = vld [vmem:[#allocation2 + $0x24] sm:$0xf]  ;;  %v530_v8 = vld [vmem:[%s6781_s29 + $0x68] sm:$0xff] }
  0x46   : > { %v633_v31 = vrot.slane %v628_v23, 4  ;;  %v1503_v35 = vrot.slane %v1501_v27, 1  ;;  %v352_v38 = vsel %vm6759_vm5, 0, %v351_v16  ;;  %v584_v40 = vshrl.u32 %v6959_v60, 16  ;;  %v924_v47 = vld [vmem:[#allocation2 + $0x2c] sm:$0x1] }
  0x47   : > { %v1484_v28 = vrot.slane %v1482_v17, 1  ;;  %v587_v42 = vshll.u32 %v6959_v60, 16  ;;  %v6985_v44 = vpack.c.b16 %v1333_v29, %v1333_v29  ;;  %v632_v45 = vsel %vm6817_vm7, %v624_v22, %v631_v30  ;;  %353 = vst [vmem:[#allocation2 + $0x14] sm:$0x1] %v352_v38  ;;  %v363_v54 = vld [vmem:[#allocation2 + $0x44] sm:$0x1] }
  0x48   : > { %v921_v46 = vsel %vm6846_vm9, %v623_v19, %v920_v36  ;;  %v1504_v50 = vor.u32 %v1503_v35, %v1499_v26  ;;  %v925_v48 = vsel %vm6753_vm4, %v633_v31, %v924_v47  ;;  %v586_v51 = vrot.slane %v584_v40, 7  ;;  %923 = vst.msk [vmem:[#allocation2 + $0x28] sm:$0xf] %vm280_vm0, %v632_v45  ;;  %v313_v19 = vld [vmem:[#allocation2 + $0x54] sm:$0x1]  ;;  %s6694_s9 = smov 12  }
  0x49   : > { %v1485_v43 = vsel %vm1353_vm8, %v1480_v11, %v1484_v28  ;;  %922 = vst [vmem:[#allocation2 + $0x24] sm:$0xf] %v921_v46  ;;  %v592_v52 = vshrl.u32 %v550_v10, 16  ;;  %v1506_v55 = vshll.u32 %v6985_v44, 16  ;;  %v595_v56 = vshll.u32 %v550_v10, 16  ;;  %s6695_s10 = smov 16  }
  0x4a   : > { %1566 = vrot.lane.b32.xlu1 %v1485_v43, %s6692_s30  ;;  %v6311_v53 = vld [vmem:[#allocation2 + $0xa8] sm:$0xff]   ;;  %v308_v57 = vsel %vm6753_vm4, 0, %v307_v33  ;;  %v558_v58 = vpack.c.bf16 %v526_v34, %v526_v34  ;;  %v1078_v59 = vld [vmem:[#allocation2 + $0xb0] sm:$0x1]  ;;  %926 = vst [vmem:[#allocation2 + $0x2c] sm:$0x1] %v925_v48  ;;  %v589_v62 = vor.u32 %v587_v42, %v586_v51  ;;  %v6999_v63 = vpack.c.bf16 %v529_v49, %v529_v49 }
  0x4b   : > { %v1523_v60 = vshrl.u32 %v6311_v53, 16  ;;  %v1525_v61 = vshll.u32 %v6311_v53, 16  ;;  %v1508_v0 = vrot.slane %v1506_v55, 1  ;;  %v1335_v2 = vunpack.c.l.b16 %v1078_v59  ;;  %v906_v7 = vld [vmem:[#allocation2 + $0xc] sm:$0xf]  ;;  %s6696_s11 = smov 28  }
  0x4c   : > { %v590_v4 = vrot.slane %v586_v51, 4  ;;  %v594_v5 = vrot.slane %v592_v52, 7  ;;  %v907_v11 = vsel %vm6846_vm9, %v589_v62, %v906_v7  ;;  %309 = vst [vmem:[#allocation2 + $0x3c] sm:$0x1] %v308_v57  ;;  %v364_v13 = vsel %vm6759_vm5, 0, %v363_v54  ;;  %v534_v59 = vld [vmem:[%s6781_s29 + $0x88] sm:$0xff] }
  0x4d   : > { %v1527_v9 = vrot.slane %v1525_v61, 1  ;;  %v652_v14 = vshrl.u32 %v6977_v24, 16  ;;  %v1509_v15 = vsel %vm1353_vm8, %v1504_v50, %v1508_v0  ;;  %v7008_v16 = vpack.c.b16 %v1335_v2, %v1335_v2  ;;  %908 = vst [vmem:[#allocation2 + $0xc] sm:$0xf] %v907_v11  ;;  %v369_v31 = vld [vmem:[#allocation2 + $0x5c] sm:$0x1] }
  0x4e   : > { %v597_v17 = vor.u32 %v595_v56, %v594_v5  ;;  %v599_v18 = vrot.slane %v594_v5, 4  ;;  %1570 = vrot.lane.b32.xlu0 %v1509_v15, %s6692_s30  ;;  %v910_v23 = vld [vmem:[#allocation2 + $0x14] sm:$0x1]  ;;  %365 = vst [vmem:[#allocation2 + $0x44] sm:$0x1] %v364_v13  ;;  %v655_v26 = vshll.u32 %v6977_v24, 16  ;;  %v562_v27 = vpack.c.bf16 %v530_v8, %v530_v8 }
  0x4f   : > { %v1528_v22 = vor.u32 %v1527_v9, %v1523_v60  ;;  %v654_v25 = vrot.slane %v652_v14, 7  ;;  %v1530_v10 = vshll.u32 %v7008_v16, 16  ;;  %v660_v30 = vshrl.u32 %v558_v58, 16  ;;  %v7019_v34 = vld [vmem:[#allocation2 + $0x24] sm:$0xf0]  ;;  %v533_v50 = vld [vmem:[%s6781_s29 + $0x80] sm:$0xff] }
  0x50   : > { %v598_v28 = vsel %vm6817_vm7, %v590_v4, %v597_v17  ;;  %v911_v29 = vsel %vm6753_vm4, %v599_v18, %v910_v23  ;;  %v7017_v33 = vld [vmem:[#allocation2 + $0x24] sm:$0xff]   ;;  %v663_v36 = vshll.u32 %v558_v58, 16  ;;  %v314_v38 = vsel %vm6753_vm4, 0, %v313_v19  ;;  %v319_v58 = vld [vmem:[#allocation2 + $0x6c] sm:$0x1]  ;;  %s6697_s12 = smov 20  }
  0x51   : > { %909 = vst.msk [vmem:[#allocation2 + $0x10] sm:$0xf] %vm280_vm0, %v598_v28  ;;  %v657_v35 = vor.u32 %v655_v26, %v654_v25  ;;  %v658_v24 = vrot.slane %v654_v25, 4  ;;  %v1532_v40 = vrot.slane %v1530_v10, 1  ;;  %v1067_v42 = vld [vmem:[#allocation2 + $0x2c] sm:$0x1]  ;;  %v565_v0 = vpack.c.bf16 %v533_v50, %v533_v50 }
  0x52   : > { %912 = vst [vmem:[#allocation2 + $0x14] sm:$0x1] %v911_v29  ;;  %v662_v43 = vrot.slane %v660_v30, 7  ;;  %v1324_v45 = vunpack.c.l.b16 %v1067_v42  ;;  %v370_v46 = vsel %vm6759_vm5, 0, %v369_v31  ;;  %v686_v47 = vshrl.u32 %v6999_v63, 16  ;;  %s6698_s13 = smov 24  }
  0x53   : > { %315 = vst [vmem:[#allocation2 + $0x54] sm:$0x1] %v314_v38  ;;  %v689_v49 = vshll.u32 %v6999_v63, 16  ;;  %v1533_v48 = vsel %vm1353_vm8, %v1528_v22, %v1532_v40  ;;  %v934_v54 = vld [vmem:[#allocation2 + $0x3c] sm:$0xf]  ;;  %v694_v57 = vshrl.u32 %v562_v27, 16  ;;  %v566_v17 = vpack.c.bf16 %v534_v59, %v534_v59 }
  0x54   : > { %v665_v51 = vor.u32 %v663_v36, %v662_v43  ;;  %v667_v52 = vrot.slane %v662_v43, 4  ;;  %371 = vst [vmem:[#allocation2 + $0x5c] sm:$0x1] %v370_v46  ;;  %1574 = vrot.lane.b32.xlu2 %v1533_v48, %s6692_s30  ;;  %v7031_v55 = vpack.c.b16 %v1324_v45, %v1324_v45  ;;  %v935_v53 = vsel %vm6846_vm9, %v657_v35, %v934_v54  ;;  %v375_v8 = vld [vmem:[#allocation2 + $0x74] sm:$0x1]  ;;  %v537_v35 = vld [vmem:[%s6781_s29 + $0xa0] sm:$0xff] }
  0x55   : > { %v688_v56 = vrot.slane %v686_v47, 7  ;;  %v1391_v60 = vshrl.u32 %v7017_v33, 16  ;;  %v1393_v61 = vshll.u32 %v7017_v33, 16  ;;  %936 = vst [vmem:[#allocation2 + $0x3c] sm:$0xf] %v935_v53  ;;  %v696_v14 = vrot.slane %v694_v57, 7 }
  0x56   : > { %v666_v62 = vsel %vm6817_vm7, %v658_v24, %v665_v51  ;;  %v938_v63 = vld [vmem:[#allocation2 + $0x44] sm:$0x1]  ;;  %v1398_v2 = vshll.u32 %v7031_v55, 16  ;;  %v697_v15 = vshll.u32 %v562_v27, 16  ;;  %v320_v22 = vsel %vm6753_vm4, 0, %v319_v58  ;;  %s6699_s14 = smov 32  }
  0x57   : > { %937 = vst.msk [vmem:[#allocation2 + $0x40] sm:$0xf] %vm280_vm0, %v666_v62  ;;  %v939_v4 = vsel %vm6753_vm4, %v667_v52, %v938_v63  ;;  %v691_v5 = vor.u32 %v689_v49, %v688_v56  ;;  %v692_v7 = vrot.slane %v688_v56, 4  ;;  %v1395_v9 = vrot.slane %v1393_v61, 1  ;;  %v325_v42 = vld [vmem:[#allocation2 + $0x84] sm:$0x1] }
  0x58   : > { %v7044_v11 = vld [vmem:[#allocation2 + $0xc] sm:$0xff]   ;;  %940 = vst [vmem:[#allocation2 + $0x44] sm:$0x1] %v939_v4  ;;  %v1400_v18 = vrot.slane %v1398_v2, 1  ;;  %v699_v26 = vor.u32 %v697_v15, %v696_v14  ;;  %v701_v10 = vrot.slane %v696_v14, 4  ;;  %v376_v31 = vsel %vm6759_vm5, 0, %v375_v8 }
  0x59   : > { %v7046_v13 = vld [vmem:[#allocation2 + $0xc] sm:$0xf0]  ;;  %v1065_v19 = vld [vmem:[#allocation2 + $0x14] sm:$0x1]  ;;  %v1396_v23 = vor.u32 %v1395_v9, %v1391_v60  ;;  %321 = vst [vmem:[#allocation2 + $0x6c] sm:$0x1] %v320_v22  ;;  %v569_v53 = vpack.c.bf16 %v537_v35, %v537_v35 }
  0x5a   : > { %v1322_v25 = vunpack.c.l.b16 %v1065_v19  ;;  %v948_v28 = vld [vmem:[#allocation2 + $0x54] sm:$0xf]  ;;  %v720_v27 = vshrl.u32 %v565_v0, 16  ;;  %v700_v38 = vsel %vm6817_vm7, %v692_v7, %v699_v26  ;;  %v381_v43 = vld [vmem:[#allocation2 + $0x8c] sm:$0x1]  ;;  %v1367_v45 = vshrl.u32 %v7044_v11, 16 }
  0x5b   : > { %v949_v29 = vsel %vm6846_vm9, %v691_v5, %v948_v28  ;;  %v952_v30 = vld [vmem:[#allocation2 + $0x5c] sm:$0x1]  ;;  %v1401_v24 = vsel %vm1353_vm8, %v1396_v23, %v1400_v18  ;;  %v1369_v46 = vshll.u32 %v7044_v11, 16  ;;  %951 = vst.msk [vmem:[#allocation2 + $0x58] sm:$0xf] %vm280_vm0, %v700_v38  ;;  %v723_v49 = vshll.u32 %v565_v0, 16 }
  0x5c   : > { %v7056_v36 = vpack.c.b16 %v1322_v25, %v1322_v25  ;;  %950 = vst [vmem:[#allocation2 + $0x54] sm:$0xf] %v949_v29  ;;  %v953_v40 = vsel %vm6753_vm4, %v701_v10, %v952_v30  ;;  %1552 = vrot.lane.b32.xlu1 %v1401_v24, %s6692_s30  ;;  %v722_v47 = vrot.slane %v720_v27, 7  ;;  %v728_v52 = vshrl.u32 %v566_v17, 16  ;;  %v538_v63 = vld [vmem:[%s6781_s29 + $0xa8] sm:$0xff] }
  0x5d   : > { %954 = vst [vmem:[#allocation2 + $0x5c] sm:$0x1] %v953_v40  ;;  %v731_v54 = vshll.u32 %v566_v17, 16  ;;  %v1371_v56 = vrot.slane %v1369_v46, 1  ;;  %v326_v4 = vsel %vm6753_vm4, 0, %v325_v42  ;;  %v382_v5 = vsel %vm6759_vm5, 0, %v381_v43 }
  0x5e   : > { %v1374_v50 = vshll.u32 %v7056_v36, 16  ;;  %v7067_v48 = vld [vmem:[#allocation2 + $0x3c] sm:$0xff]   ;;  %377 = vst [vmem:[#allocation2 + $0x74] sm:$0x1] %v376_v31  ;;  %v725_v58 = vor.u32 %v723_v49, %v722_v47  ;;  %v726_v61 = vrot.slane %v722_v47, 4  ;;  %v730_v62 = vrot.slane %v728_v52, 7 }
  0x5f   : > { %v7069_v51 = vld [vmem:[#allocation2 + $0x3c] sm:$0xf0]  ;;  %v1069_v57 = vld [vmem:[#allocation2 + $0x44] sm:$0x1]  ;;  %v1372_v0 = vor.u32 %v1371_v56, %v1367_v45  ;;  %327 = vst [vmem:[#allocation2 + $0x84] sm:$0x1] %v326_v4  ;;  %v570_v19 = vpack.c.bf16 %v538_v63, %v538_v63 }
  0x60   : > { %v1376_v59 = vrot.slane %v1374_v50, 1  ;;  %v1326_v60 = vunpack.c.l.b16 %v1069_v57  ;;  %v962_v2 = vld [vmem:[#allocation2 + $0x6c] sm:$0xf]  ;;  %v733_v8 = vor.u32 %v731_v54, %v730_v62  ;;  %v735_v9 = vrot.slane %v730_v62, 4  ;;  %v331_v22 = vld [vmem:[#allocation2 + $0x9c] sm:$0x1] }
  0x61   : > { %v963_v14 = vsel %vm6846_vm9, %v725_v58, %v962_v2  ;;  %v1415_v17 = vshrl.u32 %v7067_v48, 16  ;;  %v1417_v18 = vshll.u32 %v7067_v48, 16  ;;  %383 = vst [vmem:[#allocation2 + $0x8c] sm:$0x1] %v382_v5  ;;  %v754_v28 = vshrl.u32 %v569_v53, 16  ;;  %v541_v43 = vld [vmem:[%s6781_s29 + $0xc0] sm:$0xff] }
  0x62   : > { %v7076_v7 = vpack.c.b16 %v1326_v60, %v1326_v60  ;;  %v1377_v15 = vsel %vm1353_vm8, %v1372_v0, %v1376_v59  ;;  %964 = vst [vmem:[#allocation2 + $0x6c] sm:$0xf] %v963_v14  ;;  %v7087_v26 = vld [vmem:[#allocation2 + $0x54] sm:$0xf0]  ;;  %v734_v10 = vsel %vm6817_vm7, %v726_v61, %v733_v8  ;;  %v757_v29 = vshll.u32 %v569_v53, 16  ;;  %v542_v50 = vld [vmem:[%s6781_s29 + $0xc8] sm:$0xff] }
  0x63   : > { %1548 = vrot.lane.b32.xlu0 %v1377_v15, %s6692_s30  ;;  %v7085_v25 = vld [vmem:[#allocation2 + $0x54] sm:$0xff]   ;;  %v1419_v30 = vrot.slane %v1417_v18, 1  ;;  %965 = vst.msk [vmem:[#allocation2 + $0x70] sm:$0xf] %vm280_vm0, %v734_v10  ;;  %v762_v27 = vshrl.u32 %v570_v19, 16  ;;  %v756_v40 = vrot.slane %v754_v28, 7  ;;  %v574_v18 = vpack.c.bf16 %v542_v50, %v542_v50 }
  0x64   : > { %v1422_v23 = vshll.u32 %v7076_v7, 16  ;;  %9241 = vst [vmem:[#allocation6_spill] sm:$0xff] %v7085_v25  ;;  %v1071_v31 = vld [vmem:[#allocation2 + $0x5c] sm:$0x1]  ;;  %v765_v42 = vshll.u32 %v570_v19, 16  ;;  %v332_v57 = vsel %vm6753_vm4, 0, %v331_v22 }
  0x65   : > { %v1328_v24 = vunpack.c.l.b16 %v1071_v31  ;;  %v966_v38 = vld [vmem:[#allocation2 + $0x74] sm:$0x1]  ;;  %v1420_v45 = vor.u32 %v1419_v30, %v1415_v17  ;;  %v764_v47 = vrot.slane %v762_v27, 7  ;;  %v387_v49 = vld [vmem:[#allocation2 + $0xa4] sm:$0x1]  ;;  %v759_v53 = vor.u32 %v757_v29, %v756_v40  ;;  %v546_v19 = vld [vmem:[%s6781_s29 + $0xe8] sm:$0xff] }
  0x66   : > { %v1424_v35 = vrot.slane %v1422_v23, 1  ;;  %v967_v46 = vsel %vm6753_vm4, %v735_v9, %v966_v38  ;;  %v337_v52 = vld [vmem:[#allocation2 + $0xb4] sm:$0x1]  ;;  %v760_v56 = vrot.slane %v756_v40, 4  ;;  %v393_v58 = vld [vmem:[#allocation2 + $0xbc] sm:$0x1]  ;;  %v573_v17 = vpack.c.bf16 %v541_v43, %v541_v43 }
  0x67   : > { %v7096_v54 = vpack.c.b16 %v1328_v24, %v1328_v24  ;;  %968 = vst [vmem:[#allocation2 + $0x74] sm:$0x1] %v967_v46  ;;  %v1439_v60 = vshrl.u32 %v7085_v25, 16  ;;  %v1441_v61 = vshll.u32 %v7085_v25, 16  ;;  %v767_v62 = vor.u32 %v765_v42, %v764_v47  ;;  %v976_v63 = vld [vmem:[#allocation2 + $0x84] sm:$0xf] }
  0x68   : > { %v1425_v59 = vsel %vm1353_vm8, %v1420_v45, %v1424_v35  ;;  %333 = vst [vmem:[#allocation2 + $0x9c] sm:$0x1] %v332_v57  ;;  %v769_v2 = vrot.slane %v764_v47, 4  ;;  %v977_v4 = vsel %vm6846_vm9, %v759_v53, %v976_v63  ;;  %v388_v5 = vsel %vm6759_vm5, 0, %v387_v49  ;;  %v545_v8 = vld [vmem:[%s6781_s29 + $0xe0] sm:$0xff] }
  0x69   : > { %1556 = vrot.lane.b32.xlu2 %v1425_v59, %s6692_s30  ;;  %v1446_v0 = vshll.u32 %v7096_v54, 16  ;;  %v1443_v9 = vrot.slane %v1441_v61, 1  ;;  %v768_v14 = vsel %vm6817_vm7, %v760_v56, %v767_v62  ;;  %978 = vst [vmem:[#allocation2 + $0x84] sm:$0xf] %v977_v4  ;;  %v980_v15 = vld [vmem:[#allocation2 + $0x8c] sm:$0x1]  ;;  %v577_v40 = vpack.c.bf16 %v545_v8, %v545_v8 }
  0x6a   : > { %v7113_v23 = vld [vmem:[#allocation2 + $0x6c] sm:$0xff]   ;;  %979 = vst.msk [vmem:[#allocation2 + $0x88] sm:$0xf] %vm280_vm0, %v768_v14  ;;  %v981_v28 = vsel %vm6753_vm4, %v769_v2, %v980_v15  ;;  %v338_v29 = vsel %vm6753_vm4, 0, %v337_v52  ;;  %v394_v30 = vsel %vm6759_vm5, 0, %v393_v58  ;;  %v788_v27 = vshrl.u32 %v573_v17, 16 }
  0x6b   : > { %v1448_v22 = vrot.slane %v1446_v0, 1  ;;  %9242 = vst [vmem:[#allocation7_spill] sm:$0xff] %v7113_v23  ;;  %v7115_v10 = vld [vmem:[#allocation2 + $0x6c] sm:$0xf0]  ;;  %v1444_v31 = vor.u32 %v1443_v9, %v1439_v60  ;;  %v791_v35 = vshll.u32 %v573_v17, 16  ;;  %v796_v24 = vshrl.u32 %v574_v18, 16 }
  0x6c   : > { %982 = vst [vmem:[#allocation2 + $0x8c] sm:$0x1] %v981_v28  ;;  %v799_v38 = vshll.u32 %v574_v18, 16  ;;  %v790_v45 = vrot.slane %v788_v27, 7  ;;  %v578_v46 = vpack.c.bf16 %v546_v19, %v546_v19  ;;  %v822_v52 = vshrl.u32 %v577_v40, 16 }
  0x6d   : > { %389 = vst [vmem:[#allocation2 + $0xa4] sm:$0x1] %v388_v5  ;;  %v1449_v42 = vsel %vm1353_vm8, %v1444_v31, %v1448_v22  ;;  %v798_v49 = vrot.slane %v796_v24, 7  ;;  %v1463_v53 = vshrl.u32 %v7113_v23, 16  ;;  %v1465_v56 = vshll.u32 %v7113_v23, 16 }
  0x6e   : > { %v1073_v43 = vld [vmem:[#allocation2 + $0x74] sm:$0x1]  ;;  %339 = vst [vmem:[#allocation2 + $0xb4] sm:$0x1] %v338_v29  ;;  %1560 = vrot.lane.b32.xlu1 %v1449_v42, %s6692_s30  ;;  %v793_v57 = vor.u32 %v791_v35, %v790_v45  ;;  %v794_v58 = vrot.slane %v790_v45, 4  ;;  %v824_v62 = vrot.slane %v822_v52, 7 }
  0x6f   : > { %v1330_v47 = vunpack.c.l.b16 %v1073_v43  ;;  %v990_v50 = vld [vmem:[#allocation2 + $0x9c] sm:$0xf]  ;;  %395 = vst [vmem:[#allocation2 + $0xbc] sm:$0x1] %v394_v30  ;;  %v801_v60 = vor.u32 %v799_v38, %v798_v49  ;;  %v803_v61 = vrot.slane %v798_v49, 4  ;;  %v1467_v0 = vrot.slane %v1465_v56, 1 }
  0x70   : > { %v6540_v63 = vld [vmem:[#allocation2 + $0xc] sm:$0xe]  ;;  %v991_v5 = vsel %vm6846_vm9, %v793_v57, %v990_v50  ;;  %v825_v8 = vshll.u32 %v577_v40, 16  ;;  %v830_v9 = vshrl.u32 %v578_v46, 16  ;;  %v828_v24 = vrot.slane %v824_v62, 4 }
  0x71   : > { %v7128_v59 = vpack.c.b16 %v1330_v47, %v1330_v47  ;;  %v7130_v2 = vld [vmem:[#allocation2 + $0x84] sm:$0xff]   ;;  %v802_v17 = vsel %vm6817_vm7, %v794_v58, %v801_v60  ;;  %992 = vst [vmem:[#allocation2 + $0x9c] sm:$0xf] %v991_v5  ;;  %v1468_v18 = vor.u32 %v1467_v0, %v1463_v53  ;;  %v833_v38 = vshll.u32 %v578_v46, 16 }
  0x72   : > { %9243 = vst [vmem:[#allocation8_spill] sm:$0xff] %v7130_v2  ;;  %v7132_v4 = vld [vmem:[#allocation2 + $0x84] sm:$0xf0]  ;;  %v827_v28 = vor.u32 %v825_v8, %v824_v62  ;;  %v832_v31 = vrot.slane %v830_v9, 7  ;;  %v1487_v45 = vshrl.u32 %v7130_v2, 16  ;;  %v1489_v47 = vshll.u32 %v7130_v2, 16 }
  0x73   : > { %v1470_v14 = vshll.u32 %v7128_v59, 16  ;;  %v1075_v15 = vld [vmem:[#allocation2 + $0x8c] sm:$0x1]  ;;  %993 = vst.msk [vmem:[#allocation2 + $0xa0] sm:$0xf] %vm280_vm0, %v802_v17  ;;  %v6541_v62 = vor.u32 %v6540_v63, %v7046_v13  ;;  %vm1626_vm10 = vcmask 1046528  }
  0x74   : > { %v1332_v19 = vunpack.c.l.b16 %v1075_v15  ;;  %v994_v22 = vld [vmem:[#allocation2 + $0xa4] sm:$0x1]  ;;  %v837_v49 = vrot.slane %v832_v31, 4  ;;  %v835_v52 = vor.u32 %v833_v38, %v832_v31  ;;  %v1491_v53 = vrot.slane %v1489_v47, 1  ;;  %v6333_v15 = vld [vmem:[#allocation2 + $0x30] sm:$0xf0] }
  0x75   : > { %v1472_v29 = vrot.slane %v1470_v14, 1  ;;  %v995_v30 = vsel %vm6753_vm4, %v803_v61, %v994_v22  ;;  %v1004_v27 = vld [vmem:[#allocation2 + $0xb4] sm:$0xf]  ;;  %v1630_v9 = vrot.slane %v6541_v62, 1  ;;  %v1631_v14 = vrot.slane %v7056_v36, 1 }
  0x76   : > { %v7142_v35 = vpack.c.b16 %v1332_v19, %v1332_v19  ;;  %996 = vst [vmem:[#allocation2 + $0xa4] sm:$0x1] %v995_v30  ;;  %v1005_v40 = vsel %vm6846_vm9, %v827_v28, %v1004_v27  ;;  %v1008_v42 = vld [vmem:[#allocation2 + $0xbc] sm:$0x1]  ;;  %v836_v57 = vsel %vm6817_vm7, %v828_v24, %v835_v52  ;;  %v1492_v58 = vor.u32 %v1491_v53, %v1487_v45  ;;  %v6334_v17 = vld [vmem:[#allocation2 + $0x30] sm:$0xe] }
  0x77   : > { %v1473_v43 = vsel %vm1353_vm8, %v1468_v18, %v1472_v29  ;;  %1006 = vst [vmem:[#allocation2 + $0xb4] sm:$0xf] %v1005_v40  ;;  %v1009_v46 = vsel %vm6753_vm4, %v837_v49, %v1008_v42  ;;  %v6327_v13 = vld [vmem:[#allocation2] sm:$0xf0]  ;;  %v6328_v63 = vld [vmem:[#allocation2] sm:$0xe]  ;;  %v6335_v24 = vor.u32 %v6334_v17, %v6333_v15  ;;  %v1632_v38 = vsel %vm1626_vm10, %v1630_v9, %v1631_v14 }
  0x78   : > { %1564 = vrot.lane.b32.xlu0 %v1473_v43, %s6692_s30  ;;  %v1494_v50 = vshll.u32 %v7142_v35, 16  ;;  %1010 = vst [vmem:[#allocation2 + $0xbc] sm:$0x1] %v1009_v46  ;;  %v6329_v45 = vor.u32 %v6328_v63, %v6327_v13  ;;  %v6543_v47 = vld [vmem:[#allocation2 + $0x54] sm:$0xe]  ;;  %v1628_v62 = vrot.slane %v6865_v21, 1 }
  0x79   : > { %1007 = vst.msk [vmem:[#allocation2 + $0xb8] sm:$0xf] %vm280_vm0, %v836_v57  ;;  %v6546_v49 = vld [vmem:[#allocation2 + $0x24] sm:$0xe]  ;;  %v1639_v53 = vrot.slane %v6335_v24, 1  ;;  %v1640_v57 = vrot.slane %v6909_v20, 1 }
  0x7a   : > { %v1496_v56 = vrot.slane %v1494_v50, 1  ;;  %v7155_v60 = vld [vmem:[#allocation2 + $0x9c] sm:$0xff]   ;;  %v1634_v21 = vrot.slane %v6921_v37, 1  ;;  %vm9228_vm11 = vcmask 1041408   ;;  %vm2731_vm12 = vcmask 31744  }
  0x7b   : > { %9244 = vst [vmem:[#allocation9_spill] sm:$0xff] %v7155_v60  ;;  %v7157_v61 = vld [vmem:[#allocation2 + $0x9c] sm:$0xf0]  ;;  %v1511_v19 = vshrl.u32 %v7155_v60, 16  ;;  %v1513_v22 = vshll.u32 %v7155_v60, 16  ;;  %v1641_v17 = vsel %vm1626_vm10, %v1639_v53, %v1640_v57  ;;  %v1646_v57 = vrot.slane %v6926_v41, 1 }
  0x7c   : > { %v1497_v0 = vsel %vm1353_vm8, %v1492_v58, %v1496_v56  ;;  %v1627_v58 = vrot.slane %v6329_v45, 1  ;;  %v6549_v13 = vld [vmem:[#allocation2 + $0x3c] sm:$0xe]  ;;  %v6555_v53 = vld [vmem:[#allocation2 + $0x6c] sm:$0xe]  ;;  %vm2764_vm13 = vcmask 64512  }
  0x7d   : > { %v1077_v5 = vld [vmem:[#allocation2 + $0xa4] sm:$0x1]  ;;  %1568 = vrot.lane.b32.xlu2 %v1497_v0, %s6692_s30  ;;  %v1515_v29 = vrot.slane %v1513_v22, 1  ;;  %v6330_v0 = vld [vmem:[#allocation2 + $0x18] sm:$0xf0]  ;;  %v6550_v45 = vor.u32 %v6549_v13, %v7069_v51  ;;  %v1658_v51 = vrot.slane %v6968_v6, 1 }
  0x7e   : > { %v1334_v8 = vunpack.c.l.b16 %v1077_v5  ;;  %v6331_v5 = vld [vmem:[#allocation2 + $0x18] sm:$0xe]  ;;  %v1629_v22 = vsel %vm1626_vm10, %v1627_v58, %v1628_v62  ;;  %v6342_v24 = vld [vmem:[#allocation2 + $0x78] sm:$0xf0]  ;;  %v6339_v58 = vld [vmem:[#allocation2 + $0x60] sm:$0xf0] }
  0x7f   : > { %v1079_v28 = vld [vmem:[#allocation2 + $0xbc] sm:$0x1]  ;;  %v1516_v40 = vor.u32 %v1515_v29, %v1511_v19  ;;  %v6332_v15 = vor.u32 %v6331_v5, %v6330_v0  ;;  %v6544_v19 = vor.u32 %v6543_v47, %v7087_v26  ;;  %v6340_v62 = vld [vmem:[#allocation2 + $0x60] sm:$0xe]  ;;  %v1652_v6 = vrot.slane %v6946_v32, 1  ;;  %v7219_v32 = vld [vmem:[#allocation2 + $0xc] sm:$0xff]  }
  0x80   : > { %v7164_v18 = vpack.c.b16 %v1334_v8, %v1334_v8  ;;  %v7169_v31 = vld [vmem:[#allocation2 + $0xb4] sm:$0xff]   ;;  %v1336_v36 = vunpack.c.l.b16 %v1079_v28  ;;  %v6547_v28 = vor.u32 %v6546_v49, %v7019_v34  ;;  %v6341_v5 = vor.u32 %v6340_v62, %v6339_v58  ;;  %v6346_v13 = vld [vmem:[#allocation2 + $0x90] sm:$0xe]  ;;  %v8870_v3 = vld [vmem:[#allocation3 + $0xcc] sm:$0xf0] }
  0x81   : > { %9245 = vst [vmem:[#allocation10_spill] sm:$0xff] %v7169_v31  ;;  %v7171_v27 = vld [vmem:[#allocation2 + $0xb4] sm:$0xf0]  ;;  %v1535_v46 = vshrl.u32 %v7169_v31, 16  ;;  %v1537_v56 = vshll.u32 %v7169_v31, 16  ;;  %v1633_v63 = vrot.slane %v6332_v15, 1 }
  0x82   : > { %v1518_v30 = vshll.u32 %v7164_v18, 16  ;;  %v7174_v43 = vpack.c.b16 %v1336_v36, %v1336_v36  ;;  %v1648_v29 = vrot.slane %v6544_v19, 1  ;;  %v1636_v26 = vrot.slane %v6547_v28, 1  ;;  %v6343_v34 = vld [vmem:[#allocation2 + $0x78] sm:$0xe]  ;;  %v7270_v58 = vld [vmem:[#allocation2 + $0x6c] sm:$0xff]  }
  0x83   : > { %v1539_v8 = vrot.slane %v1537_v56, 1  ;;  %v1637_v36 = vrot.slane %v7031_v55, 1  ;;  %v6344_v47 = vor.u32 %v6343_v34, %v6342_v24  ;;  %v1643_v55 = vrot.slane %v7076_v7, 1  ;;  %v6558_v15 = vld [vmem:[#allocation2 + $0x84] sm:$0xe] }
  0x84   : > { %v1520_v42 = vrot.slane %v1518_v30, 1  ;;  %v1542_v52 = vshll.u32 %v7174_v43, 16  ;;  %v1649_v30 = vrot.slane %v7096_v54, 1  ;;  %v1642_v54 = vrot.slane %v6550_v45, 1  ;;  %v6345_v28 = vld [vmem:[#allocation2 + $0x90] sm:$0xf0] }
  0x85   : > { %1677 = vrot.lane.b32.xlu2 %v1632_v38, %s6693_s8  ;;  %v1540_v14 = vor.u32 %v1539_v8, %v1535_v46  ;;  %v6336_v38 = vld [vmem:[#allocation2 + $0x48] sm:$0xf0]  ;;  %v1638_v49 = vsel %vm1626_vm10, %v1636_v26, %v1637_v36  ;;  %v1657_v46 = vrot.slane %v6344_v47, 1  ;;  %v1651_v41 = vrot.slane %v6341_v5, 1  ;;  %v6561_v26 = vld [vmem:[#allocation2 + $0xb4] sm:$0xe] }
  0x86   : > { %v1521_v50 = vsel %vm1353_vm8, %v1516_v40, %v1520_v42  ;;  %v1544_v9 = vrot.slane %v1542_v52, 1  ;;  %v6337_v40 = vld [vmem:[#allocation2 + $0x48] sm:$0xe]  ;;  %v1635_v42 = vsel %vm1626_vm10, %v1633_v63, %v1634_v21  ;;  %v1650_v37 = vsel %vm1626_vm10, %v1648_v29, %v1649_v30  ;;  %v6552_v52 = vld [vmem:[#allocation2 + $0x9c] sm:$0xe] }
  0x87   : > { %1572 = vrot.lane.b32.xlu1 %v1521_v50, %s6692_s30  ;;  %v6338_v50 = vor.u32 %v6337_v40, %v6336_v38  ;;  %v1644_v0 = vsel %vm1626_vm10, %v1642_v54, %v1643_v55  ;;  %v1659_v8 = vsel %vm1626_vm10, %v1657_v46, %v1658_v51  ;;  %v6553_v7 = vor.u32 %v6552_v52, %v7157_v61  ;;  %v7221_v63 = vld [vmem:[#allocation2 + $0xc] sm:$0xf0]  ;;  %v6348_v24 = vld [vmem:[#allocation2 + $0xa8] sm:$0xf0]  ;;  %v6349_v34 = vld [vmem:[#allocation2 + $0xa8] sm:$0xe] }
  0x88   : > { %v1545_v20 = vsel %vm1353_vm8, %v1540_v14, %v1544_v9  ;;  %v6556_v14 = vor.u32 %v6555_v53, %v7115_v10  ;;  %v1667_v19 = vrot.slane %v7164_v18, 1  ;;  %v1655_v61 = vrot.slane %v7128_v59, 1  ;;  %v7241_v52 = vld [vmem:[#allocation2 + $0x30] sm:$0xff]   ;;  %v7245_v53 = vld [vmem:[#allocation2 + $0x54] sm:$0xf0]  ;;  %v7248_v54 = vld [vmem:[#allocation2 + $0x24] sm:$0xff]  }
  0x89   : > { %1576 = vrot.lane.b32.xlu0 %v1545_v20, %s6692_s30  ;;  %v1645_v56 = vrot.slane %v6338_v50, 1  ;;  %v1653_v10 = vsel %vm1626_vm10, %v1651_v41, %v1652_v6  ;;  %v6559_v20 = vor.u32 %v6558_v15, %v7132_v4  ;;  %v6347_v30 = vor.u32 %v6346_v13, %v6345_v28  ;;  %v7250_v46 = vld [vmem:[#allocation2 + $0x24] sm:$0xf0]  ;;  %v7260_v51 = vld [vmem:[#allocation2 + $0x3c] sm:$0xff]   ;;  %v7272_v62 = vld [vmem:[#allocation2 + $0x6c] sm:$0xf0] }
  0x8a   : > { %v1661_v18 = vrot.slane %v7142_v35, 1  ;;  %v1664_v36 = vrot.slane %v6985_v44, 1  ;;  %v6350_v40 = vor.u32 %v6349_v34, %v6348_v24  ;;  %v6562_v45 = vor.u32 %v6561_v26, %v7171_v27  ;;  %v7243_v27 = vld [vmem:[#allocation2 + $0x54] sm:$0xff]   ;;  %v7276_v5 = vld [vmem:[#allocation2 + $0x9c] sm:$0xff]  }
  0x8b   : > { %v1647_v9 = vsel %vm1626_vm10, %v1645_v56, %v1646_v57  ;;  %v1660_v59 = vrot.slane %v6559_v20, 1  ;;  %v1663_v4 = vrot.slane %v6347_v30, 1  ;;  %v1670_v44 = vrot.slane %v7008_v16, 1  ;;  %v7262_v56 = vld [vmem:[#allocation2 + $0x3c] sm:$0xf0] }
  0x8c   : > { %v1669_v35 = vrot.slane %v6350_v40, 1  ;;  %v1673_v47 = vrot.slane %v7174_v43, 1  ;;  %v7258_v43 = vld [vmem:[#allocation2 + $0x18] sm:$0xff]   ;;  %v1128_v57 = vld [vmem:[#allocation2 + $0x14] sm:$0x1]  ;;  %v1870_v15 = vshll.u32 %v7219_v32, 16 }
  0x8d   : > { %1683 = vrot.lane.b32.xlu2 %v1641_v17, %s6693_s8  ;;  %v1666_v17 = vrot.slane %v6553_v7, 1  ;;  %v1662_v38 = vsel %vm1626_vm10, %v1660_v59, %v1661_v18  ;;  %v1835_v7 = vunpack.c.l.b16 %v1128_v57  ;;  %v1193_v41 = vld [vmem:[#allocation2 + $0x20] sm:$0x1]  ;;  %v1880_v18 = vshrl.u32 %v7258_v43, 16  ;;  %v7319_v24 = vld [vmem:[#allocation2 + $0xb4] sm:$0xf0] }
  0x8e   : > { %v1671_v50 = vsel %vm1626_vm10, %v1669_v35, %v1670_v44  ;;  %v1872_v28 = vrot.slane %v1870_v15, 1  ;;  %v6352_v57 = vld [vmem:[#allocation2 + $0x18] sm:$0xe]  ;;  %vm2797_vm14 = vcmask 97280   ;;  %vm2830_vm15 = vcmask 130048  }
  0x8f   : > { %1675 = vrot.lane.b32.xlu1 %v1629_v22, %s6693_s8  ;;  %v1654_v22 = vrot.slane %v6556_v14, 1  ;;  %v1668_v21 = vsel %vm1626_vm10, %v1666_v17, %v1667_v19  ;;  %v7291_v6 = vpack.c.b16 %v1835_v7, %v1835_v7  ;;  %v7293_v17 = vld [vmem:[#allocation2 + $0x60] sm:$0xff]   ;;  %v6376_v31 = vld [vmem:[#allocation2 + $0x18] sm:$0xe]  ;;  %vm2863_vm1 = vcmask 162816  }
  0x90   : > { %v7295_v19 = vld [vmem:[#allocation2 + $0x84] sm:$0xff]   ;;  %v340_v7 = vld [vmem:[#allocation2 + $0xc0] sm:$0x1]  ;;  %vm2896_vm2 = vcmask 195584   ;;  %vm2929_vm3 = vcmask 228352   ;;  %vm2962_vm6 = vcmask 261120  }
  0x91   : > { %1679 = vrot.lane.b32.xlu0 %v1635_v42, %s6693_s8  ;;  %v1656_v29 = vsel %vm1626_vm10, %v1654_v22, %v1655_v61  ;;  %v1665_v42 = vsel %vm1626_vm10, %v1663_v4, %v1664_v36  ;;  %v7297_v22 = vld [vmem:[#allocation2 + $0x84] sm:$0xf0]  ;;  %v1868_v61 = vshrl.u32 %v7219_v32, 16  ;;  %v1875_v13 = vshll.u32 %v7291_v6, 16  ;;  %v7317_v36 = vld [vmem:[#allocation2 + $0xb4] sm:$0xff]  }
  0x93   : > { %v1877_v30 = vrot.slane %v1875_v13, 1  ;;  %v6318_v13 = vld [vmem:[#allocation2 + $0xa8] sm:$0xff]  }
  0x95   : > { %1689 = vrot.lane.b32.xlu2 %v1650_v37, %s6693_s8  ;;  %v1672_v37 = vrot.slane %v6562_v45, 1  ;;  %v1129_v45 = vld [vmem:[#allocation2 + $0x20] sm:$0x1] }
  0x97   : > { %1681 = vrot.lane.b32.xlu1 %v1638_v49, %s6693_s8  ;;  %v7238_v49 = vpop.permute.xlu2 %1554  ;;  %v1674_v55 = vsel %vm1626_vm10, %v1672_v37, %v1673_v47 }
  0x99   : > { %1685 = vrot.lane.b32.xlu0 %v1644_v0, %s6693_s8  ;;  %v7274_v0 = vld [vmem:[#allocation2 + $0x78] sm:$0xff]  }
  0x9a   : > { %v7303_v20 = vpop.permute.xlu0 %1546 }
  0x9d   : > { %1695 = vrot.lane.b32.xlu2 %v1659_v8, %s6693_s8  ;;  %v7278_v8 = vld [vmem:[#allocation2 + $0x9c] sm:$0xf0] }
  0x9f   : > { %1687 = vrot.lane.b32.xlu1 %v1647_v9, %s6693_s8  ;;  %v7256_v16 = vpop.permute.xlu2 %1562  ;;  %v7280_v9 = vld [vmem:[#allocation2 + $0x48] sm:$0xff]  }
  0xa1   : > { %1691 = vrot.lane.b32.xlu0 %v1653_v10, %s6693_s8  ;;  %v2347_v10 = vunpack.c.l.b16 %v1193_v41  ;;  %v341_v41 = vsel %vm6753_vm4, 0, %v340_v7  ;;  %v2140_v7 = vrot.slane %v7291_v6, 1 }
  0xa2   : > { %342 = vst [vmem:[#allocation2 + $0xc0] sm:$0x1] %v341_v41 }
  0xa3   : > { %v7312_v26 = vpack.c.b16 %v2347_v10, %v2347_v10 }
  0xa5   : > { %1701 = vrot.lane.b32.xlu2 %v1668_v21, %s6693_s8  ;;  %v2387_v40 = vshll.u32 %v7312_v26, 16 }
  0xa7   : > { %1693 = vrot.lane.b32.xlu1 %v1656_v29, %s6693_s8  ;;  %v1882_v29 = vshll.u32 %v7258_v43, 16  ;;  %v2389_v44 = vrot.slane %v2387_v40, 1  ;;  %v7342_v40 = vld [vmem:[#allocation2 + $0x24] sm:$0xff]  }
  0xa9   : > { %1697 = vrot.lane.b32.xlu0 %v1662_v38, %s6693_s8  ;;  %v1884_v4 = vrot.slane %v1882_v29, 1  ;;  %v6564_v38 = vld [vmem:[#allocation2 + $0xc] sm:$0xe] }
  0xaa   : > { %v6565_v15 = vor.u32 %v6564_v38, %v7221_v63  ;;  %v6672_v63 = vld [vmem:[#allocation2 + $0x24] sm:$0xf0] }
  0xab   : > { %v7326_v35 = vor.u32 %v1884_v4, %v1880_v18 }
  0xac   : > { %v7314_v59 = vpop.permute.xlu1 %1550 }
  0xad   : > { %1787 = vrot.lane.b32.xlu2 %v7219_v32, %s6694_s9  ;;  %v1873_v32 = vor.u32 %v1872_v28, %v1868_v61  ;;  %v547_v61 = vld [vmem:[%s6781_s29 + $0xf0] sm:$0xff]  ;;  %v548_v28 = vld [vmem:[%s6781_s29 + $0xf8] sm:$0xff]  ;;  %v2390_v29 = vsel %vm1353_vm8, %v7326_v35, %v2389_v44 }
  0xae   : > { %v7282_v14 = vpop.permute.xlu2 %1574  ;;  %v580_v18 = vpack.c.bf16 %v548_v28, %v548_v28  ;;  %v6375_v28 = vld [vmem:[#allocation2 + $0x18] sm:$0xf0] }
  0xaf   : > { %1699 = vrot.lane.b32.xlu1 %v1665_v42, %s6693_s8  ;;  %9246 = vst [vmem:[#allocation11_spill] sm:$0xff] %v7282_v14  ;;  %v1878_v34 = vsel %vm1353_vm8, %v1873_v32, %v1877_v30  ;;  %v6317_v42 = vld [vmem:[#allocation2 + $0x90] sm:$0xff]   ;;  %v7329_v37 = vpop.permute.xlu0 %1558  ;;  %v579_v30 = vpack.c.bf16 %v547_v61, %v547_v61 }
  0xb1   : > { %1703 = vrot.lane.b32.xlu0 %v1671_v50, %s6693_s8  ;;  %v1836_v50 = vunpack.c.l.b16 %v1129_v45  ;;  %v839_v38 = vshrl.u32 %v579_v30, 16  ;;  %v2139_v45 = vrot.slane %v6565_v15, 1  ;;  %v842_v41 = vshll.u32 %v579_v30, 16 }
  0xb2   : > { %v850_v15 = vshll.u32 %v580_v18, 16 }
  0xb3   : > { %v1852_v4 = vpack.c.b16 %v1836_v50, %v1836_v50  ;;  %v2141_v60 = vsel %vm1626_vm10, %v2139_v45, %v2140_v7 }
  0xb5   : > { %1793 = vrot.lane.b32.xlu2 %v7241_v52, %s6694_s9  ;;  %v2143_v44 = vrot.slane %v1852_v4, 1 }
  0xb7   : > { %1705 = vrot.lane.b32.xlu1 %v1674_v55, %s6693_s8  ;;  %v6351_v55 = vld [vmem:[#allocation2 + $0x18] sm:$0xf0] }
  0xb8   : > { %v6353_v32 = vor.u32 %v6352_v57, %v6351_v55  ;;  %v1194_v55 = vld [vmem:[#allocation2 + $0x2c] sm:$0x1]  ;;  %v841_v57 = vrot.slane %v839_v38, 7 }
  0xb9   : > { %1789 = vrot.lane.b32.xlu0 %v7258_v43, %s6694_s9 }
  0xba   : > { %v2142_v50 = vrot.slane %v6353_v32, 1  ;;  %v844_v6 = vor.u32 %v842_v41, %v841_v57  ;;  %v845_v2 = vrot.slane %v841_v57, 4  ;;  %v6377_v32 = vor.u32 %v6376_v31, %v6375_v28  ;;  %v6567_v28 = vld [vmem:[#allocation2 + $0x24] sm:$0xe] }
  0xbc   : > { %v7338_v10 = vpop.permute.xlu1 %1566  ;;  %v2144_v30 = vsel %vm1626_vm10, %v2142_v50, %v2143_v44  ;;  %v2651_v31 = vrot.slane %v6377_v32, 1  ;;  %v1195_v32 = vld [vmem:[#allocation2 + $0x38] sm:$0x1] }
  0xbd   : > { %1799 = vrot.lane.b32.xlu2 %v7243_v27, %s6694_s9  ;;  %9248 = vst [vmem:[#allocation13_spill] sm:$0xff] %v7338_v10  ;;  %v1011_v10 = vld [vmem:[#allocation2 + $0xc0] sm:$0xf] }
  0xbe   : > { %v1012_v25 = vsel %vm6846_vm9, %v844_v6, %v1011_v10  ;;  %v2652_v10 = vrot.slane %v7312_v26, 1  ;;  %v2392_v26 = vshrl.u32 %v7342_v40, 16 }
  0xbf   : > { %1791 = vrot.lane.b32.xlu1 %v7248_v54, %s6694_s9  ;;  %1013 = vst [vmem:[#allocation2 + $0xc0] sm:$0xf] %v1012_v25 }
  0xc0   : > { %v2653_v7 = vsel %vm1626_vm10, %v2651_v31, %v2652_v10 }
  0xc1   : > { %1795 = vrot.lane.b32.xlu0 %v7260_v51, %s6694_s9 }
  0xc3   : > { %v7307_v21 = vpop.permute.xlu2 %1556 }
  0xc5   : > { %1805 = vrot.lane.b32.xlu2 %v7274_v0, %s6694_s9 }
  0xc7   : > { %1797 = vrot.lane.b32.xlu1 %v7280_v9, %s6694_s9 }
  0xc9   : > { %1801 = vrot.lane.b32.xlu0 %v7293_v17, %s6694_s9 }
  0xcd   : > { %1811 = vrot.lane.b32.xlu2 %v7276_v5, %s6694_s9 }
  0xcf   : > { %1803 = vrot.lane.b32.xlu1 %v7270_v58, %s6694_s9 }
  0xd1   : > { %1807 = vrot.lane.b32.xlu0 %v7295_v19, %s6694_s9 }
  0xd5   : > { %2059 = vrot.lane.b32.xlu2 %v1878_v34, %s6695_s10  ;;  %v6673_v34 = vld [vmem:[#allocation2 + $0x24] sm:$0xe] }
  0xd6   : > { %v6674_v38 = vor.u32 %v6673_v34, %v6672_v63  ;;  %v2394_v34 = vshll.u32 %v7342_v40, 16  ;;  %v1130_v63 = vld [vmem:[#allocation2 + $0x2c] sm:$0x1] }
  0xd7   : > { %1809 = vrot.lane.b32.xlu1 %v6317_v42, %s6694_s9  ;;  %v7331_v47 = vpop.permute.xlu2 %1568  ;;  %v847_v42 = vshrl.u32 %v580_v18, 16  ;;  %v1837_v44 = vunpack.c.l.b16 %v1130_v63 }
  0xd8   : > { %9247 = vst [vmem:[#allocation12_spill] sm:$0xff] %v7331_v47  ;;  %v2396_v57 = vrot.slane %v2394_v34, 1 }
  0xd9   : > { %1813 = vrot.lane.b32.xlu0 %v6318_v13, %s6694_s9  ;;  %v7351_v14 = vrot.slane %v847_v42, 7  ;;  %v2348_v13 = vunpack.c.l.b16 %v1194_v55  ;;  %v1887_v42 = vshll.u32 %v1852_v4, 16  ;;  %v7362_v55 = vpop.permute.xlu1 %1552  ;;  %v2654_v4 = vrot.slane %v6674_v38, 1 }
  0xda   : > { %v1853_v6 = vpack.c.b16 %v1837_v44, %v1837_v44 }
  0xdb   : > { %v852_v47 = vor.u32 %v850_v15, %v7351_v14  ;;  %v2364_v45 = vpack.c.b16 %v2348_v13, %v2348_v13  ;;  %v1889_v25 = vrot.slane %v1887_v42, 1  ;;  %v1894_v15 = vshll.u32 %v7248_v54, 16 }
  0xdc   : > { %v2349_v42 = vunpack.c.l.b16 %v1195_v32  ;;  %v1899_v31 = vshll.u32 %v1853_v6, 16  ;;  %v2146_v44 = vrot.slane %v1853_v6, 1 }
  0xdd   : > { %2571 = vrot.lane.b32.xlu2 %v2390_v29, %s6696_s11  ;;  %v7354_v29 = vpop.permute.xlu0 %1570  ;;  %v853_v18 = vsel %vm6817_vm7, %v845_v2, %v852_v47  ;;  %v2655_v2 = vrot.slane %v2364_v45, 1  ;;  %v2399_v41 = vshll.u32 %v2364_v45, 16  ;;  %v1896_v45 = vrot.slane %v1894_v15, 1 }
  0xde   : > { %9249 = vst [vmem:[#allocation14_spill] sm:$0xff] %v7354_v29  ;;  %v2365_v34 = vpack.c.b16 %v2349_v42, %v2349_v42  ;;  %v1901_v63 = vrot.slane %v1899_v31, 1  ;;  %v7405_v42 = vld [vmem:[#allocation2 + $0x3c] sm:$0xff]  }
  0xdf   : > { %1815 = vrot.lane.b32.xlu1 %v7317_v36, %s6694_s9  ;;  %v7349_v61 = vpop.permute.xlu2 %1677  ;;  %1014 = vst.msk [vmem:[#allocation2 + $0xc4] sm:$0xf] %vm280_vm0, %v853_v18  ;;  %v1892_v18 = vshrl.u32 %v7248_v54, 16  ;;  %v2418_v39 = vshll.u32 %v7405_v42, 16 }
  0xe0   : > { %v2411_v15 = vshll.u32 %v2365_v34, 16 }
  0xe1   : > { %2187 = vrot.lane.b32.xlu0 %v2141_v60, %s6697_s12  ;;  %v2656_v60 = vsel %vm1626_vm10, %v2654_v4, %v2655_v2  ;;  %v7384_v13 = vpop.permute.xlu1 %1560  ;;  %v6568_v4 = vor.u32 %v6567_v28, %v7250_v46  ;;  %v1906_v2 = vshll.u32 %v7241_v52, 16  ;;  %v1897_v54 = vor.u32 %v1896_v45, %v1892_v18  ;;  %v1132_v46 = vld [vmem:[#allocation2 + $0x44] sm:$0x1]  ;;  %v6379_v28 = vld [vmem:[#allocation2 + $0x30] sm:$0xe] }
  0xe2   : > { %9250 = vst [vmem:[#allocation15_spill] sm:$0xff] %v7384_v13  ;;  %v7407_v18 = vld [vmem:[#allocation2 + $0x3c] sm:$0xf0]  ;;  %v1839_v6 = vunpack.c.l.b16 %v1132_v46 }
  0xe5   : > { %2189 = vrot.lane.b32.xlu2 %v2144_v30, %s6697_s12  ;;  %v7375_v50 = vpop.permute.xlu0 %1548  ;;  %v2397_v30 = vor.u32 %v2396_v57, %v2392_v26  ;;  %v1904_v26 = vshrl.u32 %v7241_v52, 16  ;;  %v1908_v57 = vrot.slane %v1906_v2, 1  ;;  %v1918_v2 = vshll.u32 %v7260_v51, 16 }
  0xe7   : > { %2299 = vrot.lane.b32.xlu1 %v7258_v43, %s6698_s13  ;;  %v7370_v47 = vpop.permute.xlu2 %1683  ;;  %v1890_v43 = vsel %vm1353_vm8, %v7326_v35, %v1889_v25  ;;  %v2401_v35 = vrot.slane %v2399_v41, 1  ;;  %v6378_v41 = vld [vmem:[#allocation2 + $0x30] sm:$0xf0] }
  0xe8   : > { %v6380_v31 = vor.u32 %v6379_v28, %v6378_v41  ;;  %v6355_v41 = vld [vmem:[#allocation2 + $0x30] sm:$0xe] }
  0xe9   : > { %2699 = vrot.lane.b32.xlu0 %v2653_v7, %s6699_s14  ;;  %v2402_v10 = vsel %vm1353_vm8, %v2397_v30, %v2401_v35  ;;  %v1131_v7 = vld [vmem:[#allocation2 + $0x38] sm:$0x1]  ;;  %v1902_v30 = vsel %vm1353_vm8, %v1897_v54, %v1901_v63  ;;  %v6319_v35 = vld [vmem:[#allocation2 + $0xc0] sm:$0xff]   ;;  %v7414_v63 = vpack.c.b16 %v1839_v6, %v1839_v6 }
  0xea   : > { %v1838_v32 = vunpack.c.l.b16 %v1131_v7  ;;  %v1196_v54 = vld [vmem:[#allocation2 + $0x44] sm:$0x1]  ;;  %v2657_v46 = vrot.slane %v6380_v31, 1 }
  0xeb   : > { %v1923_v6 = vshll.u32 %v7414_v63, 16 }
  0xed   : > { %2701 = vrot.lane.b32.xlu2 %v2656_v60, %s6699_s14  ;;  %v7394_v25 = vpop.permute.xlu0 %1564  ;;  %v2145_v60 = vrot.slane %v6568_v4, 1  ;;  %v1854_v4 = vpack.c.b16 %v1838_v32, %v1838_v32  ;;  %v2350_v32 = vunpack.c.l.b16 %v1196_v54 }
  0xee   : > { %9252 = vst [vmem:[#allocation17_spill] sm:$0xff] %v7394_v25 }
  0xef   : > { %2061 = vrot.lane.b32.xlu1 %v1890_v43, %s6695_s10  ;;  %v7386_v38 = vpop.permute.xlu2 %1689  ;;  %v2147_v45 = vsel %vm1626_vm10, %v2145_v60, %v2146_v44  ;;  %v1197_v44 = vld [vmem:[#allocation2 + $0x50] sm:$0x1] }
  0xf0   : > { %9251 = vst [vmem:[#allocation16_spill] sm:$0xff] %v7386_v38 }
  0xf1   : > { %2301 = vrot.lane.b32.xlu0 %v7342_v40, %s6698_s13 }
  0xf5   : > { %2303 = vrot.lane.b32.xlu2 %v7241_v52, %s6698_s13  ;;  %v2413_v52 = vrot.slane %v2411_v15, 1  ;;  %v1911_v15 = vshll.u32 %v1854_v4, 16 }
  0xf7   : > { %2573 = vrot.lane.b32.xlu1 %v2402_v10, %s6696_s11  ;;  %v7399_v43 = vpop.permute.xlu2 %1695  ;;  %v1909_v10 = vor.u32 %v1908_v57, %v1904_v26  ;;  %v6354_v57 = vld [vmem:[#allocation2 + $0x30] sm:$0xf0]  ;;  %v1913_v29 = vrot.slane %v1911_v15, 1 }
  0xf8   : > { %9253 = vst [vmem:[#allocation18_spill] sm:$0xff] %v7399_v43 }
  0xf9   : > { %v7402_v40 = vpop.permute.xlu1 %1572  ;;  %2063 = vrot.lane.b32.xlu0 %v1902_v30, %s6695_s10  ;;  %v2414_v28 = vsel %vm1353_vm8, %v1909_v10, %v2413_v52  ;;  %v1916_v30 = vshrl.u32 %v7260_v51, 16  ;;  %v2366_v51 = vpack.c.b16 %v2350_v32, %v2350_v32  ;;  %v1914_v12 = vsel %vm1353_vm8, %v1909_v10, %v1913_v29 }
  0xfa   : > { %9254 = vst [vmem:[#allocation19_spill] sm:$0xff] %v7402_v40  ;;  %v2658_v40 = vrot.slane %v2365_v34, 1  ;;  %v6356_v34 = vor.u32 %v6355_v41, %v6354_v57  ;;  %v2420_v32 = vrot.slane %v2418_v39, 1 }
  0xfb   : > { %v7416_v7 = vpop.permute.xlu0 %1576 }
  0xfc   : > { %9255 = vst [vmem:[#allocation20_spill] sm:$0xff] %v7416_v7  ;;  %v2659_v31 = vsel %vm1626_vm10, %v2657_v46, %v2658_v40  ;;  %v6570_v7 = vld [vmem:[#allocation2 + $0x3c] sm:$0xe]  ;;  %v2148_v46 = vrot.slane %v6356_v34, 1 }
  0xfd   : > { %1817 = vrot.lane.b32.xlu2 %v6319_v35, %s6694_s9  ;;  %v1920_v35 = vrot.slane %v1918_v2, 1  ;;  %v1925_v2 = vrot.slane %v1923_v6, 1  ;;  %v6573_v6 = vld [vmem:[#allocation2 + $0x3c] sm:$0xe]  ;;  %v6571_v34 = vor.u32 %v6570_v7, %v7407_v18  ;;  %v6358_v18 = vld [vmem:[#allocation2 + $0x48] sm:$0xe] }
  0xff   : > { %2191 = vrot.lane.b32.xlu1 %v2147_v45, %s6697_s12  ;;  %v7418_v60 = vpop.permute.xlu2 %1701  ;;  %v2351_v45 = vunpack.c.l.b16 %v1197_v44  ;;  %v1921_v52 = vor.u32 %v1920_v35, %v1916_v30  ;;  %v2149_v44 = vrot.slane %v1854_v4, 1  ;;  %v2423_v30 = vshll.u32 %v2366_v51, 16 }
 0x100   : > { %9256 = vst [vmem:[#allocation21_spill] sm:$0xff] %v7418_v60  ;;  %v1930_v60 = vshll.u32 %v7280_v9, 16 }
 0x101   : > { %v7420_v26 = vpop.permute.xlu1 %1675  ;;  %2575 = vrot.lane.b32.xlu0 %v2414_v28, %s6696_s11  ;;  %v7432_v54 = vpack.c.b16 %v2351_v45, %v2351_v45  ;;  %v1928_v28 = vshrl.u32 %v7280_v9, 16  ;;  %v1926_v35 = vsel %vm1353_vm8, %v1921_v52, %v1925_v2  ;;  %v2150_v4 = vsel %vm1626_vm10, %v2148_v46, %v2149_v44  ;;  %v6357_v46 = vld [vmem:[#allocation2 + $0x48] sm:$0xf0] }
 0x102   : > { %v1932_v15 = vrot.slane %v1930_v60, 1  ;;  %v1133_v60 = vld [vmem:[#allocation2 + $0x50] sm:$0x1]  ;;  %v2425_v29 = vrot.slane %v2423_v30, 1  ;;  %v2660_v52 = vrot.slane %v6571_v34, 1  ;;  %v2661_v2 = vrot.slane %v2366_v51, 1 }
 0x103   : > { %v7434_v40 = vpop.permute.xlu0 %1679  ;;  %v2435_v45 = vshll.u32 %v7432_v54, 16  ;;  %v6574_v44 = vor.u32 %v6573_v6, %v7262_v56  ;;  %v7463_v51 = vld [vmem:[#allocation2 + $0x54] sm:$0xff]   ;;  %v6381_v56 = vld [vmem:[#allocation2 + $0x48] sm:$0xf0]  ;;  %v6382_v6 = vld [vmem:[#allocation2 + $0x48] sm:$0xe] }
 0x104   : > { %v7449_v43 = vor.u32 %v1932_v15, %v1928_v28  ;;  %v2662_v30 = vsel %vm1626_vm10, %v2660_v52, %v2661_v2  ;;  %v2664_v23 = vrot.slane %v7432_v54, 1  ;;  %v1201_v54 = vld [vmem:[#allocation2 + $0x80] sm:$0x1] }
 0x105   : > { %2305 = vrot.lane.b32.xlu2 %v7405_v42, %s6698_s13  ;;  %v2151_v34 = vrot.slane %v6574_v44, 1 }
 0x107   : > { %2703 = vrot.lane.b32.xlu1 %v2659_v31, %s6699_s14  ;;  %v7436_v57 = vpop.permute.xlu2 %1787  ;;  %v2416_v31 = vshrl.u32 %v7405_v42, 16  ;;  %v2437_v42 = vrot.slane %v2435_v45, 1  ;;  %v6675_v45 = vld [vmem:[#allocation2 + $0x54] sm:$0xf0] }
 0x109   : > { %v7438_v41 = vpop.permute.xlu1 %1681  ;;  %2065 = vrot.lane.b32.xlu0 %v1914_v12, %s6695_s10  ;;  %v2421_v39 = vor.u32 %v2420_v32, %v2416_v31  ;;  %v1840_v12 = vunpack.c.l.b16 %v1133_v60  ;;  %v2438_v15 = vsel %vm1353_vm8, %v7449_v43, %v2437_v42  ;;  %v6359_v31 = vor.u32 %v6358_v18, %v6357_v46  ;;  %v6676_v32 = vld [vmem:[#allocation2 + $0x54] sm:$0xe]  ;;  %v1134_v46 = vld [vmem:[#allocation2 + $0x5c] sm:$0x1] }
 0x10a   : > { %v2152_v60 = vrot.slane %v7414_v63, 1  ;;  %v6677_v44 = vor.u32 %v6676_v32, %v6675_v45  ;;  %v1136_v32 = vld [vmem:[#allocation2 + $0x74] sm:$0x1] }
 0x10b   : > { %v7452_v10 = vpop.permute.xlu0 %1685  ;;  %v2426_v28 = vsel %vm1353_vm8, %v2421_v39, %v2425_v29  ;;  %v2154_v39 = vrot.slane %v6359_v31, 1 }
 0x10c   : > { %v2153_v63 = vsel %vm1626_vm10, %v2151_v34, %v2152_v60 }
 0x10d   : > { %2067 = vrot.lane.b32.xlu2 %v1926_v35, %s6695_s10  ;;  %v1856_v35 = vpack.c.b16 %v1840_v12, %v1840_v12  ;;  %v6383_v12 = vor.u32 %v6382_v6, %v6381_v56  ;;  %v2442_v56 = vshll.u32 %v7463_v51, 16 }
 0x10f   : > { %2193 = vrot.lane.b32.xlu1 %v2150_v4, %s6697_s12  ;;  %v7454_v38 = vpop.permute.xlu2 %1793  ;;  %v1198_v4 = vld [vmem:[#allocation2 + $0x5c] sm:$0x1]  ;;  %v2155_v29 = vrot.slane %v1856_v35, 1  ;;  %v2663_v31 = vrot.slane %v6383_v12, 1 }
 0x110   : > { %v2352_v2 = vunpack.c.l.b16 %v1198_v4  ;;  %v2666_v4 = vrot.slane %v6677_v44, 1  ;;  %v2355_v44 = vunpack.c.l.b16 %v1201_v54  ;;  %v1976_v54 = vshrl.u32 %v7274_v0, 16 }
 0x111   : > { %v7456_v7 = vpop.permute.xlu1 %1687  ;;  %2577 = vrot.lane.b32.xlu0 %v2426_v28, %s6696_s11  ;;  %v2156_v28 = vsel %vm1626_vm10, %v2154_v39, %v2155_v29  ;;  %v2665_v39 = vsel %vm1626_vm10, %v2663_v31, %v2664_v23  ;;  %v1978_v23 = vshll.u32 %v7274_v0, 16 }
 0x112   : > { %9257 = vst [vmem:[#allocation22_spill] sm:$0xff] %v7456_v7  ;;  %v2368_v13 = vpack.c.b16 %v2352_v2, %v2352_v2  ;;  %v1843_v2 = vunpack.c.l.b16 %v1136_v32  ;;  %v7504_v31 = vpack.c.b16 %v2355_v44, %v2355_v44  ;;  %v7618_v7 = vld [vmem:[#allocation2 + $0x90] sm:$0xff]  }
 0x113   : > { %v7469_v42 = vpop.permute.xlu0 %1691 }
 0x114   : > { %v2667_v25 = vrot.slane %v2368_v13, 1 }
 0x115   : > { %2579 = vrot.lane.b32.xlu2 %v2438_v15, %s6696_s11  ;;  %v1841_v15 = vunpack.c.l.b16 %v1134_v46 }
 0x116   : > { %v2668_v29 = vsel %vm1626_vm10, %v2666_v4, %v2667_v25 }
 0x117   : > { %2705 = vrot.lane.b32.xlu1 %v2662_v30, %s6699_s14  ;;  %v7471_v52 = vpop.permute.xlu2 %1799  ;;  %v1935_v30 = vshll.u32 %v1856_v35, 16  ;;  %v7483_v45 = vpack.c.b16 %v1841_v15, %v1841_v15  ;;  %v2444_v15 = vrot.slane %v2442_v56, 1 }
 0x118   : > { %9258 = vst [vmem:[#allocation23_spill] sm:$0xff] %v7471_v52 }
 0x119   : > { %v7473_v18 = vpop.permute.xlu1 %1693  ;;  %2195 = vrot.lane.b32.xlu0 %v2153_v63, %s6697_s12  ;;  %v1937_v35 = vrot.slane %v1935_v30, 1  ;;  %v1947_v12 = vshll.u32 %v7483_v45, 16  ;;  %v2447_v30 = vshll.u32 %v2368_v13, 16 }
 0x11a   : > { %9259 = vst [vmem:[#allocation24_spill] sm:$0xff] %v7473_v18  ;;  %v1942_v18 = vshll.u32 %v7243_v27, 16 }
 0x11b   : > { %v7485_v34 = vpop.permute.xlu0 %1697  ;;  %v1938_v63 = vsel %vm1353_vm8, %v7449_v43, %v1937_v35  ;;  %v2449_v13 = vrot.slane %v2447_v30, 1  ;;  %v1199_v35 = vld [vmem:[#allocation2 + $0x68] sm:$0x1]  ;;  %v1954_v30 = vshll.u32 %v7293_v17, 16 }
 0x11c   : > { %9260 = vst [vmem:[#allocation25_spill] sm:$0xff] %v7485_v34  ;;  %v1944_v46 = vrot.slane %v1942_v18, 1  ;;  %v6576_v34 = vld [vmem:[#allocation2 + $0x6c] sm:$0xe]  ;;  %v1949_v18 = vrot.slane %v1947_v12, 1  ;;  %v2353_v12 = vunpack.c.l.b16 %v1199_v35  ;;  %v1952_v35 = vshrl.u32 %v7293_v17, 16 }
 0x11d   : > { %2197 = vrot.lane.b32.xlu2 %v2156_v28, %s6697_s12  ;;  %v2440_v28 = vshrl.u32 %v7463_v51, 16 }
 0x11f   : > { %2307 = vrot.lane.b32.xlu1 %v7280_v9, %s6698_s13  ;;  %v7487_v60 = vpop.permute.xlu2 %1805  ;;  %v1940_v9 = vshrl.u32 %v7243_v27, 16  ;;  %v1859_v27 = vpack.c.b16 %v1843_v2, %v1843_v2  ;;  %v2445_v4 = vor.u32 %v2444_v15, %v2440_v28  ;;  %v6577_v28 = vor.u32 %v6576_v34, %v7272_v62  ;;  %v6579_v15 = vld [vmem:[#allocation2 + $0x54] sm:$0xe] }
 0x120   : > { %9261 = vst [vmem:[#allocation26_spill] sm:$0xff] %v7487_v60  ;;  %v6582_v60 = vld [vmem:[#allocation2 + $0x84] sm:$0xe] }
 0x121   : > { %v7490_v6 = vpop.permute.xlu1 %1699  ;;  %2707 = vrot.lane.b32.xlu0 %v2665_v39, %s6699_s14  ;;  %v1945_v25 = vor.u32 %v1944_v46, %v1940_v9  ;;  %v1980_v39 = vrot.slane %v1978_v23, 1  ;;  %v1971_v2 = vshll.u32 %v1859_v27, 16  ;;  %v2483_v46 = vshll.u32 %v7504_v31, 16 }
 0x122   : > { %9262 = vst [vmem:[#allocation27_spill] sm:$0xff] %v7490_v6  ;;  %v1966_v6 = vshll.u32 %v7270_v58, 16  ;;  %v2450_v44 = vsel %vm1353_vm8, %v2445_v4, %v2449_v13  ;;  %v2163_v62 = vrot.slane %v6577_v28, 1  ;;  %v2164_v34 = vrot.slane %v1859_v27, 1 }
 0x123   : > { %v7506_v43 = vpop.permute.xlu0 %1703  ;;  %v1950_v9 = vsel %vm1353_vm8, %v1945_v25, %v1949_v18  ;;  %v2485_v23 = vrot.slane %v2483_v46, 1  ;;  %v7525_v25 = vpack.c.b16 %v2353_v12, %v2353_v12  ;;  %v1137_v12 = vld [vmem:[#allocation2 + $0x80] sm:$0x1] }
 0x124   : > { %9263 = vst [vmem:[#allocation28_spill] sm:$0xff] %v7506_v43  ;;  %v2165_v27 = vsel %vm1626_vm10, %v2163_v62, %v2164_v34  ;;  %v6364_v62 = vld [vmem:[#allocation2 + $0x78] sm:$0xe] }
 0x125   : > { %2709 = vrot.lane.b32.xlu2 %v2668_v29, %s6699_s14  ;;  %v1964_v29 = vshrl.u32 %v7270_v58, 16 }
 0x127   : > { %2069 = vrot.lane.b32.xlu1 %v1938_v63, %s6695_s10  ;;  %v7508_v32 = vpop.permute.xlu2 %1811  ;;  %v1968_v63 = vrot.slane %v1966_v6, 1  ;;  %v1973_v6 = vrot.slane %v1971_v2, 1  ;;  %v2459_v2 = vshll.u32 %v7525_v25, 16 }
 0x128   : > { %9264 = vst [vmem:[#allocation29_spill] sm:$0xff] %v7508_v32 }
 0x129   : > { %v7510_v56 = vpop.permute.xlu1 %1705  ;;  %2309 = vrot.lane.b32.xlu0 %v7463_v51, %s6698_s13  ;;  %v1969_v58 = vor.u32 %v1968_v63, %v1964_v29  ;;  %v1022_v51 = vld [vmem:[%s9212_s1 + $0x10] sm:$0x3] }
 0x12a   : > { %9265 = vst [vmem:[#allocation30_spill] sm:$0xff] %v7510_v56  ;;  %v7519_v56 = vor.u32 %v1980_v39, %v1976_v54  ;;  %v3004_v54 = vunpack.c.l.b16 %v1022_v51  ;;  %v1956_v39 = vrot.slane %v1954_v30, 1  ;;  %v2461_v30 = vrot.slane %v2459_v2, 1  ;;  %v6387_v51 = vld [vmem:[#allocation2 + $0x78] sm:$0xf0] }
 0x12b   : > { %v7527_v18 = vpop.permute.xlu0 %1789  ;;  %v1974_v29 = vsel %vm1353_vm8, %v1969_v58, %v1973_v6 }
 0x12c   : > { %v2486_v63 = vsel %vm1353_vm8, %v7519_v56, %v2485_v23  ;;  %v3007_v46 = vpack.c.b16 %v3004_v54, %v3004_v54  ;;  %v7546_v28 = vor.u32 %v1956_v39, %v1952_v35  ;;  %v6363_v23 = vld [vmem:[#allocation2 + $0x78] sm:$0xf0]  ;;  %v6388_v54 = vld [vmem:[#allocation2 + $0x78] sm:$0xe]  ;;  %v1844_v35 = vunpack.c.l.b16 %v1137_v12  ;;  %v6110_v39 = vld [vmem:[%s9212_s1 + $0x8] sm:$0xff] }
 0x12d   : > { %2071 = vrot.lane.b32.xlu2 %v1950_v9, %s6695_s10  ;;  %v6580_v9 = vor.u32 %v6579_v15, %v7245_v53  ;;  %v2158_v53 = vrot.slane %v7483_v45, 1  ;;  %v6389_v2 = vor.u32 %v6388_v54, %v6387_v51  ;;  %v6384_v12 = vld [vmem:[#allocation2 + $0x60] sm:$0xf0]  ;;  %v6361_v54 = vld [vmem:[#allocation2 + $0x60] sm:$0xe] }
 0x12e   : > { %v6360_v51 = vld [vmem:[#allocation2 + $0x60] sm:$0xf0] }
 0x12f   : > { %2581 = vrot.lane.b32.xlu1 %v2450_v44, %s6696_s11  ;;  %v7529_v4 = vpop.permute.xlu2 %2059  ;;  %v3045_v44 = vsel %vm9228_vm11, %v3007_v46, 0  ;;  %v2157_v6 = vrot.slane %v6580_v9, 1  ;;  %v6109_v9 = vld [vmem:[%s9212_s1] sm:$0xff]  ;;  %v1135_v46 = vld [vmem:[#allocation2 + $0x68] sm:$0x1]  ;;  %v6362_v32 = vor.u32 %v6361_v54, %v6360_v51  ;;  %v7589_v51 = vld [vmem:[#allocation2 + $0x6c] sm:$0xff]  }
 0x130   : > { %3052 = vmatpush.bf16.msra.mxu0 %v3045_v44  ;;  %6493 = vmatpush.bf16.msra.mxu2 %v3045_v44  ;;  %v6385_v44 = vld [vmem:[#allocation2 + $0x60] sm:$0xe]  ;;  %vm3010_vm11 = vcmask 293888  }
 0x131   : > { %v7531_v13 = vpop.permute.xlu1 %1791  ;;  %2075 = vrot.lane.b32.xlu0 %v1974_v29, %s6695_s10  ;;  %v2462_v29 = vsel %vm1353_vm8, %v7546_v28, %v2461_v30  ;;  %v2159_v45 = vsel %vm1626_vm10, %v2157_v6, %v2158_v53  ;;  %v2675_v53 = vrot.slane %v6389_v2, 1  ;;  %v6386_v43 = vor.u32 %v6385_v44, %v6384_v12 }
 0x132   : > { %v2160_v12 = vrot.slane %v6362_v32, 1 }
 0x133   : > { %v7549_v58 = vpop.permute.xlu0 %1795  ;;  %v2669_v52 = vrot.slane %v6386_v43, 1 }
 0x134   : > { %3053 = vmatpush.bf16.msra.mxu0 %v6110_v39  ;;  %6494 = vmatpush.bf16.msra.mxu2 %v6110_v39 }
 0x135   : > { %2587 = vrot.lane.b32.xlu2 %v2486_v63, %s6696_s11  ;;  %v6365_v63 = vor.u32 %v6364_v62, %v6363_v23  ;;  %v2676_v62 = vrot.slane %v7504_v31, 1 }
 0x137   : > { %2203 = vrot.lane.b32.xlu1 %v2165_v27, %s6697_s12  ;;  %v7552_v15 = vpop.permute.xlu2 %2571  ;;  %v1860_v27 = vpack.c.b16 %v1844_v35, %v1844_v35  ;;  %v2166_v30 = vrot.slane %v6365_v63, 1 }
 0x138   : > { %3054 = vmatpush.bf16.msra.mxu0 %v6109_v9  ;;  %6495 = vmatpush.bf16.msra.mxu2 %v6109_v9  ;;  %v2670_v9 = vrot.slane %v7525_v25, 1 }
 0x139   : > { %v7554_v34 = vpop.permute.xlu1 %1797  ;;  %2315 = vrot.lane.b32.xlu0 %v7274_v0, %s6698_s13  ;;  %v2167_v23 = vrot.slane %v1860_v27, 1  ;;  %v1842_v0 = vunpack.c.l.b16 %v1135_v46  ;;  %v1983_v2 = vshll.u32 %v1860_v27, 16  ;;  %v1202_v46 = vld [vmem:[#allocation2 + $0x8c] sm:$0x1] }
 0x13a   : > { %v2671_v54 = vsel %vm1626_vm10, %v2669_v52, %v2670_v9  ;;  %v1203_v9 = vld [vmem:[#allocation2 + $0x98] sm:$0x1] }
 0x13b   : > { %v7569_v6 = vpop.permute.xlu0 %1801  ;;  %v2168_v63 = vsel %vm1626_vm10, %v2166_v30, %v2167_v23  ;;  %v1858_v31 = vpack.c.b16 %v1842_v0, %v1842_v0  ;;  %v1138_v30 = vld [vmem:[#allocation2 + $0x8c] sm:$0x1] }
 0x13c   : > { %9266 = vst [vmem:[#allocation31_spill] sm:$0xff] %v7569_v6  ;;  %v2677_v6 = vsel %vm1626_vm10, %v2675_v53, %v2676_v62  ;;  %v1985_v53 = vrot.slane %v1983_v2, 1  ;;  %v2356_v62 = vunpack.c.l.b16 %v1202_v46  ;;  %v1845_v25 = vunpack.c.l.b16 %v1138_v30 }
 0x13d   : > { %2583 = vrot.lane.b32.xlu2 %v2462_v29, %s6696_s11  ;;  %v7576_v29 = vld [vmem:[#allocation2 + $0x84] sm:$0xff]   ;;  %v2161_v44 = vrot.slane %v1858_v31, 1  ;;  %v1959_v0 = vshll.u32 %v1858_v31, 16  ;;  %v1990_v46 = vshll.u32 %v7295_v19, 16  ;;  %v1200_v31 = vld [vmem:[#allocation2 + $0x74] sm:$0x1] }
 0x13e   : > { %v1986_v32 = vsel %vm1353_vm8, %v7519_v56, %v1985_v53  ;;  %v2490_v2 = vshll.u32 %v7576_v29, 16  ;;  %v7603_v30 = vpack.c.b16 %v1845_v25, %v1845_v25  ;;  %v1988_v25 = vshrl.u32 %v7295_v19, 16 }
 0x13f   : > { %2199 = vrot.lane.b32.xlu1 %v2159_v45, %s6697_s12  ;;  %v7574_v39 = vpop.permute.xlu2 %2189  ;;  %v6581_v45 = vld [vmem:[#allocation2 + $0x84] sm:$0xf0]  ;;  %v1961_v52 = vrot.slane %v1959_v0, 1 }
 0x140   : > { %v6583_v43 = vor.u32 %v6582_v60, %v6581_v45  ;;  %v2492_v53 = vrot.slane %v2490_v2, 1  ;;  %v6585_v2 = vld [vmem:[#allocation2 + $0x6c] sm:$0xe] }
 0x141   : > { %v7572_v35 = vpop.permute.xlu1 %1803  ;;  %2311 = vrot.lane.b32.xlu0 %v7293_v17, %s6698_s13  ;;  %v7591_v17 = vld [vmem:[#allocation2 + $0x6c] sm:$0xf0]  ;;  %v1962_v0 = vsel %vm1353_vm8, %v7546_v28, %v1961_v52  ;;  %v2466_v28 = vshll.u32 %v7589_v51, 16 }
 0x142   : > { %v2678_v60 = vrot.slane %v6583_v43, 1 }
 0x143   : > { %v7585_v23 = vpop.permute.xlu0 %1807 }
 0x144   : > { %9267 = vst [vmem:[#allocation32_spill] sm:$0xff] %v7585_v23  ;;  %v2357_v23 = vunpack.c.l.b16 %v1203_v9 }
 0x145   : > { %2205 = vrot.lane.b32.xlu2 %v2168_v63, %s6697_s12 }
 0x147   : > { %2715 = vrot.lane.b32.xlu1 %v2677_v6, %s6699_s14  ;;  %v2162_v6 = vsel %vm1626_vm10, %v2160_v12, %v2161_v44  ;;  %v7597_v63 = vpop.permute.xlu2 %2701  ;;  %v2488_v44 = vshrl.u32 %v7576_v29, 16 }
 0x149   : > { %v7587_v27 = vpop.permute.xlu1 %1809  ;;  %2711 = vrot.lane.b32.xlu0 %v2671_v54, %s6699_s14  ;;  %v2354_v54 = vunpack.c.l.b16 %v1200_v31  ;;  %v2502_v31 = vshll.u32 %v7618_v7, 16 }
 0x14a   : > { %9268 = vst [vmem:[#allocation33_spill] sm:$0xff] %v7587_v27  ;;  %v2372_v27 = vpack.c.b16 %v2356_v62, %v2356_v62 }
 0x14b   : > { %v7606_v56 = vpop.permute.xlu0 %1813  ;;  %v2370_v52 = vpack.c.b16 %v2354_v54, %v2354_v54 }
 0x14c   : > { %v2679_v45 = vrot.slane %v2372_v27, 1  ;;  %9269 = vst [vmem:[#allocation34_spill] sm:$0xff] %v7606_v56  ;;  %v2495_v62 = vshll.u32 %v2372_v27, 16  ;;  %v6520_v56 = vld [vmem:[#allocation2] sm:$0xff]   ;;  %v2493_v27 = vor.u32 %v2492_v53, %v2488_v44 }
 0x14d   : > { %2201 = vrot.lane.b32.xlu2 %v2162_v6, %s6697_s12  ;;  %v1992_v6 = vrot.slane %v1990_v46, 1 }
 0x14e   : > { %v2680_v43 = vsel %vm1626_vm10, %v2678_v60, %v2679_v45  ;;  %v2497_v19 = vrot.slane %v2495_v62, 1 }
 0x14f   : > { %2077 = vrot.lane.b32.xlu1 %v1986_v32, %s6695_s10  ;;  %v1995_v32 = vshll.u32 %v7603_v30, 16  ;;  %v7621_v46 = vpop.permute.xlu2 %2303  ;;  %v1993_v60 = vor.u32 %v1992_v6, %v1988_v25  ;;  %v2471_v25 = vshll.u32 %v2370_v52, 16 }
 0x150   : > { %v2498_v54 = vsel %vm1353_vm8, %v2493_v27, %v2497_v19  ;;  %v1139_v19 = vld [vmem:[#allocation2 + $0x98] sm:$0x1] }
 0x151   : > { %v7608_v12 = vpop.permute.xlu1 %1815  ;;  %2073 = vrot.lane.b32.xlu0 %v1962_v0, %s6695_s10  ;;  %v1997_v45 = vrot.slane %v1995_v32, 1  ;;  %v2500_v32 = vshrl.u32 %v7618_v7, 16  ;;  %v2504_v0 = vrot.slane %v2502_v31, 1 }
 0x152   : > { %9270 = vst [vmem:[#allocation35_spill] sm:$0xff] %v7608_v12  ;;  %v2733_v12 = vsel %vm2731_vm12, %v6520_v56, %v7303_v20  ;;  %v7630_v56 = vpack.c.b16 %v2357_v23, %v2357_v23 }
 0x153   : > { %v2766_v20 = vsel %vm2764_vm13, %v2733_v12, %v7420_v26  ;;  %v2188_v44 = vpop.permute.xlu0 %2187  ;;  %v2464_v26 = vshrl.u32 %v7589_v51, 16  ;;  %v2468_v12 = vrot.slane %v2466_v28, 1  ;;  %v1998_v23 = vsel %vm1353_vm8, %v1993_v60, %v1997_v45 }
 0x154   : > { %v2799_v9 = vsel %vm2797_vm14, %v2766_v20, %v7436_v57  ;;  %v6588_v57 = vld [vmem:[#allocation2 + $0x84] sm:$0xe]  ;;  %v2473_v60 = vrot.slane %v2471_v25, 1  ;;  %v2505_v45 = vor.u32 %v2504_v0, %v2500_v32  ;;  %v7666_v0 = vld [vmem:[#allocation2 + $0x9c] sm:$0xff]  }
 0x155   : > { %2717 = vrot.lane.b32.xlu2 %v2680_v43, %s6699_s14  ;;  %v2832_v53 = vsel %vm2830_vm15, %v2799_v9, %v7529_v4  ;;  %v2507_v4 = vshll.u32 %v7630_v56, 16  ;;  %v6586_v43 = vor.u32 %v6585_v2, %v7591_v17  ;;  %v2469_v28 = vor.u32 %v2468_v12, %v2464_v26 }
 0x156   : > { %v2735_v17 = vsel %vm2731_vm12, %v7044_v11, %v7375_v50  ;;  %v2673_v9 = vrot.slane %v2370_v52, 1 }
 0x157   : > { %2317 = vrot.lane.b32.xlu1 %v7576_v29, %s6698_s13  ;;  %v2865_v29 = vsel %vm2863_vm1, %v2832_v53, %v2188_v44  ;;  %v2509_v20 = vrot.slane %v2507_v4, 1  ;;  %v7653_v31 = vpop.permute.xlu2 %1817  ;;  %v6366_v44 = vld [vmem:[#allocation2 + $0x90] sm:$0xf0]  ;;  %v6367_v53 = vld [vmem:[#allocation2 + $0x90] sm:$0xe]  ;;  %v2768_v26 = vsel %vm2764_vm13, %v2735_v17, %v7349_v61  ;;  %v2474_v11 = vsel %vm1353_vm8, %v2469_v28, %v2473_v60 }
 0x158   : > { %v6368_v12 = vor.u32 %v6367_v53, %v6366_v44  ;;  %v2801_v52 = vsel %vm2797_vm14, %v2768_v26, %v7527_v18  ;;  %v1204_v4 = vld [vmem:[#allocation2 + $0xa4] sm:$0x1] }
 0x159   : > { %v2300_v62 = vpop.permute.xlu1 %2299  ;;  %2589 = vrot.lane.b32.xlu0 %v2498_v54, %s6696_s11  ;;  %v2510_v50 = vsel %vm1353_vm8, %v2505_v45, %v2509_v20  ;;  %v6390_v45 = vld [vmem:[#allocation2 + $0x90] sm:$0xf0]  ;;  %v6391_v20 = vld [vmem:[#allocation2 + $0x90] sm:$0xe] }
 0x15a   : > { %v2898_v6 = vsel %vm2896_vm2, %v2865_v29, %v2300_v62  ;;  %v1846_v29 = vunpack.c.l.b16 %v1139_v19  ;;  %v2172_v18 = vrot.slane %v6368_v12, 1  ;;  %v6392_v53 = vor.u32 %v6391_v20, %v6390_v45 }
 0x15b   : > { %v2931_v27 = vsel %vm2929_vm3, %v2898_v6, %v7552_v15  ;;  %v2700_v2 = vpop.permute.xlu0 %2699  ;;  %v2672_v15 = vrot.slane %v6586_v43, 1 }
 0x15c   : > { %v2964_v62 = vsel %vm2962_vm6, %v2931_v27, %v2700_v2  ;;  %v1862_v32 = vpack.c.b16 %v1846_v29, %v1846_v29  ;;  %v6521_v27 = vld [vmem:[#allocation2 + $0x90] sm:$0xff]   ;;  %v2358_v2 = vunpack.c.l.b16 %v1204_v4  ;;  %v2681_v12 = vrot.slane %v6392_v53, 1  ;;  %v396_v4 = vld [vmem:[#allocation2 + $0xc8] sm:$0x1] }
 0x15d   : > { %2079 = vrot.lane.b32.xlu2 %v1998_v23, %s6695_s10  ;;  %6065 = vmatmul.msk.bf16.vlgmr.msra.gmra.mxu0 %vm3010_vm11, %v2964_v62  ;;  %v2674_v25 = vsel %vm1626_vm10, %v2672_v15, %v2673_v9  ;;  %v6679_v23 = vld [vmem:[#allocation2 + $0x9c] sm:$0xe]  ;;  %v2002_v19 = vshll.u32 %v6521_v27, 16  ;;  %v2000_v15 = vshrl.u32 %v6521_v27, 16 }
 0x15e   : > { %v2173_v43 = vrot.slane %v1862_v32, 1  ;;  %v2374_v26 = vpack.c.b16 %v2358_v2, %v2358_v2  ;;  %v2014_v2 = vshll.u32 %v7276_v5, 16 }
 0x15f   : > { %2313 = vrot.lane.b32.xlu1 %v7589_v51, %s6698_s13  ;;  %v6589_v51 = vor.u32 %v6588_v57, %v7297_v22  ;;  %v6678_v22 = vld [vmem:[#allocation2 + $0x9c] sm:$0xf0]  ;;  %v2170_v57 = vrot.slane %v7603_v30, 1  ;;  %v7674_v9 = vpop.permute.xlu2 %2305  ;;  %v2004_v29 = vrot.slane %v2002_v19, 1 }
 0x160   : > { %v2174_v62 = vsel %vm1626_vm10, %v2172_v18, %v2173_v43  ;;  %v2519_v20 = vshll.u32 %v2374_v26, 16 }
 0x161   : > { %v2062_v54 = vpop.permute.xlu1 %2061  ;;  %2585 = vrot.lane.b32.xlu0 %v2474_v11, %s6696_s11  ;;  %v2169_v61 = vrot.slane %v6589_v51, 1  ;;  %v2682_v11 = vrot.slane %v7630_v56, 1 }
 0x162   : > { %v2834_v6 = vsel %vm2830_vm15, %v2801_v52, %v2062_v54  ;;  %v6680_v54 = vor.u32 %v6679_v23, %v6678_v22  ;;  %v1140_v23 = vld [vmem:[#allocation2 + $0xa4] sm:$0x1] }
 0x163   : > { %v2867_v28 = vsel %vm2863_vm1, %v2834_v6, %v7574_v39  ;;  %v2302_v60 = vpop.permute.xlu0 %2301  ;;  %v2171_v30 = vsel %vm1626_vm10, %v2169_v61, %v2170_v57  ;;  %v2007_v39 = vshll.u32 %v1862_v32, 16  ;;  %v2005_v6 = vor.u32 %v2004_v29, %v2000_v15  ;;  %v1141_v57 = vld [vmem:[#allocation2 + $0xb0] sm:$0x1]  ;;  %v6522_v15 = vld [vmem:[#allocation2 + $0x18] sm:$0xff]  }
 0x164   : > { %v2900_v44 = vsel %vm2896_vm2, %v2867_v28, %v2302_v60  ;;  %v2684_v52 = vrot.slane %v6680_v54, 1  ;;  %v2514_v61 = vshll.u32 %v7666_v0, 16  ;;  %v2683_v18 = vsel %vm1626_vm10, %v2681_v12, %v2682_v11 }
 0x165   : > { %2591 = vrot.lane.b32.xlu2 %v2510_v50, %s6696_s11  ;;  %v2009_v32 = vrot.slane %v2007_v39, 1  ;;  %v1847_v43 = vunpack.c.l.b16 %v1140_v23  ;;  %v1848_v27 = vunpack.c.l.b16 %v1141_v57  ;;  %v2512_v60 = vshrl.u32 %v7666_v0, 16 }
 0x166   : > { %v2516_v45 = vrot.slane %v2514_v61, 1  ;;  %v854_v54 = vrot.slane %v7351_v14, 4  ;;  %v2012_v14 = vshrl.u32 %v7276_v5, 16  ;;  %v2016_v61 = vrot.slane %v2014_v2, 1 }
 0x167   : > { %2713 = vrot.lane.b32.xlu1 %v2674_v25, %s6699_s14  ;;  %v2685_v25 = vrot.slane %v2374_v26, 1  ;;  %v7693_v19 = vpop.permute.xlu2 %2067  ;;  %v2010_v28 = vsel %vm1353_vm8, %v2005_v6, %v2009_v32  ;;  %v1863_v29 = vpack.c.b16 %v1847_v43, %v1847_v43  ;;  %v7706_v39 = vpack.c.b16 %v1848_v27, %v1848_v27 }
 0x168   : > { %v2517_v11 = vor.u32 %v2516_v45, %v2512_v60  ;;  %v2017_v27 = vor.u32 %v2016_v61, %v2012_v14  ;;  %v6370_v61 = vld [vmem:[#allocation2 + $0xa8] sm:$0xe] }
 0x169   : > { %v2574_v17 = vpop.permute.xlu1 %2573  ;;  %2207 = vrot.lane.b32.xlu0 %v2171_v30, %s6697_s12  ;;  %v2737_v30 = vsel %vm2731_vm12, %v6522_v15, %v7314_v59  ;;  %v2019_v57 = vshll.u32 %v1863_v29, 16 }
 0x16a   : > { %v2933_v51 = vsel %vm2929_vm3, %v2900_v44, %v2574_v17  ;;  %v6591_v17 = vld [vmem:[#allocation2 + $0x9c] sm:$0xe]  ;;  %v6523_v44 = vld [vmem:[#allocation2 + $0xa8] sm:$0xff]  }
 0x16b   : > { %v2966_v50 = vsel %vm2962_vm6, %v2933_v51, %v7597_v63  ;;  %v2064_v22 = vpop.permute.xlu0 %2063  ;;  %v397_v63 = vsel %vm6759_vm5, 0, %v396_v4  ;;  %v2026_v53 = vshll.u32 %v6523_v44, 16  ;;  %v1205_v51 = vld [vmem:[#allocation2 + $0xb0] sm:$0x1]  ;;  %v2024_v12 = vshrl.u32 %v6523_v44, 16 }
 0x16c   : > { %398 = vst [vmem:[#allocation2 + $0xc8] sm:$0x1] %v397_v63  ;;  %v2359_v6 = vunpack.c.l.b16 %v1205_v51  ;;  %v2031_v4 = vshll.u32 %v7706_v39, 16  ;;  %v6394_v44 = vld [vmem:[#allocation2 + $0xa8] sm:$0xe] }
 0x16d   : > { %2209 = vrot.lane.b32.xlu2 %v2174_v62, %s6697_s12  ;;  %6066 = vmatmul.msk.bf16.gmra.mxu0 %vm3010_vm11, %v2966_v50  ;;  %v2770_v62 = vsel %vm2764_vm13, %v2737_v30, %v7434_v40  ;;  %v2521_v50 = vrot.slane %v2519_v20, 1  ;;  %v2028_v23 = vrot.slane %v2026_v53, 1  ;;  %v6393_v30 = vld [vmem:[#allocation2 + $0xa8] sm:$0xf0] }
 0x16e   : > { %v2803_v59 = vsel %vm2797_vm14, %v2770_v62, %v7531_v13  ;;  %v2375_v43 = vpack.c.b16 %v2359_v6, %v2359_v6 }
 0x16f   : > { %2319 = vrot.lane.b32.xlu1 %v7618_v7, %s6698_s13  ;;  %v2686_v7 = vsel %vm1626_vm10, %v2684_v52, %v2685_v25  ;;  %v2836_v52 = vsel %vm2830_vm15, %v2803_v59, %v2064_v22  ;;  %v2522_v63 = vsel %vm1353_vm8, %v2517_v11, %v2521_v50  ;;  %v6325_v22 = vld [vmem:[#allocation2 + $0xa8] sm:$0xff]   ;;  %v7720_v5 = vpop.permute.xlu2 %2579  ;;  %v7733_v11 = vld [vmem:[#allocation2 + $0xb4] sm:$0xff]  }
 0x170   : > { %v2526_v60 = vshll.u32 %v6325_v22, 16  ;;  %v2531_v53 = vshll.u32 %v2375_v43, 16  ;;  %v2524_v51 = vshrl.u32 %v6325_v22, 16 }
 0x171   : > { %v2192_v56 = vpop.permute.xlu1 %2191  ;;  %2719 = vrot.lane.b32.xlu0 %v2683_v18, %s6699_s14  ;;  %v6592_v18 = vor.u32 %v6591_v17, %v7278_v8  ;;  %v2033_v8 = vrot.slane %v2031_v4, 1 }
 0x172   : > { %v2869_v40 = vsel %vm2863_vm1, %v2836_v52, %v2192_v56  ;;  %v2528_v59 = vrot.slane %v2526_v60, 1  ;;  %v399_v52 = vld [vmem:[#allocation2 + $0xd4] sm:$0x1] }
 0x173   : > { %v2576_v26 = vpop.permute.xlu0 %2575  ;;  %v1015_v32 = vld [vmem:[#allocation2 + $0xc8] sm:$0x1]  ;;  %v2902_v56 = vsel %vm2896_vm2, %v2869_v40, %v7621_v46  ;;  %v2175_v17 = vrot.slane %v6592_v18, 1  ;;  %v2176_v46 = vrot.slane %v1863_v29, 1  ;;  %v7735_v29 = vld [vmem:[#allocation2 + $0xb4] sm:$0xf0] }
 0x174   : > { %v1016_v13 = vsel %vm6753_vm4, %v854_v54, %v1015_v32  ;;  %v2935_v45 = vsel %vm2929_vm3, %v2902_v56, %v2576_v26  ;;  %v2533_v40 = vrot.slane %v2531_v53, 1  ;;  %v2529_v6 = vor.u32 %v2528_v59, %v2524_v51  ;;  %v6369_v32 = vld [vmem:[#allocation2 + $0xa8] sm:$0xf0]  ;;  %v1142_v18 = vld [vmem:[#allocation2 + $0xbc] sm:$0x1] }
 0x175   : > { %2721 = vrot.lane.b32.xlu2 %v2686_v7, %s6699_s14  ;;  %1017 = vst [vmem:[#allocation2 + $0xc8] sm:$0x1] %v1016_v13  ;;  %v2029_v7 = vor.u32 %v2028_v23, %v2024_v12  ;;  %v2177_v50 = vsel %vm1626_vm10, %v2175_v17, %v2176_v46  ;;  %v6395_v12 = vor.u32 %v6394_v44, %v6393_v30  ;;  %v1849_v60 = vunpack.c.l.b16 %v1142_v18 }
 0x176   : > { %v2739_v23 = vsel %vm2731_vm12, %v7017_v33, %v7362_v55 }
 0x177   : > { %2081 = vrot.lane.b32.xlu1 %v2010_v28, %s6695_s10  ;;  %v2021_v28 = vrot.slane %v2019_v57, 1  ;;  %v2034_v26 = vsel %vm1353_vm8, %v2029_v7, %v2033_v8  ;;  %v2772_v14 = vsel %vm2764_vm13, %v2739_v23, %v7438_v41  ;;  %v1206_v57 = vld [vmem:[#allocation2 + $0xbc] sm:$0x1]  ;;  %v7750_v13 = vpop.permute.xlu2 %2197  ;;  %v2687_v55 = vrot.slane %v6395_v12, 1 }
 0x178   : > { %v2805_v4 = vsel %vm2797_vm14, %v2772_v14, %v7454_v38  ;;  %v6371_v7 = vor.u32 %v6370_v61, %v6369_v32  ;;  %v2538_v38 = vshll.u32 %v7733_v11, 16  ;;  %v7775_v61 = vld [vmem:[#allocation2 + $0xc0] sm:$0xff]  }
 0x179   : > { %v2704_v25 = vpop.permute.xlu1 %2703  ;;  %2321 = vrot.lane.b32.xlu0 %v7666_v0, %s6698_s13  ;;  %v343_v0 = vld [vmem:[#allocation2 + $0xcc] sm:$0x1]  ;;  %v2022_v54 = vsel %vm1353_vm8, %v2017_v27, %v2021_v28  ;;  %v2360_v27 = vunpack.c.l.b16 %v1206_v57  ;;  %v2534_v28 = vsel %vm1353_vm8, %v2529_v6, %v2533_v40  ;;  %v6524_v6 = vld [vmem:[#allocation2 + $0x30] sm:$0xff]   ;;  %v2550_v18 = vshll.u32 %v7775_v61, 16 }
 0x17a   : > { %v2968_v2 = vsel %vm2962_vm6, %v2935_v45, %v2704_v25  ;;  %v344_v62 = vsel %vm6753_vm4, 0, %v343_v0  ;;  %v400_v25 = vsel %vm6759_vm5, 0, %v399_v52  ;;  %v6594_v45 = vld [vmem:[#allocation2 + $0xb4] sm:$0xe]  ;;  %v2536_v0 = vshrl.u32 %v7733_v11, 16 }
 0x17b   : > { %v2066_v20 = vpop.permute.xlu0 %2065  ;;  %345 = vst [vmem:[#allocation2 + $0xcc] sm:$0x1] %v344_v62  ;;  %v2376_v46 = vpack.c.b16 %v2360_v27, %v2360_v27  ;;  %v2540_v53 = vrot.slane %v2538_v38, 1  ;;  %v6595_v12 = vor.u32 %v6594_v45, %v7735_v29  ;;  %v2036_v52 = vshrl.u32 %v7317_v36, 16  ;;  %v6597_v57 = vld [vmem:[#allocation2 + $0xb4] sm:$0xe] }
 0x17c   : > { %401 = vst [vmem:[#allocation2 + $0xd4] sm:$0x1] %v400_v25  ;;  %v1207_v51 = vld [vmem:[#allocation2 + $0xc8] sm:$0x1]  ;;  %v2741_v32 = vsel %vm2731_vm12, %v6524_v6, %v7238_v49 }
 0x17d   : > { %2323 = vrot.lane.b32.xlu2 %v6325_v22, %s6698_s13  ;;  %6067 = vmatmul.msk.bf16.gmra.mxu0 %vm3010_vm11, %v2968_v2  ;;  %v2838_v22 = vsel %vm2830_vm15, %v2805_v4, %v2066_v20  ;;  %v2179_v20 = vrot.slane %v7706_v39, 1  ;;  %v2038_v2 = vshll.u32 %v7317_v36, 16  ;;  %v2543_v62 = vshll.u32 %v2376_v46, 16 }
 0x17e   : > { %v2361_v40 = vunpack.c.l.b16 %v1207_v51  ;;  %v2774_v4 = vsel %vm2764_vm13, %v2741_v32, %v7370_v47  ;;  %v2690_v36 = vrot.slane %v6595_v12, 1  ;;  %v2691_v29 = vrot.slane %v2376_v46, 1  ;;  %v6372_v12 = vld [vmem:[#allocation2 + $0xc0] sm:$0xf0] }
 0x17f   : > { %2593 = vrot.lane.b32.xlu1 %v2522_v63, %s6696_s11  ;;  %v2688_v63 = vrot.slane %v2375_v43, 1  ;;  %v2178_v43 = vrot.slane %v6371_v7, 1  ;;  %v7766_v59 = vpop.permute.xlu2 %2709  ;;  %v2040_v25 = vrot.slane %v2038_v2, 1  ;;  %v2807_v49 = vsel %vm2797_vm14, %v2774_v4, %v7549_v58  ;;  %v6525_v2 = vld [vmem:[#allocation2 + $0xc0] sm:$0xff]  }
 0x180   : > { %v2840_v47 = vsel %vm2830_vm15, %v2807_v49, %v7693_v19  ;;  %v7798_v19 = vld [vmem:[#allocation2 + $0xcc] sm:$0xf0]  ;;  %v2743_v32 = vsel %vm2731_vm12, %v7067_v48, %v7307_v21 }
 0x181   : > { %v2194_v15 = vpop.permute.xlu1 %2193  ;;  %2083 = vrot.lane.b32.xlu0 %v2022_v54, %s6695_s10  ;;  %v2689_v8 = vsel %vm1626_vm10, %v2687_v55, %v2688_v63  ;;  %v2180_v39 = vsel %vm1626_vm10, %v2178_v43, %v2179_v20 }
 0x182   : > { %v2871_v41 = vsel %vm2863_vm1, %v2838_v22, %v2194_v15  ;;  %v1865_v15 = vpack.c.b16 %v1849_v60, %v1849_v60  ;;  %v2377_v22 = vpack.c.b16 %v2361_v40, %v2361_v40  ;;  %v7796_v20 = vld [vmem:[#allocation2 + $0xcc] sm:$0xff]  }
 0x183   : > { %v2578_v33 = vpop.permute.xlu0 %2577  ;;  %v2904_v17 = vsel %vm2896_vm2, %v2871_v41, %v7674_v9  ;;  %v6598_v41 = vor.u32 %v6597_v57, %v7319_v24  ;;  %v2552_v24 = vrot.slane %v2550_v18, 1  ;;  %v1208_v51 = vld [vmem:[#allocation2 + $0xd4] sm:$0x1] }
 0x184   : > { %v2937_v30 = vsel %vm2929_vm3, %v2904_v17, %v2578_v33  ;;  %v2043_v23 = vshll.u32 %v1865_v15, 16  ;;  %v2041_v33 = vor.u32 %v2040_v25, %v2036_v52  ;;  %v2182_v27 = vrot.slane %v1865_v15, 1  ;;  %v6373_v52 = vld [vmem:[#allocation2 + $0xc0] sm:$0xe] }
 0x185   : > { %2085 = vrot.lane.b32.xlu2 %v2034_v26, %s6695_s10  ;;  %v2541_v26 = vor.u32 %v2540_v53, %v2536_v0  ;;  %v2548_v17 = vshrl.u32 %v7775_v61, 16  ;;  %v2555_v43 = vshll.u32 %v2377_v22, 16  ;;  %v2050_v15 = vshll.u32 %v6525_v2, 16  ;;  %v6396_v0 = vld [vmem:[#allocation2 + $0xc0] sm:$0xf0] }
 0x186   : > { %v2045_v55 = vrot.slane %v2043_v23, 1  ;;  %v6397_v53 = vld [vmem:[#allocation2 + $0xc0] sm:$0xe]  ;;  %v2048_v25 = vshrl.u32 %v6525_v2, 16  ;;  %v2694_v40 = vrot.slane %v2377_v22, 1  ;;  %v2362_v6 = vunpack.c.l.b16 %v1208_v51  ;;  %v9272_v51 = vld [vmem:[#allocation23_spill] sm:$0xff] }
 0x187   : > { %2211 = vrot.lane.b32.xlu1 %v2177_v50, %s6697_s12  ;;  %v2545_v50 = vrot.slane %v2543_v62, 1  ;;  %v7793_v45 = vpop.permute.xlu2 %2071  ;;  %v2052_v23 = vrot.slane %v2050_v15, 1  ;;  %v6374_v4 = vor.u32 %v6373_v52, %v6372_v12  ;;  %v2562_v22 = vshll.u32 %v7796_v20, 16 }
 0x188   : > { %v2046_v58 = vsel %vm1353_vm8, %v2041_v33, %v2045_v55  ;;  %v6600_v33 = vld [vmem:[#allocation2 + $0xcc] sm:$0xe]  ;;  %v2378_v18 = vpack.c.b16 %v2362_v6, %v2362_v6 }
 0x189   : > { %v2706_v56 = vpop.permute.xlu1 %2705  ;;  %2595 = vrot.lane.b32.xlu0 %v2534_v28, %s6696_s11  ;;  %v2546_v14 = vsel %vm1353_vm8, %v2541_v26, %v2545_v50  ;;  %v2181_v28 = vrot.slane %v6598_v41, 1  ;;  %v2053_v55 = vor.u32 %v2052_v23, %v2048_v25 }
 0x18a   : > { %v2970_v9 = vsel %vm2962_vm6, %v2937_v30, %v2706_v56  ;;  %v1143_v56 = vld [vmem:[#allocation2 + $0xc8] sm:$0x1]  ;;  %v2697_v15 = vrot.slane %v2378_v18, 1 }
 0x18b   : > { %v2196_v44 = vpop.permute.xlu0 %2195  ;;  %v1850_v38 = vunpack.c.l.b16 %v1143_v56  ;;  %v2183_v46 = vsel %vm1626_vm10, %v2181_v28, %v2182_v27  ;;  %v2184_v56 = vrot.slane %v6374_v4, 1  ;;  %v2567_v28 = vshll.u32 %v2378_v18, 16 }
 0x18d   : > { %6068 = vmatmul.msk.bf16.gmra.mxu0 %vm3010_vm11, %v2970_v9  ;;  %2597 = vrot.lane.b32.xlu2 %v2546_v14, %s6696_s11  ;;  %v2553_v9 = vor.u32 %v2552_v24, %v2548_v17  ;;  %v2569_v24 = vrot.slane %v2567_v28, 1  ;;  %v9279_v28 = vld [vmem:[#allocation16_spill] sm:$0xff] }
 0x18f   : > { %2723 = vrot.lane.b32.xlu1 %v2689_v8, %s6699_s14  ;;  %v2692_v8 = vsel %vm1626_vm10, %v2690_v36, %v2691_v29  ;;  %v2776_v29 = vsel %vm2764_vm13, %v2743_v32, %v7452_v10 }
 0x190   : > { %v2809_v49 = vsel %vm2797_vm14, %v2776_v29, %v7554_v34  ;;  %v9274_v29 = vld [vmem:[#allocation7_spill] sm:$0xff] }
 0x191   : > { %v2308_v54 = vpop.permute.xlu1 %2307  ;;  %2213 = vrot.lane.b32.xlu0 %v2180_v39, %s6697_s12  ;;  %v6398_v39 = vor.u32 %v6397_v53, %v6396_v0 }
 0x193   : > { %v2708_v63 = vpop.permute.xlu0 %2707 }
 0x195   : > { %2215 = vrot.lane.b32.xlu2 %v2183_v46, %s6697_s12 }
 0x197   : > { %2325 = vrot.lane.b32.xlu1 %v7733_v11, %s6698_s13  ;;  %v2873_v11 = vsel %vm2863_vm1, %v2840_v47, %v2196_v44  ;;  %v1866_v44 = vpack.c.b16 %v1850_v38, %v1850_v38 }
 0x198   : > { %v2906_v60 = vsel %vm2896_vm2, %v2873_v11, %v2308_v54  ;;  %v2557_v54 = vrot.slane %v2555_v43, 1  ;;  %v2560_v11 = vshrl.u32 %v7796_v20, 16 }
 0x199   : > { %v2070_v7 = vpop.permute.xlu1 %2069  ;;  %2725 = vrot.lane.b32.xlu0 %v2692_v8, %s6699_s14  ;;  %v2939_v30 = vsel %vm2929_vm3, %v2906_v60, %v7720_v5  ;;  %v2693_v5 = vrot.slane %v6398_v39, 1  ;;  %v2055_v14 = vshll.u32 %v1866_v44, 16  ;;  %v2185_v41 = vrot.slane %v1866_v44, 1 }
 0x19a   : > { %v2972_v26 = vsel %vm2962_vm6, %v2939_v30, %v2708_v63  ;;  %v2558_v57 = vsel %vm1353_vm8, %v2553_v9, %v2557_v54  ;;  %v2588_v63 = vpop.permute.xlu2 %2587  ;;  %v2842_v48 = vsel %vm2830_vm15, %v2809_v49, %v2070_v7  ;;  %v6601_v60 = vor.u32 %v6600_v33, %v7798_v19 }
 0x19b   : > { %v2310_v62 = vpop.permute.xlu0 %2309  ;;  %v2695_v36 = vsel %vm1626_vm10, %v2693_v5, %v2694_v40  ;;  %v2057_v21 = vrot.slane %v2055_v14, 1  ;;  %v2875_v27 = vsel %vm2863_vm1, %v2842_v48, %v7750_v13  ;;  %v2186_v7 = vsel %vm1626_vm10, %v2184_v56, %v2185_v41  ;;  %v6526_v13 = vld [vmem:[#allocation2 + $0x60] sm:$0xff]  }
 0x19c   : > { %v2908_v8 = vsel %vm2896_vm2, %v2875_v27, %v2310_v62  ;;  %v2749_v38 = vsel %vm2731_vm12, %v6526_v13, %v7256_v16  ;;  %v2696_v2 = vrot.slane %v6601_v60, 1  ;;  %v6527_v62 = vld [vmem:[#allocation2 + $0x48] sm:$0xff]   ;;  %v9276_v48 = vld [vmem:[#allocation26_spill] sm:$0xff] }
 0x19d   : > { %6069 = vmatmul.msk.bf16.gmra.mxu0 %vm3010_vm11, %v2972_v26  ;;  %2727 = vrot.lane.b32.xlu2 %v2695_v36, %s6699_s14  ;;  %v2058_v34 = vsel %vm1353_vm8, %v2053_v55, %v2057_v21  ;;  %v2782_v43 = vsel %vm2764_vm13, %v2749_v38, %v7469_v42  ;;  %v2745_v9 = vsel %vm2731_vm12, %v6527_v62, %v7329_v37  ;;  %v412_v37 = vld [vmem:[#allocation3 + $0xc] sm:$0x1]  ;;  %v9273_v36 = vld [vmem:[#allocation17_spill] sm:$0xff]  ;;  %v9275_v55 = vld [vmem:[#allocation24_spill] sm:$0xff] }
 0x19e   : > { %v2698_v42 = vsel %vm1626_vm10, %v2696_v2, %v2697_v15  ;;  %v413_v40 = vsel %vm6753_vm4, 0, %v412_v37  ;;  %v2751_v33 = vsel %vm2731_vm12, %v9274_v29, %v9273_v36  ;;  %v9281_v62 = vld [vmem:[#allocation13_spill] sm:$0xff] }
 0x19f   : > { %2087 = vrot.lane.b32.xlu1 %v2046_v58, %s6695_s10  ;;  %414 = vst [vmem:[#allocation3 + $0xc] sm:$0x1] %v413_v40  ;;  %v2784_v49 = vsel %vm2764_vm13, %v2751_v33, %v9275_v55 }
 0x1a0   : > { %v2817_v21 = vsel %vm2797_vm14, %v2784_v49, %v9276_v48  ;;  %v9284_v48 = vld [vmem:[#allocation12_spill] sm:$0xff] }
 0x1a1   : > { %v2582_v50 = vpop.permute.xlu1 %2581  ;;  %2327 = vrot.lane.b32.xlu0 %v7775_v61, %s6698_s13  ;;  %v2564_v61 = vrot.slane %v2562_v22, 1 }
 0x1a2   : > { %v2941_v58 = vsel %vm2929_vm3, %v2908_v8, %v2582_v50  ;;  %v2584_v19 = vpop.permute.xlu2 %2583  ;;  %v9280_v8 = vld [vmem:[#allocation31_spill] sm:$0xff] }
 0x1a3   : > { %v2076_v10 = vpop.permute.xlu0 %2075  ;;  %v2565_v17 = vor.u32 %v2564_v61, %v2560_v11  ;;  %v2974_v30 = vsel %vm2962_vm6, %v2941_v58, %v7766_v59  ;;  %v9271_v59 = vld [vmem:[#allocation22_spill] sm:$0xff] }
 0x1a4   : > { %v2778_v54 = vsel %vm2764_vm13, %v2745_v9, %v9271_v59  ;;  %v9278_v11 = vld [vmem:[#allocation6_spill] sm:$0xff] }
 0x1a5   : > { %2329 = vrot.lane.b32.xlu2 %v7796_v20, %s6698_s13  ;;  %v2815_v20 = vsel %vm2797_vm14, %v2782_v43, %v7572_v35  ;;  %v2570_v53 = vsel %vm1353_vm8, %v2565_v17, %v2569_v24  ;;  %v2811_v39 = vsel %vm2797_vm14, %v2778_v54, %v9272_v51  ;;  %v9282_v54 = vld [vmem:[#allocation18_spill] sm:$0xff] }
 0x1a6   : > { %v2848_v16 = vsel %vm2830_vm15, %v2815_v20, %v2076_v10  ;;  %v2844_v50 = vsel %vm2830_vm15, %v2811_v39, %v7793_v45  ;;  %v466_v10 = vld [vmem:[#allocation3 + $0x14] sm:$0x1] }
 0x1a7   : > { %2599 = vrot.lane.b32.xlu1 %v2558_v57, %s6696_s11  ;;  %v467_v41 = vsel %vm6759_vm5, 0, %v466_v10 }
 0x1a8   : > { %468 = vst [vmem:[#allocation3 + $0x14] sm:$0x1] %v467_v41  ;;  %v9286_v41 = vld [vmem:[#allocation25_spill] sm:$0xff] }
 0x1a9   : > { %v2204_v47 = vpop.permute.xlu1 %2203  ;;  %2089 = vrot.lane.b32.xlu0 %v2058_v34, %s6695_s10  ;;  %v9277_v34 = vld [vmem:[#allocation15_spill] sm:$0xff] }
 0x1aa   : > { %v2881_v0 = vsel %vm2863_vm1, %v2848_v16, %v2204_v47  ;;  %v2206_v25 = vpop.permute.xlu2 %2205  ;;  %v2747_v61 = vsel %vm2731_vm12, %v9278_v11, %v9277_v34  ;;  %v9287_v34 = vld [vmem:[#allocation33_spill] sm:$0xff] }
 0x1ab   : > { %v2316_v46 = vpop.permute.xlu0 %2315 }
 0x1ac   : > { %v2914_v35 = vsel %vm2896_vm2, %v2881_v0, %v2316_v46  ;;  %v7902_v0 = vld [vmem:[%s9213_s2] ss:$0 sm:$0xff] }
 0x1ad   : > { %6070 = vmatmul.msk.bf16.gmra.mxu0 %vm3010_vm11, %v2974_v30  ;;  %v2947_v52 = vsel %vm2929_vm3, %v2914_v35, %v2588_v63  ;;  %v7909_v35 = vld [vmem:[%s9214_s3] ss:$0 sm:$0xff] }
 0x1af   : > { %2217 = vrot.lane.b32.xlu1 %v2186_v7, %s6697_s12  ;;  %v2780_v7 = vsel %vm2764_vm13, %v2747_v61, %v9279_v28 }
 0x1b0   : > { %v2813_v58 = vsel %vm2797_vm14, %v2780_v7, %v9280_v8  ;;  %v472_v8 = vld [vmem:[#allocation3 + $0x2c] sm:$0x1] }
 0x1b1   : > { %v2200_v44 = vpop.permute.xlu1 %2199  ;;  %2601 = vrot.lane.b32.xlu0 %v2570_v53, %s6696_s11  ;;  %v469_v53 = vld [vmem:[#allocation3 + $0x20] sm:$0x1] }
 0x1b2   : > { %v2877_v23 = vsel %vm2863_vm1, %v2844_v50, %v2200_v44  ;;  %v2202_v4 = vpop.permute.xlu2 %2201  ;;  %v470_v59 = vsel %vm6759_vm5, 0, %v469_v53  ;;  %v3595_v53 = vld [vmem:[#allocation3 + $0x14] sm:$0x1] }
 0x1b3   : > { %v2312_v26 = vpop.permute.xlu0 %2311  ;;  %471 = vst [vmem:[#allocation3 + $0x20] sm:$0x1] %v470_v59 }
 0x1b4   : > { %v2910_v14 = vsel %vm2896_vm2, %v2877_v23, %v2312_v26  ;;  %v9283_v26 = vld [vmem:[#allocation32_spill] sm:$0xff] }
 0x1b5   : > { %v2943_v45 = vsel %vm2929_vm3, %v2910_v14, %v2584_v19  ;;  %v415_v19 = vld [vmem:[#allocation3 + $0x18] sm:$0x1] }
 0x1b6   : > { %v416_v2 = vsel %vm6753_vm4, 0, %v415_v19 }
 0x1b7   : > { %2729 = vrot.lane.b32.xlu1 %v2698_v42, %s6699_s14  ;;  %417 = vst [vmem:[#allocation3 + $0x18] sm:$0x1] %v416_v2  ;;  %v6528_v42 = vld [vmem:[#allocation2 + $0x78] sm:$0xff]  }
 0x1b8   : > { %v2753_v9 = vsel %vm2731_vm12, %v6528_v42, %v9281_v62 }
 0x1b9   : > { %v2716_v12 = vpop.permute.xlu1 %2715  ;;  %v2786_v51 = vsel %vm2764_vm13, %v2753_v9, %v9282_v54 }
 0x1ba   : > { %v2980_v5 = vsel %vm2962_vm6, %v2947_v52, %v2716_v12  ;;  %v2718_v47 = vpop.permute.xlu2 %2717  ;;  %v2819_v50 = vsel %vm2797_vm14, %v2786_v51, %v9283_v26  ;;  %v421_v51 = vld [vmem:[#allocation3 + $0x30] sm:$0x1] }
 0x1bb   : > { %6073 = vmatmul.msk.bf16.vlgmr.msra.gmra.mxu2 %vm3010_vm11, %v2980_v5  ;;  %v2712_v6 = vpop.permute.xlu0 %2711 }
 0x1bc   : > { %v2976_v32 = vsel %vm2962_vm6, %v2943_v45, %v2712_v6  ;;  %v418_v45 = vld [vmem:[#allocation3 + $0x24] sm:$0x1] }
 0x1bd   : > { %6071 = vmatmul.msk.bf16.gmra.mxu0 %vm3010_vm11, %v2976_v32 }
 0x1c1   : > { %v2078_v57 = vpop.permute.xlu1 %2077 }
 0x1c2   : > { %v2850_v22 = vsel %vm2830_vm15, %v2817_v21, %v2078_v57  ;;  %v2080_v15 = vpop.permute.xlu2 %2079  ;;  %v9285_v21 = vld [vmem:[#allocation8_spill] sm:$0xff] }
 0x1c3   : > { %v2074_v63 = vpop.permute.xlu0 %2073  ;;  %v2883_v56 = vsel %vm2863_vm1, %v2850_v22, %v2206_v25  ;;  %v2852_v37 = vsel %vm2830_vm15, %v2819_v50, %v2080_v15 }
 0x1c4   : > { %v2846_v17 = vsel %vm2830_vm15, %v2813_v58, %v2074_v63 }
 0x1c5   : > { %v2879_v43 = vsel %vm2863_vm1, %v2846_v17, %v2202_v4  ;;  %v419_v4 = vsel %vm6753_vm4, 0, %v418_v45  ;;  %v473_v17 = vsel %vm6759_vm5, 0, %v472_v8 }
 0x1c6   : > { %420 = vst [vmem:[#allocation3 + $0x24] sm:$0x1] %v419_v4  ;;  %v3598_v4 = vld [vmem:[#allocation3 + $0x18] sm:$0xf] }
 0x1c7   : > { %474 = vst [vmem:[#allocation3 + $0x2c] sm:$0x1] %v473_v17 }
 0x1c9   : > { %v2318_v18 = vpop.permute.xlu1 %2317 }
 0x1ca   : > { %v2916_v27 = vsel %vm2896_vm2, %v2883_v56, %v2318_v18  ;;  %v2592_v23 = vpop.permute.xlu2 %2591  ;;  %v2755_v18 = vsel %vm2731_vm12, %v9285_v21, %v9284_v48  ;;  %v9291_v48 = vld [vmem:[#allocation27_spill] sm:$0xff] }
 0x1cb   : > { %v2590_v60 = vpop.permute.xlu0 %2589 }
 0x1cc   : > { %v2949_v13 = vsel %vm2929_vm3, %v2916_v27, %v2590_v60  ;;  %v3591_v27 = vld [vmem:[#allocation3 + $0xc] sm:$0xf] }
 0x1cd   : > { %v2982_v24 = vsel %vm2962_vm6, %v2949_v13, %v2718_v47  ;;  %v2788_v47 = vsel %vm2764_vm13, %v2755_v18, %v9286_v41 }
 0x1ce   : > { %6074 = vmatmul.msk.bf16.gmra.mxu2 %vm3010_vm11, %v2982_v24  ;;  %v2821_v11 = vsel %vm2797_vm14, %v2788_v47, %v9287_v34  ;;  %v9292_v47 = vld [vmem:[#allocation29_spill] sm:$0xff] }
 0x1d1   : > { %v2314_v38 = vpop.permute.xlu1 %2313 }
 0x1d2   : > { %v2912_v46 = vsel %vm2896_vm2, %v2879_v43, %v2314_v38  ;;  %v2210_v61 = vpop.permute.xlu2 %2209 }
 0x1d3   : > { %v2586_v20 = vpop.permute.xlu0 %2585 }
 0x1d4   : > { %v2945_v30 = vsel %vm2929_vm3, %v2912_v46, %v2586_v20 }
 0x1d9   : > { %v2714_v44 = vpop.permute.xlu1 %2713 }
 0x1da   : > { %v2978_v16 = vsel %vm2962_vm6, %v2945_v30, %v2714_v44  ;;  %v3056_v39 = vpop.f32.mrf.mxu0 }
 0x1db   : > { %6072 = vmatmul.msk.bf16.gmra.mxu0 %vm3010_vm11, %v2978_v16  ;;  %v3139_v12 = vmul.f32 %v7902_v0, %v3056_v39  ;;  %v2208_v52 = vpop.permute.xlu0 %2207  ;;  %v2722_v39 = vpop.permute.xlu2 %2721 }
 0x1dc   : > { %v2885_v40 = vsel %vm2863_vm1, %v2852_v37, %v2208_v52  ;;  %v422_v37 = vsel %vm6753_vm4, 0, %v421_v51 }
 0x1dd   : > { %v3174_v5 = vadd.f32 %v7909_v35, %v3139_v12  ;;  %423 = vst [vmem:[#allocation3 + $0x30] sm:$0x1] %v422_v37 }
 0x1df   : > { %v3206_v6 = vmax.f32 %v3174_v5, 0.0 }
 0x1e1   : > { %v2320_v25 = vpop.permute.xlu1 %2319  ;;  %v3238_v32 = vpack.c.bf16 %v3206_v6, %v3206_v6 }
 0x1e2   : > { %v2918_v14 = vsel %vm2896_vm2, %v2885_v40, %v2320_v25  ;;  %v3058_v36 = vpop.f32.mrf.mxu0 }
 0x1e3   : > { %v2951_v57 = vsel %vm2929_vm3, %v2918_v14, %v2592_v23  ;;  %v3271_v29 = vshrl.u32 %v3238_v32, 16  ;;  %v3140_v33 = vmul.f32 %v7902_v0, %v3058_v36  ;;  %v2720_v55 = vpop.permute.xlu0 %2719  ;;  %v3274_v10 = vshll.u32 %v3238_v32, 16 }
 0x1e4   : > { %v2984_v49 = vsel %vm2962_vm6, %v2951_v57, %v2720_v55  ;;  %v9290_v55 = vld [vmem:[#allocation14_spill] sm:$0xff] }
 0x1e5   : > { %v3273_v22 = vrot.slane %v3271_v29, 7  ;;  %v3175_v56 = vadd.f32 %v7909_v35, %v3140_v33  ;;  %6075 = vmatmul.msk.bf16.gmra.mxu2 %vm3010_vm11, %v2984_v49  ;;  %v6529_v33 = vld [vmem:[#allocation2 + $0x90] sm:$0xff]  }
 0x1e6   : > { %v2757_v49 = vsel %vm2731_vm12, %v6529_v33, %v9290_v55 }
 0x1e7   : > { %v3276_v28 = vor.u32 %v3274_v10, %v3273_v22  ;;  %v3207_v7 = vmax.f32 %v3175_v56, 0.0  ;;  %v3277_v16 = vrot.slane %v3273_v22, 4  ;;  %v2790_v21 = vsel %vm2764_vm13, %v2757_v49, %v9291_v48  ;;  %v9295_v48 = vld [vmem:[#allocation21_spill] sm:$0xff] }
 0x1e9   : > { %v2082_v63 = vpop.permute.xlu1 %2081  ;;  %v3592_v13 = vsel %vm6846_vm9, %v3276_v28, %v3591_v27  ;;  %v3239_v38 = vpack.c.bf16 %v3207_v7, %v3207_v7  ;;  %v2823_v27 = vsel %vm2797_vm14, %v2790_v21, %v9292_v47 }
 0x1ea   : > { %v2854_v60 = vsel %vm2830_vm15, %v2821_v11, %v2082_v63  ;;  %3593 = vst [vmem:[#allocation3 + $0xc] sm:$0xf] %v3592_v13  ;;  %v3061_v24 = vpop.f32.mrf.mxu0  ;;  %v475_v63 = vld [vmem:[#allocation3 + $0x38] sm:$0x1] }
 0x1eb   : > { %v3279_v43 = vshrl.u32 %v3239_v38, 16  ;;  %v3141_v19 = vmul.f32 %v7902_v0, %v3061_v24  ;;  %v2887_v46 = vsel %vm2863_vm1, %v2854_v60, %v2210_v61  ;;  %v2322_v2 = vpop.permute.xlu0 %2321  ;;  %v3282_v30 = vshll.u32 %v3239_v38, 16  ;;  %v2324_v61 = vpop.permute.xlu2 %2323 }
 0x1ec   : > { %v2920_v42 = vsel %vm2896_vm2, %v2887_v46, %v2322_v2  ;;  %v476_v41 = vsel %vm6759_vm5, 0, %v475_v63  ;;  %v3602_v2 = vld [vmem:[#allocation3 + $0x20] sm:$0x1] }
 0x1ed   : > { %v3281_v20 = vrot.slane %v3279_v43, 7  ;;  %v3176_v44 = vadd.f32 %v7909_v35, %v3141_v19  ;;  %477 = vst [vmem:[#allocation3 + $0x38] sm:$0x1] %v476_v41 }
 0x1ef   : > { %v3284_v62 = vor.u32 %v3282_v30, %v3281_v20  ;;  %v3286_v9 = vrot.slane %v3281_v20, 4  ;;  %v3208_v59 = vmax.f32 %v3176_v44, 0.0 }
 0x1f1   : > { %v2594_v15 = vpop.permute.xlu1 %2593  ;;  %v3285_v50 = vsel %vm6817_vm7, %v3277_v16, %v3284_v62  ;;  %v3596_v12 = vsel %vm6753_vm4, %v3286_v9, %v3595_v53  ;;  %v3240_v52 = vpack.c.bf16 %v3208_v59, %v3208_v59  ;;  %v424_v59 = vld [vmem:[#allocation3 + $0x3c] sm:$0x1] }
 0x1f2   : > { %v2953_v54 = vsel %vm2929_vm3, %v2920_v42, %v2594_v15  ;;  %3594 = vst.msk [vmem:[#allocation3 + $0x10] sm:$0xf] %vm280_vm0, %v3285_v50  ;;  %v3063_v25 = vpop.f32.mrf.mxu0  ;;  %v425_v37 = vsel %vm6753_vm4, 0, %v424_v59 }
 0x1f3   : > { %v2986_v23 = vsel %vm2962_vm6, %v2953_v54, %v2722_v39  ;;  %3597 = vst [vmem:[#allocation3 + $0x14] sm:$0x1] %v3596_v12  ;;  %v3288_v5 = vshrl.u32 %v3240_v52, 16  ;;  %v3142_v40 = vmul.f32 %v7902_v0, %v3063_v25  ;;  %v2084_v14 = vpop.permute.xlu0 %2083  ;;  %v3291_v45 = vshll.u32 %v3240_v52, 16 }
 0x1f4   : > { %v2856_v7 = vsel %vm2830_vm15, %v2823_v27, %v2084_v14  ;;  %426 = vst [vmem:[#allocation3 + $0x3c] sm:$0x1] %v425_v37 }
 0x1f5   : > { %v3290_v6 = vrot.slane %v3288_v5, 7  ;;  %v3177_v32 = vadd.f32 %v7909_v35, %v3142_v40  ;;  %6076 = vmatmul.msk.bf16.gmra.mxu2 %vm3010_vm11, %v2986_v23 }
 0x1f7   : > { %v3293_v36 = vor.u32 %v3291_v45, %v3290_v6  ;;  %v3209_v29 = vmax.f32 %v3177_v32, 0.0  ;;  %v3294_v46 = vrot.slane %v3290_v6, 4  ;;  %v2086_v6 = vpop.permute.xlu2 %2085 }
 0x1f9   : > { %v2212_v57 = vpop.permute.xlu1 %2211  ;;  %v3599_v18 = vsel %vm6846_vm9, %v3293_v36, %v3598_v4  ;;  %v3241_v22 = vpack.c.bf16 %v3209_v29, %v3209_v29  ;;  %v7963_v10 = vld [vmem:[#allocation3 + $0xc] sm:$0xff]   ;;  %v3605_v4 = vld [vmem:[#allocation3 + $0x24] sm:$0xf] }
 0x1fa   : > { %v7965_v56 = vld [vmem:[#allocation3 + $0xc] sm:$0xf0]  ;;  %3600 = vst [vmem:[#allocation3 + $0x18] sm:$0xf] %v3599_v18  ;;  %v3066_v34 = vpop.f32.mrf.mxu0  ;;  %v3736_v11 = vld [vmem:[#allocation3 + $0x14] sm:$0x1]  ;;  %v2889_v13 = vsel %vm2863_vm1, %v2856_v7, %v2212_v57 }
 0x1fb   : > { %v3296_v28 = vshrl.u32 %v3241_v22, 16  ;;  %v3143_v60 = vmul.f32 %v7902_v0, %v3066_v34  ;;  %v3993_v8 = vunpack.c.l.b16 %v3736_v11  ;;  %v3299_v17 = vshll.u32 %v3241_v22, 16  ;;  %v2596_v43 = vpop.permute.xlu0 %2595  ;;  %v9293_v36 = vld [vmem:[#allocation19_spill] sm:$0xff]  ;;  %v9294_v29 = vld [vmem:[#allocation9_spill] sm:$0xff]  ;;  %v9296_v18 = vld [vmem:[#allocation34_spill] sm:$0xff] }
 0x1fc   : > { %v4039_v15 = vshll.u32 %v7963_v10, 16  ;;  %v2922_v42 = vsel %vm2896_vm2, %v2889_v13, %v2324_v61  ;;  %v4037_v62 = vshrl.u32 %v7963_v10, 16  ;;  %v2759_v33 = vsel %vm2731_vm12, %v9294_v29, %v9293_v36  ;;  %v478_v11 = vld [vmem:[#allocation3 + $0x44] sm:$0x1] }
 0x1fd   : > { %v3298_v38 = vrot.slane %v3296_v28, 7  ;;  %v3178_v24 = vadd.f32 %v7909_v35, %v3143_v60  ;;  %v7975_v19 = vpack.c.b16 %v3993_v8, %v3993_v8  ;;  %v2955_v23 = vsel %vm2929_vm3, %v2922_v42, %v2596_v43  ;;  %v3609_v42 = vld [vmem:[#allocation3 + $0x2c] sm:$0x1] }
 0x1fe   : > { %v4041_v9 = vrot.slane %v4039_v15, 1  ;;  %v2792_v21 = vsel %vm2764_vm13, %v2759_v33, %v9295_v48 }
 0x1ff   : > { %v3301_v20 = vor.u32 %v3299_v17, %v3298_v38  ;;  %v3303_v30 = vrot.slane %v3298_v38, 4  ;;  %v3210_v44 = vmax.f32 %v3178_v24, 0.0  ;;  %v4044_v53 = vshll.u32 %v7975_v19, 16 }
 0x200   : > { %v4042_v12 = vor.u32 %v4041_v9, %v4037_v62  ;;  %v2825_v22 = vsel %vm2797_vm14, %v2792_v21, %v9296_v18  ;;  %v3612_v21 = vld [vmem:[#allocation3 + $0x30] sm:$0xf] }
 0x201   : > { %v2724_v16 = vpop.permute.xlu1 %2723  ;;  %v3302_v54 = vsel %vm6817_vm7, %v3294_v46, %v3301_v20  ;;  %v3603_v51 = vsel %vm6753_vm4, %v3303_v30, %v3602_v2  ;;  %v3242_v39 = vpack.c.bf16 %v3210_v44, %v3210_v44  ;;  %v4046_v52 = vrot.slane %v4044_v53, 1  ;;  %v2598_v20 = vpop.permute.xlu2 %2597 }
 0x202   : > { %3601 = vst.msk [vmem:[#allocation3 + $0x1c] sm:$0xf] %vm280_vm0, %v3302_v54  ;;  %v3068_v50 = vpop.f32.mrf.mxu0  ;;  %v2988_v14 = vsel %vm2962_vm6, %v2955_v23, %v2724_v16  ;;  %v2858_v61 = vsel %vm2830_vm15, %v2825_v22, %v2086_v6  ;;  %v479_v46 = vsel %vm6759_vm5, 0, %v478_v11  ;;  %v6603_v16 = vld [vmem:[#allocation3 + $0xc] sm:$0xe]  ;;  %v9299_v11 = vld [vmem:[#allocation35_spill] sm:$0xff] }
 0x203   : > { %3604 = vst [vmem:[#allocation3 + $0x20] sm:$0x1] %v3603_v51  ;;  %v3305_v25 = vshrl.u32 %v3242_v39, 16  ;;  %v3144_v5 = vmul.f32 %v7902_v0, %v3068_v50  ;;  %v4047_v40 = vsel %vm1353_vm8, %v4042_v12, %v4046_v52  ;;  %v3308_v32 = vshll.u32 %v3242_v39, 16  ;;  %v2214_v63 = vpop.permute.xlu0 %2213 }
 0x204   : > { %4218 = vrot.lane.b32.xlu0 %v4047_v40, %s6692_s30  ;;  %v2891_v13 = vsel %vm2863_vm1, %v2858_v61, %v2214_v63  ;;  %480 = vst [vmem:[#allocation3 + $0x44] sm:$0x1] %v479_v46  ;;  %v9297_v63 = vld [vmem:[#allocation11_spill] sm:$0xff] }
 0x205   : > { %v3307_v45 = vrot.slane %v3305_v25, 7  ;;  %v3179_v57 = vadd.f32 %v7909_v35, %v3144_v5  ;;  %6077 = vmatmul.msk.bf16.gmra.mxu2 %vm3010_vm11, %v2988_v14  ;;  %v427_v5 = vld [vmem:[#allocation3 + $0x48] sm:$0x1] }
 0x206   : > { %v428_v14 = vsel %vm6753_vm4, 0, %v427_v5 }
 0x207   : > { %v3310_v55 = vor.u32 %v3308_v32, %v3307_v45  ;;  %v3211_v49 = vmax.f32 %v3179_v57, 0.0  ;;  %v3311_v53 = vrot.slane %v3307_v45, 4  ;;  %429 = vst [vmem:[#allocation3 + $0x48] sm:$0x1] %v428_v14 }
 0x209   : > { %v3606_v41 = vsel %vm6846_vm9, %v3310_v55, %v3605_v4  ;;  %v3243_v47 = vpack.c.bf16 %v3211_v49, %v3211_v49  ;;  %v2326_v27 = vpop.permute.xlu1 %2325  ;;  %v6399_v34 = vld [vmem:[#allocation3 + $0x18] sm:$0xff]   ;;  %v6604_v4 = vor.u32 %v6603_v16, %v7965_v56  ;;  %v6530_v49 = vld [vmem:[#allocation2 + $0xa8] sm:$0xff]   ;;  %v2216_v22 = vpop.permute.xlu2 %2215 }
 0x20a   : > { %3607 = vst [vmem:[#allocation3 + $0x24] sm:$0xf] %v3606_v41  ;;  %v3071_v28 = vpop.f32.mrf.mxu0  ;;  %v3737_v7 = vld [vmem:[#allocation3 + $0x20] sm:$0x1]  ;;  %v4051_v60 = vshll.u32 %v6399_v34, 16  ;;  %v2924_v24 = vsel %vm2896_vm2, %v2891_v13, %v2326_v27  ;;  %v4049_v62 = vshrl.u32 %v6399_v34, 16  ;;  %v2761_v48 = vsel %vm2731_vm12, %v6530_v49, %v9297_v63 }
 0x20b   : > { %v3313_v8 = vshrl.u32 %v3243_v47, 16  ;;  %v3145_v38 = vmul.f32 %v7902_v0, %v3071_v28  ;;  %v3994_v17 = vunpack.c.l.b16 %v3737_v7  ;;  %v3316_v15 = vshll.u32 %v3243_v47, 16  ;;  %v2726_v25 = vpop.permute.xlu0 %2725  ;;  %v9298_v27 = vld [vmem:[#allocation28_spill] sm:$0xff]  ;;  %v9301_v63 = vld [vmem:[#allocation10_spill] sm:$0xff] }
 0x20c   : > { %v4053_v43 = vrot.slane %v4051_v60, 1  ;;  %v2957_v39 = vsel %vm2929_vm3, %v2924_v24, %v2598_v20  ;;  %v4299_v56 = vrot.slane %v6604_v4, 1  ;;  %v4300_v47 = vrot.slane %v7975_v19, 1  ;;  %v481_v60 = vld [vmem:[#allocation3 + $0x50] sm:$0x1]  ;;  %v9300_v49 = vld [vmem:[#allocation20_spill] sm:$0xff] }
 0x20d   : > { %v3315_v2 = vrot.slane %v3313_v8, 7  ;;  %v3180_v30 = vadd.f32 %v7909_v35, %v3145_v38  ;;  %v8011_v44 = vpack.c.b16 %v3994_v17, %v3994_v17  ;;  %v2990_v36 = vsel %vm2962_vm6, %v2957_v39, %v2726_v25  ;;  %v3616_v16 = vld [vmem:[#allocation3 + $0x38] sm:$0x1] }
 0x20e   : > { %v4054_v50 = vor.u32 %v4053_v43, %v4049_v62  ;;  %v2794_v34 = vsel %vm2764_vm13, %v2761_v48, %v9298_v27  ;;  %v482_v38 = vsel %vm6759_vm5, 0, %v481_v60  ;;  %v4301_v24 = vsel %vm1626_vm10, %v4299_v56, %v4300_v47 }
 0x20f   : > { %v3318_v9 = vor.u32 %v3316_v15, %v3315_v2  ;;  %v3320_v59 = vrot.slane %v3315_v2, 4  ;;  %v3212_v54 = vmax.f32 %v3180_v30, 0.0  ;;  %v4056_v51 = vshll.u32 %v8011_v44, 16  ;;  %483 = vst [vmem:[#allocation3 + $0x50] sm:$0x1] %v482_v38 }
 0x210   : > { %v2827_v61 = vsel %vm2797_vm14, %v2794_v34, %v9299_v11  ;;  %v2763_v48 = vsel %vm2731_vm12, %v9301_v63, %v9300_v49 }
 0x211   : > { %v3319_v12 = vsel %vm6817_vm7, %v3311_v53, %v3318_v9  ;;  %v3610_v52 = vsel %vm6753_vm4, %v3320_v59, %v3609_v42  ;;  %v3244_v37 = vpack.c.bf16 %v3212_v54, %v3212_v54  ;;  %v4058_v23 = vrot.slane %v4056_v51, 1  ;;  %v2088_v45 = vpop.permute.xlu1 %2087 }
 0x212   : > { %3608 = vst.msk [vmem:[#allocation3 + $0x28] sm:$0xf] %vm280_vm0, %v3319_v12  ;;  %v3073_v40 = vpop.f32.mrf.mxu0  ;;  %v2860_v8 = vsel %vm2830_vm15, %v2827_v61, %v2088_v45 }
 0x213   : > { %3611 = vst [vmem:[#allocation3 + $0x2c] sm:$0x1] %v3610_v52  ;;  %v3322_v6 = vshrl.u32 %v3244_v37, 16  ;;  %v3146_v32 = vmul.f32 %v7902_v0, %v3073_v40  ;;  %v4059_v57 = vsel %vm1353_vm8, %v4054_v50, %v4058_v23  ;;  %v3325_v33 = vshll.u32 %v3244_v37, 16  ;;  %v2328_v43 = vpop.permute.xlu0 %2327  ;;  %v2728_v50 = vpop.permute.xlu2 %2727  ;;  %v430_v52 = vld [vmem:[#allocation3 + $0x54] sm:$0x1] }
 0x214   : > { %4220 = vrot.lane.b32.xlu1 %v4059_v57, %s6692_s30  ;;  %v2893_v46 = vsel %vm2863_vm1, %v2860_v8, %v2216_v22  ;;  %v431_v25 = vsel %vm6753_vm4, 0, %v430_v52  ;;  %v3619_v57 = vld [vmem:[#allocation3 + $0x3c] sm:$0xf] }
 0x215   : > { %v3324_v29 = vrot.slane %v3322_v6, 7  ;;  %v3181_v55 = vadd.f32 %v7909_v35, %v3146_v32  ;;  %6078 = vmatmul.msk.bf16.gmra.mxu2 %vm3010_vm11, %v2990_v36  ;;  %v2926_v59 = vsel %vm2896_vm2, %v2893_v46, %v2328_v43  ;;  %432 = vst [vmem:[#allocation3 + $0x54] sm:$0x1] %v431_v25  ;;  %v436_v32 = vld [vmem:[#allocation3 + $0x6c] sm:$0x1] }
 0x216   : > { %v437_v36 = vsel %vm6753_vm4, 0, %v436_v32  ;;  %v484_v22 = vld [vmem:[#allocation3 + $0x5c] sm:$0x1] }
 0x217   : > { %v3327_v18 = vor.u32 %v3325_v33, %v3324_v29  ;;  %v3213_v41 = vmax.f32 %v3181_v55, 0.0  ;;  %v3328_v53 = vrot.slane %v3324_v29, 4  ;;  %438 = vst [vmem:[#allocation3 + $0x6c] sm:$0x1] %v437_v36  ;;  %v485_v27 = vsel %vm6759_vm5, 0, %v484_v22 }
 0x218   : > { %486 = vst [vmem:[#allocation3 + $0x5c] sm:$0x1] %v485_v27  ;;  %v3630_v27 = vld [vmem:[#allocation3 + $0x50] sm:$0x1] }
 0x219   : > { %v3613_v28 = vsel %vm6846_vm9, %v3327_v18, %v3612_v21  ;;  %v3245_v7 = vpack.c.bf16 %v3213_v41, %v3213_v41  ;;  %v2600_v20 = vpop.permute.xlu1 %2599  ;;  %v9302_v41 = vld [vmem:[#allocation30_spill] sm:$0xff] }
 0x21a   : > { %3614 = vst [vmem:[#allocation3 + $0x30] sm:$0xf] %v3613_v28  ;;  %v3076_v13 = vpop.f32.mrf.mxu0  ;;  %v2959_v39 = vsel %vm2929_vm3, %v2926_v59, %v2600_v20  ;;  %v2796_v56 = vsel %vm2764_vm13, %v2763_v48, %v9302_v41  ;;  %v409_v59 = vld [vmem:[#allocation3] sm:$0x1] }
 0x21b   : > { %v3330_v17 = vshrl.u32 %v3245_v7, 16  ;;  %v3147_v19 = vmul.f32 %v7902_v0, %v3076_v13  ;;  %v3333_v15 = vshll.u32 %v3245_v7, 16  ;;  %v2992_v40 = vsel %vm2962_vm6, %v2959_v39, %v2728_v50  ;;  %v2090_v4 = vpop.permute.xlu0 %2089  ;;  %v2330_v60 = vpop.permute.xlu2 %2329 }
 0x21c   : > { %4346 = vrot.lane.b32.xlu1 %v4301_v24, %s6693_s8  ;;  %v2829_v34 = vsel %vm2797_vm14, %v2796_v56, %v7653_v31 }
 0x21d   : > { %v3332_v2 = vrot.slane %v3330_v17, 7  ;;  %v3182_v30 = vadd.f32 %v7909_v35, %v3147_v19  ;;  %v2862_v28 = vsel %vm2830_vm15, %v2829_v34, %v2090_v4  ;;  %v490_v17 = vld [vmem:[#allocation3 + $0x74] sm:$0x1]  ;;  %v3623_v19 = vld [vmem:[#allocation3 + $0x44] sm:$0x1] }
 0x21e   : > { %v491_v24 = vsel %vm6759_vm5, 0, %v490_v17 }
 0x21f   : > { %v3335_v42 = vor.u32 %v3333_v15, %v3332_v2  ;;  %v3337_v62 = vrot.slane %v3332_v2, 4  ;;  %v3214_v9 = vmax.f32 %v3182_v30, 0.0  ;;  %492 = vst [vmem:[#allocation3 + $0x74] sm:$0x1] %v491_v24  ;;  %v463_v30 = vld [vmem:[#allocation3 + $0x8] sm:$0x1] }
 0x221   : > { %v3336_v54 = vsel %vm6817_vm7, %v3328_v53, %v3335_v42  ;;  %v3617_v51 = vsel %vm6753_vm4, %v3337_v62, %v3616_v16  ;;  %v3246_v12 = vpack.c.bf16 %v3214_v9, %v3214_v9  ;;  %v2218_v33 = vpop.permute.xlu1 %2217 }
 0x222   : > { %3615 = vst.msk [vmem:[#allocation3 + $0x34] sm:$0xf] %vm280_vm0, %v3336_v54  ;;  %v3078_v37 = vpop.f32.mrf.mxu0  ;;  %v2895_v7 = vsel %vm2863_vm1, %v2862_v28, %v2218_v33  ;;  %v464_v54 = vsel %vm6759_vm5, 0, %v463_v30 }
 0x223   : > { %3618 = vst [vmem:[#allocation3 + $0x38] sm:$0x1] %v3617_v51  ;;  %v3339_v23 = vshrl.u32 %v3246_v12, 16  ;;  %v3148_v5 = vmul.f32 %v7902_v0, %v3078_v37  ;;  %v3342_v6 = vshll.u32 %v3246_v12, 16  ;;  %v2928_v15 = vsel %vm2896_vm2, %v2895_v7, %v2330_v60  ;;  %v2602_v20 = vpop.permute.xlu0 %2601  ;;  %v439_v37 = vld [vmem:[#allocation3 + $0x78] sm:$0x1] }
 0x224   : > { %v2961_v51 = vsel %vm2929_vm3, %v2928_v15, %v2602_v20  ;;  %v410_v12 = vsel %vm6753_vm4, 0, %v409_v59  ;;  %465 = vst [vmem:[#allocation3 + $0x8] sm:$0x1] %v464_v54 }
 0x225   : > { %v3341_v14 = vrot.slane %v3339_v23, 7  ;;  %v3183_v45 = vadd.f32 %v7909_v35, %v3148_v5  ;;  %6079 = vmatmul.msk.bf16.gmra.mxu2 %vm3010_vm11, %v2992_v40  ;;  %411 = vst [vmem:[#allocation3] sm:$0x1] %v410_v12  ;;  %v440_v40 = vsel %vm6753_vm4, 0, %v439_v37  ;;  %v3647_v12 = vld [vmem:[#allocation3 + $0x6c] sm:$0xf] }
 0x226   : > { %441 = vst [vmem:[#allocation3 + $0x78] sm:$0x1] %v440_v40  ;;  %v3633_v37 = vld [vmem:[#allocation3 + $0x54] sm:$0xf] }
 0x227   : > { %v3344_v29 = vor.u32 %v3342_v6, %v3341_v14  ;;  %v3215_v55 = vmax.f32 %v3183_v45, 0.0  ;;  %v3345_v43 = vrot.slane %v3341_v14, 4  ;;  %v3626_v14 = vld [vmem:[#allocation3 + $0x48] sm:$0xf] }
 0x229   : > { %v3620_v21 = vsel %vm6846_vm9, %v3344_v29, %v3619_v57  ;;  %v3247_v18 = vpack.c.bf16 %v3215_v55, %v3215_v55  ;;  %v2730_v42 = vpop.permute.xlu1 %2729 }
 0x22a   : > { %3621 = vst [vmem:[#allocation3 + $0x3c] sm:$0xf] %v3620_v21  ;;  %v3081_v47 = vpop.f32.mrf.mxu0  ;;  %v2994_v52 = vsel %vm2962_vm6, %v2961_v51, %v2730_v42 }
 0x22b   : > { %v3347_v11 = vshrl.u32 %v3247_v18, 16  ;;  %v3149_v61 = vmul.f32 %v7902_v0, %v3081_v47  ;;  %v3350_v13 = vshll.u32 %v3247_v18, 16  ;;  %v3735_v48 = vld [vmem:[#allocation3 + $0x8] sm:$0x1] }
 0x22c   : > { %v6210_v49 = vld [vmem:[#allocation3] sm:$0xff]   ;;  %v3992_v56 = vunpack.c.l.b16 %v3735_v48 }
 0x22d   : > { %v3349_v8 = vrot.slane %v3347_v11, 7  ;;  %v3184_v38 = vadd.f32 %v7909_v35, %v3149_v61  ;;  %v4027_v21 = vshll.u32 %v6210_v49, 16  ;;  %v4025_v11 = vshrl.u32 %v6210_v49, 16 }
 0x22f   : > { %v3352_v31 = vor.u32 %v3350_v13, %v3349_v8  ;;  %v3354_v46 = vrot.slane %v3349_v8, 4  ;;  %v3216_v2 = vmax.f32 %v3184_v38, 0.0  ;;  %v4029_v61 = vrot.slane %v4027_v21, 1  ;;  %v433_v8 = vld [vmem:[#allocation3 + $0x60] sm:$0x1] }
 0x230   : > { %v8101_v13 = vpack.c.b16 %v3992_v56, %v3992_v56  ;;  %v434_v17 = vsel %vm6753_vm4, 0, %v433_v8  ;;  %v3637_v21 = vld [vmem:[#allocation3 + $0x5c] sm:$0x1] }
 0x231   : > { %v3353_v16 = vsel %vm6817_vm7, %v3345_v43, %v3352_v31  ;;  %v3624_v53 = vsel %vm6753_vm4, %v3354_v46, %v3623_v19  ;;  %v3248_v62 = vpack.c.bf16 %v3216_v2, %v3216_v2  ;;  %v493_v19 = vld [vmem:[#allocation3 + $0x80] sm:$0x1]  ;;  %435 = vst [vmem:[#allocation3 + $0x60] sm:$0x1] %v434_v17 }
 0x232   : > { %3622 = vst.msk [vmem:[#allocation3 + $0x40] sm:$0xf] %vm280_vm0, %v3353_v16  ;;  %v3083_v9 = vpop.f32.mrf.mxu0  ;;  %v494_v2 = vsel %vm6759_vm5, 0, %v493_v19  ;;  %v4030_v16 = vor.u32 %v4029_v61, %v4025_v11  ;;  %v8138_v19 = vld [vmem:[#allocation3 + $0x24] sm:$0xff]  }
 0x233   : > { %3625 = vst [vmem:[#allocation3 + $0x44] sm:$0x1] %v3624_v53  ;;  %v3356_v39 = vshrl.u32 %v3248_v62, 16  ;;  %v3150_v50 = vmul.f32 %v7902_v0, %v3083_v9  ;;  %v3359_v23 = vshll.u32 %v3248_v62, 16  ;;  %v4032_v53 = vshll.u32 %v8101_v13, 16 }
 0x234   : > { %495 = vst [vmem:[#allocation3 + $0x80] sm:$0x1] %v494_v2  ;;  %v3738_v2 = vld [vmem:[#allocation3 + $0x2c] sm:$0x1] }
 0x235   : > { %v3358_v25 = vrot.slane %v3356_v39, 7  ;;  %v3185_v5 = vadd.f32 %v7909_v35, %v3150_v50  ;;  %6080 = vmatmul.msk.bf16.gmra.mxu2 %vm3010_vm11, %v2994_v52  ;;  %v4034_v51 = vrot.slane %v4032_v53, 1 }
 0x237   : > { %v3361_v6 = vor.u32 %v3359_v23, %v3358_v25  ;;  %v3217_v45 = vmax.f32 %v3185_v5, 0.0  ;;  %v3362_v47 = vrot.slane %v3358_v25, 4  ;;  %v4035_v5 = vsel %vm1353_vm8, %v4030_v16, %v4034_v51 }
 0x238   : > { %4216 = vrot.lane.b32.xlu2 %v4035_v5, %s6692_s30  ;;  %v3995_v16 = vunpack.c.l.b16 %v3738_v2 }
 0x239   : > { %v3627_v32 = vsel %vm6846_vm9, %v3361_v6, %v3626_v14  ;;  %v3249_v57 = vpack.c.bf16 %v3217_v45, %v3217_v45  ;;  %v487_v6 = vld [vmem:[#allocation3 + $0x68] sm:$0x1] }
 0x23a   : > { %3628 = vst [vmem:[#allocation3 + $0x48] sm:$0xf] %v3627_v32  ;;  %v3086_v36 = vpop.f32.mrf.mxu0 }
 0x23b   : > { %v3364_v33 = vshrl.u32 %v3249_v57, 16  ;;  %v3151_v55 = vmul.f32 %v7902_v0, %v3086_v36  ;;  %v3367_v22 = vshll.u32 %v3249_v57, 16  ;;  %v488_v57 = vsel %vm6759_vm5, 0, %v487_v6  ;;  %v3658_v2 = vld [vmem:[#allocation3 + $0x80] sm:$0x1] }
 0x23c   : > { %489 = vst [vmem:[#allocation3 + $0x68] sm:$0x1] %v488_v57  ;;  %v4063_v57 = vshll.u32 %v8138_v19, 16 }
 0x23d   : > { %v3366_v18 = vrot.slane %v3364_v33, 7  ;;  %v3186_v41 = vadd.f32 %v7909_v35, %v3151_v55 }
 0x23e   : > { %v3096_v4 = vpop.f32.mrf.mxu2 }
 0x23f   : > { %v3155_v29 = vmul.f32 %v7902_v0, %v3096_v4  ;;  %v3369_v28 = vor.u32 %v3367_v22, %v3366_v18  ;;  %v3371_v7 = vrot.slane %v3366_v18, 4  ;;  %v3218_v60 = vmax.f32 %v3186_v41, 0.0  ;;  %v442_v18 = vld [vmem:[#allocation3 + $0x84] sm:$0x1] }
 0x241   : > { %v3190_v63 = vadd.f32 %v7909_v35, %v3155_v29  ;;  %v3370_v24 = vsel %vm6817_vm7, %v3362_v47, %v3369_v28  ;;  %v3631_v43 = vsel %vm6753_vm4, %v3371_v7, %v3630_v27  ;;  %v3250_v31 = vpack.c.bf16 %v3218_v60, %v3218_v60  ;;  %v3651_v47 = vld [vmem:[#allocation3 + $0x74] sm:$0x1] }
 0x242   : > { %3629 = vst.msk [vmem:[#allocation3 + $0x4c] sm:$0xf] %vm280_vm0, %v3370_v24  ;;  %v3088_v20 = vpop.f32.mrf.mxu0  ;;  %v443_v27 = vsel %vm6753_vm4, 0, %v442_v18  ;;  %v8140_v24 = vld [vmem:[#allocation3 + $0x24] sm:$0xf0] }
 0x243   : > { %v3222_v34 = vmax.f32 %v3190_v63, 0.0  ;;  %3632 = vst [vmem:[#allocation3 + $0x50] sm:$0x1] %v3631_v43  ;;  %v3373_v42 = vshrl.u32 %v3250_v31, 16  ;;  %v3152_v62 = vmul.f32 %v7902_v0, %v3088_v20  ;;  %v3376_v50 = vshll.u32 %v3250_v31, 16 }
 0x244   : > { %444 = vst [vmem:[#allocation3 + $0x84] sm:$0x1] %v443_v27 }
 0x245   : > { %v3254_v38 = vpack.c.bf16 %v3222_v34, %v3222_v34  ;;  %v3375_v39 = vrot.slane %v3373_v42, 7  ;;  %v3187_v52 = vadd.f32 %v7909_v35, %v3152_v62 }
 0x246   : > { %v3098_v46 = vpop.f32.mrf.mxu2 }
 0x247   : > { %v3407_v15 = vshrl.u32 %v3254_v38, 16  ;;  %v3156_v30 = vmul.f32 %v7902_v0, %v3098_v46  ;;  %v3410_v59 = vshll.u32 %v3254_v38, 16  ;;  %v3378_v40 = vor.u32 %v3376_v50, %v3375_v39 }
 0x248   : > { %v3219_v14 = vmax.f32 %v3187_v52, 0.0  ;;  %v3379_v34 = vrot.slane %v3375_v39, 4 }
 0x249   : > { %v3409_v9 = vrot.slane %v3407_v15, 7  ;;  %v3191_v54 = vadd.f32 %v7909_v35, %v3156_v30  ;;  %v3634_v4 = vsel %vm6846_vm9, %v3378_v40, %v3633_v37  ;;  %v496_v30 = vld [vmem:[#allocation3 + $0x8c] sm:$0x1]  ;;  %v8150_v37 = vpack.c.b16 %v3995_v16, %v3995_v16 }
 0x24a   : > { %v3251_v36 = vpack.c.bf16 %v3219_v14, %v3219_v14  ;;  %3635 = vst [vmem:[#allocation3 + $0x54] sm:$0xf] %v3634_v4  ;;  %v3654_v14 = vld [vmem:[#allocation3 + $0x78] sm:$0xf] }
 0x24b   : > { %v3412_v25 = vor.u32 %v3410_v59, %v3409_v9  ;;  %v3223_v23 = vmax.f32 %v3191_v54, 0.0  ;;  %v3413_v22 = vrot.slane %v3409_v9, 4  ;;  %v497_v59 = vsel %vm6759_vm5, 0, %v496_v30 }
 0x24c   : > { %v3381_v33 = vshrl.u32 %v3251_v36, 16  ;;  %v3384_v48 = vshll.u32 %v3251_v36, 16  ;;  %498 = vst [vmem:[#allocation3 + $0x8c] sm:$0x1] %v497_v59  ;;  %v4068_v30 = vshll.u32 %v8150_v37, 16 }
 0x24d   : > { %v3648_v45 = vsel %vm6846_vm9, %v3412_v25, %v3647_v12  ;;  %v3255_v32 = vpack.c.bf16 %v3223_v23, %v3223_v23 }
 0x24e   : > { %3649 = vst [vmem:[#allocation3 + $0x6c] sm:$0xf] %v3648_v45  ;;  %v3383_v63 = vrot.slane %v3381_v33, 7 }
 0x24f   : > { %v3415_v29 = vshrl.u32 %v3255_v32, 16  ;;  %v3418_v49 = vshll.u32 %v3255_v32, 16 }
 0x250   : > { %v3386_v11 = vor.u32 %v3384_v48, %v3383_v63  ;;  %v3388_v61 = vrot.slane %v3383_v63, 4 }
 0x251   : > { %v3417_v55 = vrot.slane %v3415_v29, 7  ;;  %v3101_v38 = vpop.f32.mrf.mxu2 }
 0x252   : > { %v3387_v7 = vsel %vm6817_vm7, %v3379_v34, %v3386_v11  ;;  %v3638_v60 = vsel %vm6753_vm4, %v3388_v61, %v3637_v21  ;;  %v3157_v17 = vmul.f32 %v7902_v0, %v3101_v38 }
 0x253   : > { %v3420_v41 = vor.u32 %v3418_v49, %v3417_v55  ;;  %v3422_v56 = vrot.slane %v3417_v55, 4  ;;  %3636 = vst.msk [vmem:[#allocation3 + $0x58] sm:$0xf] %vm280_vm0, %v3387_v7  ;;  %v3640_v49 = vld [vmem:[#allocation3 + $0x60] sm:$0xf] }
 0x254   : > { %3639 = vst [vmem:[#allocation3 + $0x5c] sm:$0x1] %v3638_v60  ;;  %v3192_v31 = vadd.f32 %v7909_v35, %v3157_v17  ;;  %v4065_v60 = vrot.slane %v4063_v57, 1 }
 0x255   : > { %v3421_v28 = vsel %vm6817_vm7, %v3413_v22, %v3420_v41  ;;  %v3652_v8 = vsel %vm6753_vm4, %v3422_v56, %v3651_v47  ;;  %v6606_v4 = vld [vmem:[#allocation3 + $0x6c] sm:$0xe]  ;;  %v445_v22 = vld [vmem:[#allocation3 + $0x90] sm:$0x1] }
 0x256   : > { %3650 = vst.msk [vmem:[#allocation3 + $0x70] sm:$0xf] %vm280_vm0, %v3421_v28  ;;  %v3224_v15 = vmax.f32 %v3192_v31, 0.0  ;;  %v446_v61 = vsel %vm6753_vm4, 0, %v445_v22 }
 0x257   : > { %3653 = vst [vmem:[#allocation3 + $0x74] sm:$0x1] %v3652_v8 }
 0x258   : > { %v3091_v43 = vpop.f32.mrf.mxu0  ;;  %v3256_v53 = vpack.c.bf16 %v3224_v15, %v3224_v15  ;;  %447 = vst [vmem:[#allocation3 + $0x90] sm:$0x1] %v446_v61 }
 0x259   : > { %v3153_v46 = vmul.f32 %v7902_v0, %v3091_v43  ;;  %v3103_v54 = vpop.f32.mrf.mxu2 }
 0x25a   : > { %v3424_v51 = vshrl.u32 %v3256_v53, 16  ;;  %v3158_v50 = vmul.f32 %v7902_v0, %v3103_v54  ;;  %v3427_v23 = vshll.u32 %v3256_v53, 16 }
 0x25b   : > { %v3188_v20 = vadd.f32 %v7909_v35, %v3153_v46  ;;  %v4061_v46 = vshrl.u32 %v8138_v19, 16 }
 0x25c   : > { %v3426_v25 = vrot.slane %v3424_v51, 7  ;;  %v3193_v40 = vadd.f32 %v7909_v35, %v3158_v50 }
 0x25d   : > { %v3220_v42 = vmax.f32 %v3188_v20, 0.0  ;;  %v8145_v62 = vld [vmem:[#allocation3 + $0x6c] sm:$0xff]   ;;  %v4066_v59 = vor.u32 %v4065_v60, %v4061_v46  ;;  %v8202_v60 = vld [vmem:[%s9214_s3] ss:$0 sm:$0xff] }
 0x25e   : > { %v6605_v9 = vld [vmem:[#allocation3 + $0x6c] sm:$0xf0]  ;;  %v3744_v52 = vld [vmem:[#allocation3 + $0x74] sm:$0x1]  ;;  %v4135_v32 = vshll.u32 %v8145_v62, 16  ;;  %v3429_v36 = vor.u32 %v3427_v23, %v3426_v25  ;;  %v3225_v55 = vmax.f32 %v3193_v40, 0.0 }
 0x25f   : > { %v3252_v39 = vpack.c.bf16 %v3220_v42, %v3220_v42  ;;  %v4001_v45 = vunpack.c.l.b16 %v3744_v52  ;;  %v4133_v21 = vshrl.u32 %v8145_v62, 16  ;;  %v6607_v17 = vor.u32 %v6606_v4, %v6605_v9 }
 0x260   : > { %v3093_v12 = vpop.f32.mrf.mxu0  ;;  %v4137_v18 = vrot.slane %v4135_v32, 1  ;;  %v3655_v41 = vsel %vm6846_vm9, %v3429_v36, %v3654_v14  ;;  %v3257_v47 = vpack.c.bf16 %v3225_v55, %v3225_v55  ;;  %v3430_v16 = vrot.slane %v3426_v25, 4 }
 0x261   : > { %v3390_v5 = vshrl.u32 %v3252_v39, 16  ;;  %v3154_v6 = vmul.f32 %v7902_v0, %v3093_v12  ;;  %v3393_v33 = vshll.u32 %v3252_v39, 16  ;;  %v4017_v48 = vpack.c.b16 %v4001_v45, %v4001_v45  ;;  %3656 = vst [vmem:[#allocation3 + $0x78] sm:$0xf] %v3655_v41  ;;  %v499_v39 = vld [vmem:[#allocation3 + $0x98] sm:$0x1] }
 0x262   : > { %v4138_v34 = vor.u32 %v4137_v18, %v4133_v21  ;;  %v3432_v7 = vshrl.u32 %v3257_v47, 16  ;;  %v3435_v31 = vshll.u32 %v3257_v47, 16  ;;  %v4323_v9 = vrot.slane %v6607_v17, 1  ;;  %v448_v21 = vld [vmem:[#allocation3 + $0x9c] sm:$0x1] }
 0x263   : > { %v3392_v29 = vrot.slane %v3390_v5, 7  ;;  %v3189_v63 = vadd.f32 %v7909_v35, %v3154_v6  ;;  %v4140_v11 = vshll.u32 %v4017_v48, 16  ;;  %v4324_v50 = vrot.slane %v4017_v48, 1  ;;  %v3644_v5 = vld [vmem:[#allocation3 + $0x68] sm:$0x1] }
 0x264   : > { %v3434_v43 = vrot.slane %v3432_v7, 7  ;;  %v500_v25 = vsel %vm6759_vm5, 0, %v499_v39  ;;  %v3661_v17 = vld [vmem:[#allocation3 + $0x84] sm:$0xf] }
 0x265   : > { %v3395_v56 = vor.u32 %v3393_v33, %v3392_v29  ;;  %v3221_v27 = vmax.f32 %v3189_v63, 0.0  ;;  %v4142_v38 = vrot.slane %v4140_v11, 1  ;;  %v3396_v12 = vrot.slane %v3392_v29, 4  ;;  %501 = vst [vmem:[#allocation3 + $0x98] sm:$0x1] %v500_v25 }
 0x266   : > { %v3437_v53 = vor.u32 %v3435_v31, %v3434_v43  ;;  %v3439_v42 = vrot.slane %v3434_v43, 4  ;;  %v8177_v32 = vsel %vm1626_vm10, %v4323_v9, %v4324_v50  ;;  %v4070_v29 = vrot.slane %v4068_v30, 1  ;;  %v6424_v33 = vld [vmem:[#allocation3 + $0x18] sm:$0xf0]  ;;  %v502_v50 = vld [vmem:[#allocation3 + $0xa4] sm:$0x1] }
 0x267   : > { %v3641_v28 = vsel %vm6846_vm9, %v3395_v56, %v3640_v49  ;;  %v3253_v8 = vpack.c.bf16 %v3221_v27, %v3221_v27  ;;  %v4143_v20 = vsel %vm1353_vm8, %v4138_v34, %v4142_v38  ;;  %v6425_v49 = vld [vmem:[#allocation3 + $0x18] sm:$0xe]  ;;  %v8194_v56 = vld [vmem:[%s9213_s2] ss:$0 sm:$0xff]  ;;  %v4303_v27 = vrot.slane %v8011_v44, 1 }
 0x268   : > { %3642 = vst [vmem:[#allocation3 + $0x60] sm:$0xf] %v3641_v28  ;;  %4234 = vrot.lane.b32.xlu2 %v4143_v20, %s6692_s30  ;;  %v3438_v52 = vsel %vm6817_vm7, %v3430_v16, %v3437_v53  ;;  %v3659_v23 = vsel %vm6753_vm4, %v3439_v42, %v3658_v2  ;;  %v3106_v40 = vpop.f32.mrf.mxu2  ;;  %v6426_v48 = vor.u32 %v6425_v49, %v6424_v33  ;;  %v6422_v20 = vld [vmem:[#allocation3] sm:$0xe] }
 0x269   : > { %v3398_v15 = vshrl.u32 %v3253_v8, 16  ;;  %v3401_v51 = vshll.u32 %v3253_v8, 16  ;;  %3657 = vst.msk [vmem:[#allocation3 + $0x7c] sm:$0xf] %vm280_vm0, %v3438_v52  ;;  %v3159_v45 = vmul.f32 %v7902_v0, %v3106_v40  ;;  %v4071_v0 = vsel %vm1353_vm8, %v4066_v59, %v4070_v29  ;;  %v3739_v59 = vld [vmem:[#allocation3 + $0x38] sm:$0x1] }
 0x26a   : > { %3660 = vst [vmem:[#allocation3 + $0x80] sm:$0x1] %v3659_v23  ;;  %v4302_v38 = vrot.slane %v6426_v48, 1  ;;  %v503_v23 = vsel %vm6759_vm5, 0, %v502_v50  ;;  %v3996_v40 = vunpack.c.l.b16 %v3739_v59 }
 0x26b   : > { %v3400_v54 = vrot.slane %v3398_v15, 7  ;;  %v3194_v36 = vadd.f32 %v7909_v35, %v3159_v45  ;;  %v449_v35 = vsel %vm6753_vm4, 0, %v448_v21  ;;  %v6421_v15 = vld [vmem:[#allocation3] sm:$0xf0]  ;;  %504 = vst [vmem:[#allocation3 + $0xa4] sm:$0x1] %v503_v23 }
 0x26c   : > { %450 = vst [vmem:[#allocation3 + $0x9c] sm:$0x1] %v449_v35  ;;  %v4304_v2 = vsel %vm1626_vm10, %v4302_v38, %v4303_v27  ;;  %v6423_v9 = vor.u32 %v6422_v20, %v6421_v15  ;;  %v3665_v45 = vld [vmem:[#allocation3 + $0x8c] sm:$0x1]  ;;  %v8223_v49 = vpack.c.b16 %v3996_v40, %v3996_v40  ;;  %v3668_v38 = vld [vmem:[#allocation3 + $0x90] sm:$0xf] }
 0x26d   : > { %v3403_v14 = vor.u32 %v3401_v51, %v3400_v54  ;;  %v3405_v6 = vrot.slane %v3400_v54, 4  ;;  %v3226_v55 = vmax.f32 %v3194_v36, 0.0 }
 0x26e   : > { %v4080_v27 = vshll.u32 %v8223_v49, 16 }
 0x26f   : > { %v3404_v57 = vsel %vm6817_vm7, %v3396_v12, %v3403_v14  ;;  %v3645_v4 = vsel %vm6753_vm4, %v3405_v6, %v3644_v5  ;;  %v3258_v63 = vpack.c.bf16 %v3226_v55, %v3226_v55 }
 0x270   : > { %3643 = vst.msk [vmem:[#allocation3 + $0x64] sm:$0xf] %vm280_vm0, %v3404_v57  ;;  %4222 = vrot.lane.b32.xlu2 %v4071_v0, %s6692_s30  ;;  %v3108_v18 = vpop.f32.mrf.mxu2  ;;  %v8187_v22 = vld [vmem:[#allocation3 + $0x78] sm:$0xff]   ;;  %v4296_v57 = vrot.slane %v6423_v9, 1  ;;  %v6400_v0 = vld [vmem:[#allocation3 + $0x30] sm:$0xff]  }
 0x271   : > { %3646 = vst [vmem:[#allocation3 + $0x68] sm:$0x1] %v3645_v4  ;;  %v3441_v41 = vshrl.u32 %v3258_v63, 16  ;;  %v3160_v47 = vmul.f32 %v8194_v56, %v3108_v18  ;;  %v3745_v34 = vld [vmem:[#allocation3 + $0x80] sm:$0x1]  ;;  %v4147_v61 = vshll.u32 %v8187_v22, 16 }
 0x272   : > { %v4002_v11 = vunpack.c.l.b16 %v3745_v34  ;;  %v3444_v7 = vshll.u32 %v3258_v63, 16  ;;  %v4145_v30 = vshrl.u32 %v8187_v22, 16  ;;  %v4297_v4 = vrot.slane %v8101_v13, 1  ;;  %v451_v34 = vld [vmem:[#allocation3 + $0xa8] sm:$0x1] }
 0x273   : > { %v3443_v28 = vrot.slane %v3441_v41, 7  ;;  %v3195_v8 = vadd.f32 %v8202_v60, %v3160_v47  ;;  %v4149_v31 = vrot.slane %v4147_v61, 1  ;;  %v4075_v13 = vshll.u32 %v6400_v0, 16 }
 0x274   : > { %v8205_v43 = vpack.c.b16 %v4002_v11, %v4002_v11  ;;  %v4298_v35 = vsel %vm1626_vm10, %v4296_v57, %v4297_v4  ;;  %v3672_v57 = vld [vmem:[#allocation3 + $0x98] sm:$0x1] }
 0x275   : > { %v3446_v44 = vor.u32 %v3444_v7, %v3443_v28  ;;  %v3227_v46 = vmax.f32 %v3195_v8, 0.0  ;;  %v8213_v51 = vor.u32 %v4149_v31, %v4145_v30  ;;  %v3447_v36 = vrot.slane %v3443_v28, 4  ;;  %v6609_v7 = vld [vmem:[#allocation3 + $0x24] sm:$0xe] }
 0x276   : > { %v4152_v16 = vshll.u32 %v8205_v43, 16  ;;  %v452_v8 = vsel %vm6753_vm4, 0, %v451_v34  ;;  %v6610_v59 = vor.u32 %v6609_v7, %v8140_v24  ;;  %v8250_v24 = vld [vmem:[#allocation3 + $0x3c] sm:$0xff]  }
 0x277   : > { %v3662_v53 = vsel %vm6846_vm9, %v3446_v44, %v3661_v17  ;;  %v3259_v42 = vpack.c.bf16 %v3227_v46, %v3227_v46  ;;  %v4077_v17 = vrot.slane %v4075_v13, 1  ;;  %453 = vst [vmem:[#allocation3 + $0xa8] sm:$0x1] %v452_v8  ;;  %v4073_v46 = vshrl.u32 %v6400_v0, 16  ;;  %v454_v8 = vld [vmem:[#allocation3 + $0xb4] sm:$0x1] }
 0x278   : > { %4348 = vrot.lane.b32.xlu2 %v4304_v2, %s6693_s8  ;;  %3663 = vst [vmem:[#allocation3 + $0x84] sm:$0xf] %v3662_v53  ;;  %v3111_v54 = vpop.f32.mrf.mxu2  ;;  %v4154_v39 = vrot.slane %v4152_v16, 1  ;;  %v4082_v2 = vrot.slane %v4080_v27, 1  ;;  %v4305_v4 = vrot.slane %v6610_v59, 1 }
 0x279   : > { %v3449_v12 = vshrl.u32 %v3259_v42, 16  ;;  %v3161_v52 = vmul.f32 %v8194_v56, %v3111_v54  ;;  %v3452_v14 = vshll.u32 %v3259_v42, 16  ;;  %v4078_v42 = vor.u32 %v4077_v17, %v4073_v46 }
 0x27a   : > { %v4155_v5 = vsel %vm1353_vm8, %v8213_v51, %v4154_v39  ;;  %v505_v39 = vld [vmem:[#allocation3 + $0xb0] sm:$0x1]  ;;  %v455_v17 = vsel %vm6753_vm4, 0, %v454_v8 }
 0x27b   : > { %v3451_v25 = vrot.slane %v3449_v12, 7  ;;  %v3196_v6 = vadd.f32 %v8202_v60, %v3161_v52  ;;  %4236 = vrot.lane.b32.xlu0 %v4155_v5, %s6692_s30  ;;  %v4083_v52 = vsel %vm1353_vm8, %v4078_v42, %v4082_v2  ;;  %v506_v23 = vsel %vm6759_vm5, 0, %v505_v39  ;;  %v6428_v2 = vld [vmem:[#allocation3 + $0x30] sm:$0xe]  ;;  %456 = vst [vmem:[#allocation3 + $0xb4] sm:$0x1] %v455_v17 }
 0x27c   : > { %507 = vst [vmem:[#allocation3 + $0xb0] sm:$0x1] %v506_v23 }
 0x27d   : > { %v3454_v29 = vor.u32 %v3452_v14, %v3451_v25  ;;  %v3456_v33 = vrot.slane %v3451_v25, 4  ;;  %v3228_v55 = vmax.f32 %v3196_v6, 0.0  ;;  %v8252_v6 = vld [vmem:[#allocation3 + $0x3c] sm:$0xf0] }
 0x27f   : > { %v3455_v63 = vsel %vm6817_vm7, %v3447_v36, %v3454_v29  ;;  %v3666_v48 = vsel %vm6753_vm4, %v3456_v33, %v3665_v45  ;;  %v3260_v21 = vpack.c.bf16 %v3228_v55, %v3228_v55  ;;  %v4306_v36 = vrot.slane %v8150_v37, 1 }
 0x280   : > { %3664 = vst.msk [vmem:[#allocation3 + $0x88] sm:$0xf] %vm280_vm0, %v3455_v63  ;;  %v3113_v18 = vpop.f32.mrf.mxu2 }
 0x281   : > { %3667 = vst [vmem:[#allocation3 + $0x8c] sm:$0x1] %v3666_v48  ;;  %v3458_v41 = vshrl.u32 %v3260_v21, 16  ;;  %v3162_v47 = vmul.f32 %v8194_v56, %v3113_v18  ;;  %v3461_v61 = vshll.u32 %v3260_v21, 16  ;;  %v4307_v7 = vsel %vm1626_vm10, %v4305_v4, %v4306_v36 }
 0x283   : > { %v3460_v11 = vrot.slane %v3458_v41, 7  ;;  %v3197_v28 = vadd.f32 %v8202_v60, %v3162_v47  ;;  %4344 = vrot.lane.b32.xlu0 %v4298_v35, %s6693_s8  ;;  %v6427_v41 = vld [vmem:[#allocation3 + $0x30] sm:$0xf0]  ;;  %v6612_v47 = vld [vmem:[#allocation3 + $0x84] sm:$0xe] }
 0x285   : > { %v3463_v31 = vor.u32 %v3461_v61, %v3460_v11  ;;  %v3229_v44 = vmax.f32 %v3197_v28, 0.0  ;;  %v3464_v45 = vrot.slane %v3460_v11, 4  ;;  %v3740_v11 = vld [vmem:[#allocation3 + $0x44] sm:$0x1] }
 0x287   : > { %v3669_v15 = vsel %vm6846_vm9, %v3463_v31, %v3668_v38  ;;  %v3261_v20 = vpack.c.bf16 %v3229_v44, %v3229_v44  ;;  %v8239_v30 = vld [vmem:[#allocation3 + $0x84] sm:$0xff]  }
 0x288   : > { %v8241_v16 = vld [vmem:[#allocation3 + $0x84] sm:$0xf0]  ;;  %3670 = vst [vmem:[#allocation3 + $0x90] sm:$0xf] %v3669_v15  ;;  %v3116_v53 = vpop.f32.mrf.mxu2  ;;  %v3746_v54 = vld [vmem:[#allocation3 + $0x8c] sm:$0x1] }
 0x289   : > { %v3466_v9 = vshrl.u32 %v3261_v20, 16  ;;  %v3163_v50 = vmul.f32 %v8194_v56, %v3116_v53  ;;  %v4003_v12 = vunpack.c.l.b16 %v3746_v54  ;;  %v3469_v40 = vshll.u32 %v3261_v20, 16  ;;  %v3675_v15 = vld [vmem:[#allocation3 + $0x9c] sm:$0xf] }
 0x28a   : > { %v4159_v29 = vshll.u32 %v8239_v30, 16  ;;  %v4157_v48 = vshrl.u32 %v8239_v30, 16  ;;  %v6429_v20 = vor.u32 %v6428_v2, %v6427_v41  ;;  %v3997_v53 = vunpack.c.l.b16 %v3740_v11 }
 0x28b   : > { %v3468_v5 = vrot.slane %v3466_v9, 7  ;;  %v3198_v25 = vadd.f32 %v8202_v60, %v3163_v50  ;;  %4224 = vrot.lane.b32.xlu0 %v4083_v52, %s6692_s30  ;;  %v4019_v14 = vpack.c.b16 %v4003_v12, %v4003_v12  ;;  %v6613_v42 = vor.u32 %v6612_v47, %v8241_v16  ;;  %v3679_v47 = vld [vmem:[#allocation3 + $0xa4] sm:$0x1] }
 0x28c   : > { %v4161_v21 = vrot.slane %v4159_v29, 1  ;;  %v4309_v9 = vrot.slane %v8223_v49, 1  ;;  %v4087_v50 = vshll.u32 %v8250_v24, 16  ;;  %v508_v29 = vld [vmem:[#allocation3 + $0xbc] sm:$0x1] }
 0x28d   : > { %v3471_v33 = vor.u32 %v3469_v40, %v3468_v5  ;;  %v3473_v55 = vrot.slane %v3468_v5, 4  ;;  %v3230_v0 = vmax.f32 %v3198_v25, 0.0  ;;  %v4164_v63 = vshll.u32 %v4019_v14, 16 }
 0x28e   : > { %v4162_v27 = vor.u32 %v4161_v21, %v4157_v48  ;;  %v4330_v59 = vrot.slane %v4019_v14, 1  ;;  %v4329_v12 = vrot.slane %v6613_v42, 1  ;;  %v4308_v25 = vrot.slane %v6429_v20, 1 }
 0x28f   : > { %v3472_v18 = vsel %vm6817_vm7, %v3464_v45, %v3471_v33  ;;  %v3673_v35 = vsel %vm6753_vm4, %v3473_v55, %v3672_v57  ;;  %v3262_v13 = vpack.c.bf16 %v3230_v0, %v3230_v0  ;;  %v4166_v34 = vrot.slane %v4164_v63, 1 }
 0x290   : > { %3671 = vst.msk [vmem:[#allocation3 + $0x94] sm:$0xf] %vm280_vm0, %v3472_v18  ;;  %v3118_v37 = vpop.f32.mrf.mxu2  ;;  %v8278_v14 = vpack.c.b16 %v3997_v53, %v3997_v53  ;;  %v8281_v57 = vsel %vm1626_vm10, %v4329_v12, %v4330_v59  ;;  %v4310_v33 = vsel %vm1626_vm10, %v4308_v25, %v4309_v9  ;;  %v4089_v0 = vrot.slane %v4087_v50, 1  ;;  %v6436_v53 = vld [vmem:[#allocation3 + $0x78] sm:$0xf0]  ;;  %v8308_v12 = vld [vmem:[#allocation3 + $0x6c] sm:$0xff]  }
 0x291   : > { %3674 = vst [vmem:[#allocation3 + $0x98] sm:$0x1] %v3673_v35  ;;  %v3475_v61 = vshrl.u32 %v3262_v13, 16  ;;  %v3164_v28 = vmul.f32 %v8194_v56, %v3118_v37  ;;  %v4167_v38 = vsel %vm1353_vm8, %v4162_v27, %v4166_v34  ;;  %v3478_v44 = vshll.u32 %v3262_v13, 16  ;;  %v6615_v13 = vld [vmem:[#allocation3 + $0x3c] sm:$0xe] }
 0x292   : > { %4238 = vrot.lane.b32.xlu1 %v4167_v38, %s6692_s30  ;;  %v509_v63 = vsel %vm6759_vm5, 0, %v508_v29  ;;  %v4085_v27 = vshrl.u32 %v8250_v24, 16  ;;  %v4092_v34 = vshll.u32 %v8278_v14, 16  ;;  %v6616_v20 = vor.u32 %v6615_v13, %v8252_v6  ;;  %v6437_v50 = vld [vmem:[#allocation3 + $0x78] sm:$0xe] }
 0x293   : > { %v3477_v31 = vrot.slane %v3475_v61, 7  ;;  %v3199_v46 = vadd.f32 %v8202_v60, %v3164_v28  ;;  %4350 = vrot.lane.b32.xlu0 %v4307_v7, %s6693_s8  ;;  %510 = vst [vmem:[#allocation3 + $0xbc] sm:$0x1] %v509_v63  ;;  %v6682_v29 = vld [vmem:[#allocation3 + $0x6c] sm:$0xe] }
 0x294   : > { %v4090_v38 = vor.u32 %v4089_v0, %v4085_v27  ;;  %v4327_v0 = vrot.slane %v8205_v43, 1  ;;  %v511_v27 = vld [vmem:[#allocation3 + $0xc8] sm:$0x1] }
 0x295   : > { %v3480_v54 = vor.u32 %v3478_v44, %v3477_v31  ;;  %v3231_v39 = vmax.f32 %v3199_v46, 0.0  ;;  %v3481_v41 = vrot.slane %v3477_v31, 4 }
 0x297   : > { %v3676_v52 = vsel %vm6846_vm9, %v3480_v54, %v3675_v15  ;;  %v3263_v23 = vpack.c.bf16 %v3231_v39, %v3231_v39  ;;  %v8275_v5 = vld [vmem:[#allocation3 + $0x90] sm:$0xff]   ;;  %v4094_v15 = vrot.slane %v4092_v34, 1  ;;  %v457_v39 = vld [vmem:[#allocation3 + $0xc0] sm:$0x1] }
 0x298   : > { %3677 = vst [vmem:[#allocation3 + $0x9c] sm:$0xf] %v3676_v52  ;;  %v3121_v40 = vpop.f32.mrf.mxu2  ;;  %v3747_v45 = vld [vmem:[#allocation3 + $0x98] sm:$0x1]  ;;  %v4171_v16 = vshll.u32 %v8275_v5, 16  ;;  %v4169_v37 = vshrl.u32 %v8275_v5, 16 }
 0x299   : > { %v3483_v49 = vshrl.u32 %v3263_v23, 16  ;;  %v3165_v4 = vmul.f32 %v8194_v56, %v3121_v40  ;;  %v4004_v36 = vunpack.c.l.b16 %v3747_v45  ;;  %v3486_v21 = vshll.u32 %v3263_v23, 16  ;;  %v6681_v52 = vld [vmem:[#allocation3 + $0x6c] sm:$0xf0] }
 0x29a   : > { %v4173_v55 = vrot.slane %v4171_v16, 1  ;;  %4352 = vrot.lane.b32.xlu1 %v4310_v33, %s6693_s8  ;;  %v4095_v9 = vsel %vm1353_vm8, %v4090_v38, %v4094_v15  ;;  %v458_v6 = vsel %vm6753_vm4, 0, %v457_v39  ;;  %v6438_v45 = vor.u32 %v6437_v50, %v6436_v53  ;;  %v3807_v16 = vld [vmem:[#allocation3 + $0x74] sm:$0x1] }
 0x29b   : > { %v3485_v48 = vrot.slane %v3483_v49, 7  ;;  %v3200_v18 = vadd.f32 %v8202_v60, %v3165_v4  ;;  %v8289_v35 = vpack.c.b16 %v4004_v36, %v4004_v36  ;;  %459 = vst [vmem:[#allocation3 + $0xc0] sm:$0x1] %v458_v6  ;;  %v3682_v49 = vld [vmem:[#allocation3 + $0xa8] sm:$0xf]  ;;  %v4311_v4 = vrot.slane %v6616_v20, 1 }
 0x29c   : > { %v8295_v8 = vor.u32 %v4173_v55, %v4169_v37  ;;  %v4312_v36 = vrot.slane %v8278_v14, 1  ;;  %v4512_v63 = vunpack.c.l.b16 %v3807_v16  ;;  %v6683_v43 = vor.u32 %v6682_v29, %v6681_v52  ;;  %v3686_v20 = vld [vmem:[#allocation3 + $0xb0] sm:$0x1]  ;;  %v8342_v16 = vld [vmem:[#allocation3 + $0x48] sm:$0xff]  }
 0x29d   : > { %v3488_v11 = vor.u32 %v3486_v21, %v3485_v48  ;;  %v3490_v61 = vrot.slane %v3485_v48, 4  ;;  %v3232_v28 = vmax.f32 %v3200_v18, 0.0  ;;  %v4176_v7 = vshll.u32 %v8289_v35, 16  ;;  %v6430_v29 = vld [vmem:[#allocation3 + $0x48] sm:$0xf0] }
 0x29e   : > { %v4326_v18 = vrot.slane %v6438_v45, 1  ;;  %v4313_v37 = vsel %vm1626_vm10, %v4311_v4, %v4312_v36  ;;  %v8326_v38 = vpack.c.b16 %v4512_v63, %v4512_v63  ;;  %v4832_v50 = vrot.slane %v6683_v43, 1 }
 0x29f   : > { %v3489_v17 = vsel %vm6817_vm7, %v3481_v41, %v3488_v11  ;;  %v3680_v31 = vsel %vm6753_vm4, %v3490_v61, %v3679_v47  ;;  %v3264_v44 = vpack.c.bf16 %v3232_v28, %v3232_v28  ;;  %v4178_v46 = vrot.slane %v4176_v7, 1  ;;  %v3741_v28 = vld [vmem:[#allocation3 + $0x50] sm:$0x1] }
 0x2a0   : > { %3678 = vst.msk [vmem:[#allocation3 + $0xa0] sm:$0xf] %vm280_vm0, %v3489_v17  ;;  %v3123_v2 = vpop.f32.mrf.mxu2  ;;  %v4328_v7 = vsel %vm1626_vm10, %v4326_v18, %v4327_v0  ;;  %v512_v17 = vsel %vm6759_vm5, 0, %v511_v27  ;;  %v4833_v52 = vrot.slane %v8326_v38, 1  ;;  %v4099_v18 = vshll.u32 %v8342_v16, 16 }
 0x2a1   : > { %3681 = vst [vmem:[#allocation3 + $0xa4] sm:$0x1] %v3680_v31  ;;  %v3492_v42 = vshrl.u32 %v3264_v44, 16  ;;  %v3166_v59 = vmul.f32 %v8194_v56, %v3123_v2  ;;  %v4179_v54 = vsel %vm1353_vm8, %v8295_v8, %v4178_v46  ;;  %v3495_v40 = vshll.u32 %v3264_v44, 16 }
 0x2a2   : > { %4240 = vrot.lane.b32.xlu2 %v4179_v54, %s6692_s30  ;;  %4226 = vrot.lane.b32.xlu1 %v4095_v9, %s6692_s30  ;;  %513 = vst [vmem:[#allocation3 + $0xc8] sm:$0x1] %v512_v17  ;;  %v4834_v0 = vsel %vm1626_vm10, %v4832_v50, %v4833_v52  ;;  %v8360_v50 = vld [vmem:[#allocation3 + $0x54] sm:$0xff]  }
 0x2a3   : > { %v3494_v23 = vrot.slane %v3492_v42, 7  ;;  %v3201_v25 = vadd.f32 %v8202_v60, %v3166_v59  ;;  %v3998_v42 = vunpack.c.l.b16 %v3741_v28  ;;  %9303 = vst [vmem:[#allocation22_spill] sm:$0xff] %v8360_v50  ;;  %v6684_v52 = vld [vmem:[#allocation3 + $0x54] sm:$0xf0] }
 0x2a5   : > { %v3497_v33 = vor.u32 %v3495_v40, %v3494_v23  ;;  %v3233_v55 = vmax.f32 %v3201_v25, 0.0  ;;  %v3498_v15 = vrot.slane %v3494_v23, 4 }
 0x2a7   : > { %v3683_v48 = vsel %vm6846_vm9, %v3497_v33, %v3682_v49  ;;  %v3265_v21 = vpack.c.bf16 %v3233_v55, %v3233_v55  ;;  %v8318_v13 = vld [vmem:[#allocation3 + $0x9c] sm:$0xff]  }
 0x2a8   : > { %v8320_v41 = vld [vmem:[#allocation3 + $0x9c] sm:$0xf0]  ;;  %3684 = vst [vmem:[#allocation3 + $0xa8] sm:$0xf] %v3683_v48  ;;  %v3126_v47 = vpop.f32.mrf.mxu2  ;;  %v3748_v14 = vld [vmem:[#allocation3 + $0xa4] sm:$0x1] }
 0x2a9   : > { %v3500_v34 = vshrl.u32 %v3265_v21, 16  ;;  %v3167_v11 = vmul.f32 %v8194_v56, %v3126_v47  ;;  %v4005_v61 = vunpack.c.l.b16 %v3748_v14  ;;  %v3503_v44 = vshll.u32 %v3265_v21, 16  ;;  %v6431_v48 = vld [vmem:[#allocation3 + $0x48] sm:$0xe] }
 0x2aa   : > { %4354 = vrot.lane.b32.xlu2 %v4313_v37, %s6693_s8  ;;  %4364 = vrot.lane.b32.xlu1 %v4328_v7, %s6693_s8  ;;  %v4183_v53 = vshll.u32 %v8318_v13, 16  ;;  %v4181_v6 = vshrl.u32 %v8318_v13, 16  ;;  %v4014_v21 = vpack.c.b16 %v3998_v42, %v3998_v42  ;;  %v6432_v27 = vor.u32 %v6431_v48, %v6430_v29 }
 0x2ab   : > { %v3502_v31 = vrot.slane %v3500_v34, 7  ;;  %v3202_v46 = vadd.f32 %v8202_v60, %v3167_v11  ;;  %v8332_v2 = vpack.c.b16 %v4005_v61, %v4005_v61  ;;  %v3689_v34 = vld [vmem:[#allocation3 + $0xb4] sm:$0xf]  ;;  %v8354_v61 = vpop.permute.xlu2 %4216  ;;  %v4101_v7 = vrot.slane %v4099_v18, 1 }
 0x2ac   : > { %v4185_v40 = vrot.slane %v4183_v53, 1  ;;  %v4315_v28 = vrot.slane %v4014_v21, 1  ;;  %v4104_v17 = vshll.u32 %v4014_v21, 16  ;;  %v4097_v53 = vshrl.u32 %v8342_v16, 16 }
 0x2ad   : > { %v3505_v59 = vor.u32 %v3503_v44, %v3502_v31  ;;  %v3507_v54 = vrot.slane %v3502_v31, 4  ;;  %v3234_v39 = vmax.f32 %v3202_v46, 0.0  ;;  %v4188_v9 = vshll.u32 %v8332_v2, 16 }
 0x2ae   : > { %v4186_v4 = vor.u32 %v4185_v40, %v4181_v6  ;;  %v4314_v46 = vrot.slane %v6432_v27, 1  ;;  %v3742_v6 = vld [vmem:[#allocation3 + $0x5c] sm:$0x1]  ;;  %v4635_v27 = vshll.u32 %v8308_v12, 16 }
 0x2af   : > { %v3506_v25 = vsel %vm6817_vm7, %v3498_v15, %v3505_v59  ;;  %v3687_v23 = vsel %vm6753_vm4, %v3507_v54, %v3686_v20  ;;  %v3266_v45 = vpack.c.bf16 %v3234_v39, %v3234_v39  ;;  %v4190_v36 = vrot.slane %v4188_v9, 1 }
 0x2b0   : > { %3685 = vst.msk [vmem:[#allocation3 + $0xac] sm:$0xf] %vm280_vm0, %v3506_v25  ;;  %v3128_v49 = vpop.f32.mrf.mxu2  ;;  %v4316_v40 = vsel %vm1626_vm10, %v4314_v46, %v4315_v28  ;;  %v4102_v25 = vor.u32 %v4101_v7, %v4097_v53  ;;  %v3999_v48 = vunpack.c.l.b16 %v3742_v6  ;;  %v8383_v53 = vld [vmem:[#allocation3 + $0xc] sm:$0xff]  }
 0x2b1   : > { %3688 = vst [vmem:[#allocation3 + $0xb0] sm:$0x1] %v3687_v23  ;;  %v3509_v33 = vshrl.u32 %v3266_v45, 16  ;;  %v3168_v55 = vmul.f32 %v8194_v56, %v3128_v49  ;;  %v4191_v63 = vsel %vm1353_vm8, %v4186_v4, %v4190_v36  ;;  %v3512_v37 = vshll.u32 %v3266_v45, 16 }
 0x2b2   : > { %4472 = vrot.lane.b32.xlu2 %v8308_v12, %s6694_s9  ;;  %4872 = vrot.lane.b32.xlu1 %v4834_v0, %s6697_s12  ;;  %v4106_v23 = vrot.slane %v4104_v17, 1  ;;  %v3693_v0 = vld [vmem:[#allocation3 + $0xbc] sm:$0x1] }
 0x2b3   : > { %v3511_v47 = vrot.slane %v3509_v33, 7  ;;  %v3203_v14 = vadd.f32 %v8202_v60, %v3168_v55  ;;  %4242 = vrot.lane.b32.xlu0 %v4191_v63, %s6692_s30  ;;  %v6685_v33 = vld [vmem:[#allocation3 + $0x54] sm:$0xe] }
 0x2b4   : > { %v4107_v17 = vsel %vm1353_vm8, %v4102_v25, %v4106_v23  ;;  %v4633_v25 = vshrl.u32 %v8308_v12, 16  ;;  %v3696_v23 = vld [vmem:[#allocation3 + $0xc0] sm:$0xf]  ;;  %v3799_v12 = vld [vmem:[#allocation3 + $0x14] sm:$0x1] }
 0x2b5   : > { %v3514_v11 = vor.u32 %v3512_v37, %v3511_v47  ;;  %v3235_v43 = vmax.f32 %v3203_v14, 0.0  ;;  %v3515_v55 = vrot.slane %v3511_v47, 4 }
 0x2b7   : > { %v3690_v31 = vsel %vm6846_vm9, %v3514_v11, %v3689_v34  ;;  %v3267_v44 = vpack.c.bf16 %v3235_v43, %v3235_v43  ;;  %v6405_v15 = vld [vmem:[#allocation3 + $0xa8] sm:$0xff]  }
 0x2b8   : > { %3691 = vst [vmem:[#allocation3 + $0xb4] sm:$0xf] %v3690_v31  ;;  %v3131_v20 = vpop.f32.mrf.mxu2  ;;  %v3749_v42 = vld [vmem:[#allocation3 + $0xb0] sm:$0x1]  ;;  %v4195_v59 = vshll.u32 %v6405_v15, 16  ;;  %v4193_v63 = vshrl.u32 %v6405_v15, 16 }
 0x2b9   : > { %v3517_v54 = vshrl.u32 %v3267_v44, 16  ;;  %v3169_v39 = vmul.f32 %v8194_v56, %v3131_v20  ;;  %v4006_v9 = vunpack.c.l.b16 %v3749_v42  ;;  %v3520_v4 = vshll.u32 %v3267_v44, 16  ;;  %v8385_v42 = vld [vmem:[#allocation3 + $0xc] sm:$0xf0] }
 0x2ba   : > { %4984 = vrot.lane.b32.xlu2 %v8187_v22, %s6698_s13  ;;  %v4197_v45 = vrot.slane %v4195_v59, 1  ;;  %v8379_v44 = vpack.c.b16 %v3999_v48, %v3999_v48  ;;  %v6686_v59 = vor.u32 %v6685_v33, %v6684_v52 }
 0x2bb   : > { %v3519_v49 = vrot.slane %v3517_v54, 7  ;;  %v3204_v36 = vadd.f32 %v8202_v60, %v3169_v39  ;;  %4356 = vrot.lane.b32.xlu0 %v4316_v40, %s6693_s8  ;;  %v8367_v29 = vpack.c.b16 %v4006_v9, %v4006_v9  ;;  %v3872_v54 = vld [vmem:[#allocation3 + $0x80] sm:$0x1]  ;;  %v4637_v39 = vrot.slane %v4635_v27, 1 }
 0x2bc   : > { %v4198_v34 = vor.u32 %v4197_v45, %v4193_v63  ;;  %v5024_v45 = vunpack.c.l.b16 %v3872_v54 }
 0x2bd   : > { %v3522_v21 = vor.u32 %v3520_v4, %v3519_v49  ;;  %v3524_v18 = vrot.slane %v3519_v49, 4  ;;  %v3236_v37 = vmax.f32 %v3204_v36, 0.0  ;;  %v4200_v14 = vshll.u32 %v8367_v29, 16 }
 0x2be   : > { %v4317_v4 = vrot.slane %v6686_v59, 1  ;;  %v4318_v36 = vrot.slane %v8379_v44, 1  ;;  %v4638_v33 = vor.u32 %v4637_v39, %v4633_v25  ;;  %v3700_v59 = vld [vmem:[#allocation3 + $0xc8] sm:$0x1]  ;;  %v4109_v39 = vshrl.u32 %v8360_v50, 16 }
 0x2bf   : > { %v3523_v11 = vsel %vm6817_vm7, %v3515_v55, %v3522_v21  ;;  %v3694_v43 = vsel %vm6753_vm4, %v3524_v18, %v3693_v0  ;;  %v3268_v28 = vpack.c.bf16 %v3236_v37, %v3236_v37  ;;  %v4202_v7 = vrot.slane %v4200_v14, 1  ;;  %v6481_v21 = vld [vmem:[#allocation3 + $0x78] sm:$0xf0] }
 0x2c0   : > { %3692 = vst.msk [vmem:[#allocation3 + $0xb8] sm:$0xf] %vm280_vm0, %v3523_v11  ;;  %v3133_v47 = vpop.f32.mrf.mxu2  ;;  %v4111_v55 = vshll.u32 %v8360_v50, 16  ;;  %v5040_v18 = vpack.c.b16 %v5024_v45, %v5024_v45  ;;  %v4319_v27 = vsel %vm1626_vm10, %v4317_v4, %v4318_v36  ;;  %v6482_v11 = vld [vmem:[#allocation3 + $0x78] sm:$0xe]  ;;  %v8632_v50 = vld [vmem:[#allocation3 + $0x3c] sm:$0xff]  }
 0x2c1   : > { %3695 = vst [vmem:[#allocation3 + $0xbc] sm:$0x1] %v3694_v43  ;;  %v3526_v46 = vshrl.u32 %v3268_v28, 16  ;;  %v3170_v15 = vmul.f32 %v8194_v56, %v3133_v47  ;;  %v4203_v20 = vsel %vm1353_vm8, %v4198_v34, %v4202_v7  ;;  %v3529_v6 = vshll.u32 %v3268_v28, 16 }
 0x2c2   : > { %v8377_v31 = vpop.permute.xlu2 %4234  ;;  %4228 = vrot.lane.b32.xlu2 %v4107_v17, %s6692_s30  ;;  %4244 = vrot.lane.b32.xlu1 %v4203_v20, %s6692_s30  ;;  %v4640_v56 = vshll.u32 %v8326_v38, 16  ;;  %v4113_v43 = vrot.slane %v4111_v55, 1  ;;  %v4504_v28 = vunpack.c.l.b16 %v3799_v12  ;;  %v6483_v17 = vor.u32 %v6482_v11, %v6481_v21  ;;  %v3743_v20 = vld [vmem:[#allocation3 + $0x68] sm:$0x1] }
 0x2c3   : > { %v3528_v9 = vrot.slane %v3526_v46, 7  ;;  %v3205_v40 = vadd.f32 %v8202_v60, %v3170_v15  ;;  %4362 = vrot.lane.b32.xlu0 %v8177_v32, %s6693_s8  ;;  %v6618_v15 = vld [vmem:[#allocation3 + $0xc] sm:$0xe]  ;;  %v5345_v54 = vrot.slane %v5040_v18, 1 }
 0x2c4   : > { %v4642_v63 = vrot.slane %v4640_v56, 1  ;;  %v4221_v56 = vpop.permute.xlu1 %4220  ;;  %v4520_v26 = vpack.c.b16 %v4504_v28, %v4504_v28 }
 0x2c5   : > { %v3531_v52 = vor.u32 %v3529_v6, %v3528_v9  ;;  %v3237_v49 = vmax.f32 %v3205_v40, 0.0  ;;  %v4116_v6 = vshll.u32 %v8379_v44, 16  ;;  %v3532_v25 = vrot.slane %v3528_v9, 4 }
 0x2c6   : > { %v4643_v58 = vsel %vm1353_vm8, %v4638_v33, %v4642_v63  ;;  %v4000_v33 = vunpack.c.l.b16 %v3743_v20  ;;  %v5344_v44 = vrot.slane %v6483_v17, 1  ;;  %v6434_v17 = vld [vmem:[#allocation3 + $0x60] sm:$0xe] }
 0x2c7   : > { %v3697_v60 = vsel %vm6846_vm9, %v3531_v52, %v3696_v23  ;;  %v3269_v0 = vpack.c.bf16 %v3237_v49, %v3237_v49  ;;  %v8398_v32 = vld [vmem:[#allocation3 + $0xb4] sm:$0xff]   ;;  %v4114_v49 = vor.u32 %v4113_v43, %v4109_v39  ;;  %v4118_v12 = vrot.slane %v4116_v6, 1 }
 0x2c8   : > { %9304 = vst [vmem:[#allocation23_spill] sm:$0xff] %v8398_v32  ;;  %v8400_v38 = vld [vmem:[#allocation3 + $0xb4] sm:$0xf0]  ;;  %v3750_v37 = vld [vmem:[#allocation3 + $0xbc] sm:$0x1]  ;;  %v4207_v40 = vshll.u32 %v8398_v32, 16 }
 0x2c9   : > { %3698 = vst [vmem:[#allocation3 + $0xc0] sm:$0xf] %v3697_v60  ;;  %v3534_v14 = vshrl.u32 %v3269_v0, 16  ;;  %v4007_v34 = vunpack.c.l.b16 %v3750_v37  ;;  %v3537_v47 = vshll.u32 %v3269_v0, 16  ;;  %v4205_v4 = vshrl.u32 %v8398_v32, 16  ;;  %v6533_v0 = vld [vmem:[#allocation3 + $0x18] sm:$0xff]  }
 0x2ca   : > { %v8402_v48 = vpop.permute.xlu2 %4222  ;;  %4456 = vrot.lane.b32.xlu2 %v8383_v53, %s6694_s9  ;;  %4358 = vrot.lane.b32.xlu1 %v4319_v27, %s6693_s8  ;;  %v4209_v36 = vrot.slane %v4207_v40, 1  ;;  %v5405_v63 = vsel %vm2731_vm12, %v6533_v0, %v4221_v56  ;;  %v4119_v11 = vsel %vm1353_vm8, %v4114_v49, %v4118_v12  ;;  %v4539_v39 = vshll.u32 %v8383_v53, 16  ;;  %v3864_v40 = vld [vmem:[#allocation3 + $0x20] sm:$0x1] }
 0x2cb   : > { %v3536_v7 = vrot.slane %v3534_v14, 7  ;;  %4744 = vrot.lane.b32.xlu0 %v4643_v58, %s6695_s10  ;;  %v8410_v46 = vpack.c.b16 %v4007_v34, %v4007_v34  ;;  %v5346_v14 = vsel %vm1626_vm10, %v5344_v44, %v5345_v54  ;;  %v6619_v34 = vor.u32 %v6618_v15, %v8385_v42  ;;  %v6433_v58 = vld [vmem:[#allocation3 + $0x60] sm:$0xf0]  ;;  %v8446_v44 = vld [vmem:[#allocation3 + $0x18] sm:$0xff]   ;;  %v3808_v12 = vld [vmem:[#allocation3 + $0x80] sm:$0x1] }
 0x2cc   : > { %v4210_v21 = vor.u32 %v4209_v36, %v4205_v4  ;;  %v6435_v20 = vor.u32 %v6434_v17, %v6433_v58  ;;  %v4809_v54 = vrot.slane %v4520_v26, 1  ;;  %v5016_v49 = vunpack.c.l.b16 %v3864_v40  ;;  %v6457_v40 = vld [vmem:[#allocation3 + $0x78] sm:$0xf0]  ;;  %v8634_v32 = vld [vmem:[#allocation3 + $0x3c] sm:$0xf0] }
 0x2cd   : > { %v3539_v23 = vor.u32 %v3537_v47, %v3536_v7  ;;  %v3541_v45 = vrot.slane %v3536_v7, 4  ;;  %v4212_v52 = vshll.u32 %v8410_v46, 16  ;;  %v5152_v7 = vshll.u32 %v5040_v18, 16 }
 0x2ce   : > { %v4016_v47 = vpack.c.b16 %v4000_v33, %v4000_v33  ;;  %v4808_v28 = vrot.slane %v6619_v34, 1  ;;  %v4320_v56 = vrot.slane %v6435_v20, 1  ;;  %v4537_v36 = vshrl.u32 %v8383_v53, 16  ;;  %v8455_v20 = vpop.permute.xlu0 %4218 }
 0x2cf   : > { %v3540_v55 = vsel %vm6817_vm7, %v3532_v25, %v3539_v23  ;;  %v3701_v60 = vsel %vm6753_vm4, %v3541_v45, %v3700_v59  ;;  %v4214_v37 = vrot.slane %v4212_v52, 1  ;;  %v8433_v59 = vld [vmem:[#allocation3 + $0x60] sm:$0xff]   ;;  %v5154_v42 = vrot.slane %v5152_v7, 1 }
 0x2d0   : > { %3699 = vst.msk [vmem:[#allocation3 + $0xc4] sm:$0xf] %vm280_vm0, %v3540_v55  ;;  %v4321_v15 = vrot.slane %v4016_v47, 1  ;;  %v4123_v6 = vshll.u32 %v8433_v59, 16  ;;  %v4810_v18 = vsel %vm1626_vm10, %v4808_v28, %v4809_v54  ;;  %v4128_v25 = vshll.u32 %v4016_v47, 16  ;;  %v3850_v7 = vld [vmem:[#allocation3 + $0x84] sm:$0xff]  }
 0x2d1   : > { %3702 = vst [vmem:[#allocation3 + $0xc8] sm:$0x1] %v3701_v60  ;;  %v4215_v43 = vsel %vm1353_vm8, %v4210_v21, %v4214_v37  ;;  %v5155_v23 = vsel %vm1353_vm8, %v8213_v51, %v5154_v42  ;;  %v4541_v52 = vrot.slane %v4539_v39, 1  ;;  %v4544_v33 = vshll.u32 %v4520_v26, 16  ;;  %v6470_v26 = vld [vmem:[#allocation3 + $0x18] sm:$0xe] }
 0x2d2   : > { %v4349_v9 = vpop.permute.xlu2 %4348  ;;  %5384 = vrot.lane.b32.xlu1 %v5346_v14, %s6699_s14  ;;  %4246 = vrot.lane.b32.xlu2 %v4215_v43, %s6692_s30  ;;  %v4322_v45 = vsel %vm1626_vm10, %v4320_v56, %v4321_v15  ;;  %v4125_v4 = vrot.slane %v4123_v6, 1  ;;  %v4121_v55 = vshrl.u32 %v8433_v59, 16  ;;  %v4130_v60 = vrot.slane %v4128_v25, 1  ;;  %v6469_v14 = vld [vmem:[#allocation3 + $0x18] sm:$0xf0] }
 0x2d3   : > { %v8425_v27 = vsel %vm2764_vm13, %v5405_v63, %v4349_v9  ;;  %4230 = vrot.lane.b32.xlu0 %v4119_v11, %s6692_s30  ;;  %v4542_v0 = vor.u32 %v4541_v52, %v4537_v36  ;;  %v5032_v63 = vpack.c.b16 %v5016_v49, %v5016_v49  ;;  %v4546_v21 = vrot.slane %v4544_v33, 1  ;;  %v6620_v47 = vld [vmem:[#allocation3 + $0x84] sm:$0xf0]  ;;  %v6621_v49 = vld [vmem:[#allocation3 + $0x84] sm:$0xe] }
 0x2d4   : > { %v4126_v9 = vor.u32 %v4125_v4, %v4121_v55  ;;  %v5051_v37 = vshll.u32 %v8446_v44, 16  ;;  %v4513_v11 = vunpack.c.l.b16 %v3808_v12  ;;  %v6471_v43 = vor.u32 %v6470_v26, %v6469_v14  ;;  %v3834_v26 = vld [vmem:[#allocation3 + $0x24] sm:$0xff]  }
 0x2d5   : > { %v4547_v53 = vsel %vm1353_vm8, %v4542_v0, %v4546_v21  ;;  %v5056_v58 = vshll.u32 %v5032_v63, 16  ;;  %v5049_v28 = vshrl.u32 %v8446_v44, 16  ;;  %v5321_v54 = vrot.slane %v5032_v63, 1  ;;  %v3800_v0 = vld [vmem:[#allocation3 + $0x20] sm:$0x1] }
 0x2d6   : > { %v4131_v34 = vsel %vm1353_vm8, %v4126_v9, %v4130_v60  ;;  %v5053_v17 = vrot.slane %v5051_v37, 1  ;;  %v4529_v15 = vpack.c.b16 %v4513_v11, %v4513_v11  ;;  %v5320_v39 = vrot.slane %v6471_v43, 1 }
 0x2d7   : > { %v5058_v42 = vrot.slane %v5056_v58, 1  ;;  %v5159_v60 = vshll.u32 %v3850_v7, 16  ;;  %v6622_v21 = vor.u32 %v6621_v49, %v6620_v47  ;;  %v4505_v37 = vunpack.c.l.b16 %v3800_v0  ;;  %v6623_v58 = vld [vmem:[#allocation3 + $0x24] sm:$0xf0]  ;;  %v6624_v49 = vld [vmem:[#allocation3 + $0x24] sm:$0xe] }
 0x2d8   : > { %v8458_v6 = vor.u32 %v5053_v17, %v5049_v28  ;;  %v5322_v56 = vsel %vm1626_vm10, %v5320_v39, %v5321_v54  ;;  %v4836_v33 = vrot.slane %v4529_v15, 1  ;;  %v5157_v11 = vshrl.u32 %v3850_v7, 16  ;;  %v6445_v39 = vld [vmem:[#allocation3 + $0x18] sm:$0xf0] }
 0x2d9   : > { %v5161_v14 = vrot.slane %v5159_v60, 1  ;;  %v5347_v17 = vrot.slane %v6622_v21, 1  ;;  %v4521_v54 = vpack.c.b16 %v4505_v37, %v4505_v37  ;;  %v6625_v37 = vor.u32 %v6624_v49, %v6623_v58  ;;  %v6629_v49 = vld [vmem:[#allocation3 + $0x24] sm:$0xf0] }
 0x2da   : > { %4856 = vrot.lane.b32.xlu1 %v4810_v18, %s6697_s12  ;;  %4360 = vrot.lane.b32.xlu2 %v4322_v45, %s6693_s8  ;;  %v3873_v18 = vld [vmem:[#allocation3 + $0x8c] sm:$0x1]  ;;  %v5059_v25 = vsel %vm1353_vm8, %v8458_v6, %v5058_v42  ;;  %v4652_v45 = vshll.u32 %v4529_v15, 16  ;;  %v5407_v58 = vsel %vm2731_vm12, %v8138_v19, %v8402_v48  ;;  %vm9307_vm0 = vcmask 1041408  }
 0x2db   : > { %5256 = vrot.lane.b32.xlu0 %v5155_v23, %s6696_s11  ;;  %v6458_v23 = vld [vmem:[#allocation3 + $0x78] sm:$0xe]  ;;  %v5025_v4 = vunpack.c.l.b16 %v3873_v18  ;;  %v4812_v60 = vrot.slane %v4521_v54, 1 }
 0x2dc   : > { %v6459_v52 = vor.u32 %v6458_v23, %v6457_v40  ;;  %v4654_v55 = vrot.slane %v4652_v45, 1  ;;  %v3865_v40 = vld [vmem:[#allocation3 + $0x2c] sm:$0x1]  ;;  %v6446_v18 = vld [vmem:[#allocation3 + $0x18] sm:$0xe]  ;;  %v3787_v23 = vld [vmem:[#allocation3 + $0x84] sm:$0xff]  }
 0x2dd   : > { %v5041_v9 = vpack.c.b16 %v5025_v4, %v5025_v4  ;;  %v6626_v45 = vld [vmem:[#allocation3 + $0x84] sm:$0xf0]  ;;  %v5017_v4 = vunpack.c.l.b16 %v3865_v40 }
 0x2de   : > { %v4835_v63 = vrot.slane %v6459_v52, 1 }
 0x2df   : > { %v5164_v43 = vshll.u32 %v5041_v9, 16  ;;  %v5348_v28 = vrot.slane %v5041_v9, 1 }
 0x2e0   : > { %v4837_v12 = vsel %vm1626_vm10, %v4835_v63, %v4836_v33  ;;  %v8488_v33 = vpop.permute.xlu1 %4346  ;;  %v5063_v63 = vshll.u32 %v3834_v26, 16 }
 0x2e1   : > { %v5166_v15 = vrot.slane %v5164_v43, 1  ;;  %v6627_v43 = vld [vmem:[#allocation3 + $0x84] sm:$0xe] }
 0x2e2   : > { %4232 = vrot.lane.b32.xlu1 %v4131_v34, %s6692_s30  ;;  %4968 = vrot.lane.b32.xlu2 %v8446_v44, %s6698_s13  ;;  %v6534_v34 = vld [vmem:[#allocation3] sm:$0xff]  }
 0x2e3   : > { %4728 = vrot.lane.b32.xlu0 %v4547_v53, %s6695_s10  ;;  %v5401_v53 = vsel %vm2731_vm12, %v6534_v34, %v8354_v61  ;;  %v5349_v61 = vsel %vm1626_vm10, %v5347_v17, %v5348_v28 }
 0x2ea   : > { %5368 = vrot.lane.b32.xlu1 %v5322_v56, %s6699_s14  ;;  %4474 = vrot.lane.b32.xlu2 %v8187_v22, %s6694_s9  ;;  %v4655_v22 = vsel %vm1353_vm8, %v8213_v51, %v4654_v55  ;;  %v5162_v51 = vor.u32 %v5161_v14, %v5157_v11  ;;  %v5065_v14 = vrot.slane %v5063_v63, 1  ;;  %v6535_v63 = vld [vmem:[#allocation3 + $0x30] sm:$0xff]  }
 0x2eb   : > { %5240 = vrot.lane.b32.xlu0 %v5059_v25, %s6696_s11  ;;  %v6447_v25 = vor.u32 %v6446_v18, %v6445_v39  ;;  %v4659_v39 = vshll.u32 %v3787_v23, 16  ;;  %v6628_v18 = vor.u32 %v6627_v43, %v6626_v45  ;;  %v3801_v43 = vld [vmem:[#allocation3 + $0x2c] sm:$0x1] }
 0x2ec   : > { %v5167_v56 = vsel %vm1353_vm8, %v5162_v51, %v5166_v15 }
 0x2ed   : > { %v8467_v36 = vpop.permute.xlu0 %4236  ;;  %v4811_v9 = vrot.slane %v6447_v25, 1  ;;  %v4661_v48 = vrot.slane %v4659_v39, 1  ;;  %v3771_v25 = vld [vmem:[#allocation3 + $0x24] sm:$0xff]  }
 0x2ef   : > { %v4813_v21 = vsel %vm1626_vm10, %v4811_v9, %v4812_v60  ;;  %v4657_v60 = vshrl.u32 %v3787_v23, 16 }
 0x2f2   : > { %4874 = vrot.lane.b32.xlu1 %v4837_v12, %s6697_s12  ;;  %4986 = vrot.lane.b32.xlu2 %v3850_v7, %s6698_s13  ;;  %v4556_v7 = vshll.u32 %v4521_v54, 16  ;;  %v5033_v12 = vpack.c.b16 %v5017_v4, %v5017_v4  ;;  %v5323_v54 = vrot.slane %v6625_v37, 1 }
 0x2f3   : > { %4746 = vrot.lane.b32.xlu0 %v4655_v22, %s6695_s10  ;;  %v3809_v22 = vld [vmem:[#allocation3 + $0x8c] sm:$0x1] }
 0x2f4   : > { %v4558_v0 = vrot.slane %v4556_v7, 1  ;;  %v5068_v11 = vshll.u32 %v5033_v12, 16 }
 0x2f5   : > { %v4345_v47 = vpop.permute.xlu0 %4344 }
 0x2f6   : > { %v8478_v42 = vsel %vm2764_vm13, %v5401_v53, %v4345_v47  ;;  %v5061_v53 = vshrl.u32 %v3834_v26, 16  ;;  %v4514_v47 = vunpack.c.l.b16 %v3809_v22  ;;  %v5070_v40 = vrot.slane %v5068_v11, 1 }
 0x2f7   : > { %v4662_v22 = vor.u32 %v4661_v48, %v4657_v60 }
 0x2f8   : > { %v5066_v15 = vor.u32 %v5065_v14, %v5061_v53  ;;  %v6484_v53 = vld [vmem:[#allocation3 + $0x90] sm:$0xf0] }
 0x2fa   : > { %5386 = vrot.lane.b32.xlu1 %v5349_v61, %s6699_s14  ;;  %4458 = vrot.lane.b32.xlu2 %v8446_v44, %s6694_s9  ;;  %v4559_v44 = vsel %vm1353_vm8, %v8458_v6, %v4558_v0  ;;  %v5324_v6 = vrot.slane %v5033_v12, 1  ;;  %v3874_v61 = vld [vmem:[#allocation3 + $0x98] sm:$0x1]  ;;  %v5071_v19 = vsel %vm1353_vm8, %v5066_v15, %v5070_v40  ;;  %v4838_v12 = vrot.slane %v6628_v18, 1 }
 0x2fb   : > { %5258 = vrot.lane.b32.xlu0 %v5167_v56, %s6696_s11  ;;  %v5026_v7 = vunpack.c.l.b16 %v3874_v61  ;;  %v4563_v40 = vshll.u32 %v3771_v25, 16 }
 0x2fc   : > { %v8486_v52 = vpop.permute.xlu2 %4240  ;;  %v5325_v56 = vsel %vm1626_vm10, %v5323_v54, %v5324_v6  ;;  %v6630_v54 = vld [vmem:[#allocation3 + $0x24] sm:$0xe]  ;;  %v4506_v6 = vunpack.c.l.b16 %v3801_v43 }
 0x2fd   : > { %v4225_v55 = vpop.permute.xlu0 %4224  ;;  %v6631_v48 = vor.u32 %v6630_v54, %v6629_v49 }
 0x2fe   : > { %v5409_v9 = vsel %vm2731_vm12, %v6535_v63, %v4225_v55  ;;  %v4522_v18 = vpack.c.b16 %v4506_v6, %v4506_v6  ;;  %v4561_v63 = vshrl.u32 %v3771_v25, 16  ;;  %v8544_v6 = vld [vmem:[#allocation3 + $0x9c] sm:$0xff]  }
 0x2ff   : > { %v4814_v49 = vrot.slane %v6631_v48, 1 }
 0x302   : > { %4858 = vrot.lane.b32.xlu1 %v4813_v21, %s6697_s12  ;;  %4970 = vrot.lane.b32.xlu2 %v3834_v26, %s6698_s13  ;;  %v4530_v26 = vpack.c.b16 %v4514_v47, %v4514_v47  ;;  %v6485_v47 = vld [vmem:[#allocation3 + $0x90] sm:$0xe] }
 0x303   : > { %4730 = vrot.lane.b32.xlu0 %v4559_v44, %s6695_s10  ;;  %v5042_v44 = vpack.c.b16 %v5026_v7, %v5026_v7  ;;  %v6486_v55 = vor.u32 %v6485_v47, %v6484_v53  ;;  %v4565_v7 = vrot.slane %v4563_v40, 1 }
 0x304   : > { %v8496_v34 = vpop.permute.xlu2 %4354  ;;  %v8501_v28 = vpop.permute.xlu1 %4238  ;;  %v4664_v0 = vshll.u32 %v4530_v26, 16  ;;  %v4839_v21 = vrot.slane %v4530_v26, 1 }
 0x305   : > { %v4351_v17 = vpop.permute.xlu0 %4350  ;;  %v5351_v39 = vrot.slane %v5042_v44, 1  ;;  %v5350_v26 = vrot.slane %v6486_v55, 1  ;;  %v6473_v55 = vld [vmem:[#allocation3 + $0x30] sm:$0xe] }
 0x306   : > { %v8504_v51 = vsel %vm2764_vm13, %v5407_v58, %v4351_v17  ;;  %v4666_v14 = vrot.slane %v4664_v0, 1  ;;  %v4840_v11 = vsel %vm1626_vm10, %v4838_v12, %v4839_v21  ;;  %v5176_v58 = vshll.u32 %v5042_v44, 16  ;;  %v8535_v44 = vld [vmem:[#allocation3 + $0x30] sm:$0xff]  }
 0x308   : > { %v5178_v61 = vrot.slane %v5176_v58, 1 }
 0x30a   : > { %5370 = vrot.lane.b32.xlu1 %v5325_v56, %s6699_s14  ;;  %4476 = vrot.lane.b32.xlu2 %v3787_v23, %s6694_s9  ;;  %v4667_v23 = vsel %vm1353_vm8, %v4662_v22, %v4666_v14  ;;  %v3866_v56 = vld [vmem:[#allocation3 + $0x38] sm:$0x1]  ;;  %v4815_v22 = vrot.slane %v4522_v18, 1  ;;  %v4566_v14 = vor.u32 %v4565_v7, %v4561_v63 }
 0x30b   : > { %5242 = vrot.lane.b32.xlu0 %v5071_v19, %s6696_s11  ;;  %v5352_v19 = vsel %vm1626_vm10, %v5350_v26, %v5351_v39  ;;  %v5018_v60 = vunpack.c.l.b16 %v3866_v56  ;;  %v8546_v39 = vld [vmem:[#allocation3 + $0x9c] sm:$0xf0]  ;;  %v6411_v26 = vld [vmem:[#allocation3 + $0x90] sm:$0xff]  }
 0x30c   : > { %v8511_v4 = vpop.permute.xlu2 %4472  ;;  %v4353_v45 = vpop.permute.xlu1 %4352  ;;  %v4816_v47 = vsel %vm1626_vm10, %v4814_v49, %v4815_v22  ;;  %v4671_v63 = vshll.u32 %v6411_v26, 16  ;;  %v6460_v49 = vld [vmem:[#allocation3 + $0x90] sm:$0xf0] }
 0x30d   : > { %v8515_v37 = vsel %vm2764_vm13, %v5409_v9, %v4353_v45  ;;  %v4568_v9 = vshll.u32 %v4522_v18, 16  ;;  %v6536_v45 = vld [vmem:[#allocation3 + $0x78] sm:$0xff]   ;;  %v5034_v53 = vpack.c.b16 %v5018_v60, %v5018_v60 }
 0x30e   : > { %v5421_v12 = vsel %vm2731_vm12, %v6536_v45, %v8467_v36  ;;  %v3875_v45 = vld [vmem:[#allocation3 + $0xa4] sm:$0x1] }
 0x30f   : > { %v4570_v43 = vrot.slane %v4568_v9, 1  ;;  %v5080_v54 = vshll.u32 %v5034_v53, 16 }
 0x311   : > { %v4571_v36 = vsel %vm1353_vm8, %v4566_v14, %v4570_v43  ;;  %v5082_v7 = vrot.slane %v5080_v54, 1  ;;  %v4673_v14 = vrot.slane %v4671_v63, 1  ;;  %v5183_v54 = vshll.u32 %v8544_v6, 16 }
 0x312   : > { %4876 = vrot.lane.b32.xlu1 %v4840_v11, %s6697_s12  ;;  %4988 = vrot.lane.b32.xlu2 %v8275_v5, %s6698_s13  ;;  %v5179_v5 = vsel %vm1353_vm8, %v8295_v8, %v5178_v61  ;;  %v3810_v11 = vld [vmem:[#allocation3 + $0x98] sm:$0x1] }
 0x313   : > { %4748 = vrot.lane.b32.xlu0 %v4667_v23, %s6695_s10  ;;  %v5075_v23 = vshll.u32 %v8535_v44, 16  ;;  %v4515_v58 = vunpack.c.l.b16 %v3810_v11  ;;  %v5027_v11 = vunpack.c.l.b16 %v3875_v45 }
 0x314   : > { %v8523_v17 = vpop.permute.xlu2 %4984  ;;  %v8525_v15 = vpop.permute.xlu1 %4226 }
 0x315   : > { %v5077_v40 = vrot.slane %v5075_v23, 1  ;;  %v4531_v48 = vpack.c.b16 %v4515_v58, %v4515_v58  ;;  %v4669_v23 = vshrl.u32 %v6411_v26, 16  ;;  %v5043_v63 = vpack.c.b16 %v5027_v11, %v5027_v11 }
 0x317   : > { %v5188_v11 = vshll.u32 %v5043_v63, 16 }
 0x31a   : > { %5388 = vrot.lane.b32.xlu1 %v5352_v19, %s6699_s14  ;;  %4460 = vrot.lane.b32.xlu2 %v3771_v25, %s6694_s9  ;;  %v6472_v25 = vld [vmem:[#allocation3 + $0x30] sm:$0xf0]  ;;  %v5327_v19 = vrot.slane %v5034_v53, 1  ;;  %v6461_v53 = vld [vmem:[#allocation3 + $0x90] sm:$0xe] }
 0x31b   : > { %5260 = vrot.lane.b32.xlu0 %v5179_v5, %s6696_s11  ;;  %v6474_v61 = vor.u32 %v6473_v55, %v6472_v25  ;;  %v5073_v5 = vshrl.u32 %v8535_v44, 16  ;;  %v6462_v25 = vor.u32 %v6461_v53, %v6460_v49  ;;  %v8582_v53 = vld [vmem:[#allocation3 + $0x3c] sm:$0xff]  }
 0x31c   : > { %v4229_v0 = vpop.permute.xlu2 %4228  ;;  %v4365_v21 = vpop.permute.xlu1 %4364 }
 0x31d   : > { %v8538_v8 = vsel %vm2764_vm13, %v5421_v12, %v4365_v21  ;;  %v5326_v60 = vrot.slane %v6474_v61, 1  ;;  %v8556_v9 = vor.u32 %v5077_v40, %v5073_v5  ;;  %v4676_v21 = vshll.u32 %v4531_v48, 16  ;;  %v6633_v61 = vld [vmem:[#allocation3 + $0x9c] sm:$0xe]  ;;  %v3802_v5 = vld [vmem:[#allocation3 + $0x38] sm:$0x1] }
 0x31f   : > { %v5328_v12 = vsel %vm1626_vm10, %v5326_v60, %v5327_v19  ;;  %v5083_v22 = vsel %vm1353_vm8, %v8556_v9, %v5082_v7  ;;  %v4678_v55 = vrot.slane %v4676_v21, 1  ;;  %v4842_v19 = vrot.slane %v4531_v48, 1 }
 0x320   : > { %v4674_v60 = vor.u32 %v4673_v14, %v4669_v23  ;;  %v4507_v21 = vunpack.c.l.b16 %v3802_v5  ;;  %v5181_v14 = vshrl.u32 %v8544_v6, 16 }
 0x322   : > { %4860 = vrot.lane.b32.xlu1 %v4816_v47, %s6697_s12  ;;  %4972 = vrot.lane.b32.xlu2 %v8535_v44, %s6698_s13  ;;  %v5413_v47 = vsel %vm2731_vm12, %v8342_v16, %v4229_v0  ;;  %v4841_v16 = vrot.slane %v6462_v25, 1  ;;  %v4679_v45 = vsel %vm1353_vm8, %v4674_v60, %v4678_v55  ;;  %v4523_v55 = vpack.c.b16 %v4507_v21, %v4507_v21  ;;  %v6448_v60 = vld [vmem:[#allocation3 + $0x30] sm:$0xf0]  ;;  %v8606_v21 = vld [vmem:[#allocation3 + $0x9c] sm:$0xf0] }
 0x323   : > { %4732 = vrot.lane.b32.xlu0 %v4571_v36, %s6695_s10 }
 0x324   : > { %v8551_v56 = vpop.permute.xlu2 %4456  ;;  %v8565_v43 = vpop.permute.xlu1 %4872  ;;  %v4843_v49 = vsel %vm1626_vm10, %v4841_v16, %v4842_v19  ;;  %v3867_v19 = vld [vmem:[#allocation3 + $0x44] sm:$0x1] }
 0x325   : > { %v8553_v18 = vpop.permute.xlu0 %4242 }
 0x32a   : > { %5372 = vrot.lane.b32.xlu1 %v5328_v12, %s6699_s14  ;;  %4366 = vrot.lane.b32.xlu2 %v8281_v57, %s6693_s8  ;;  %v1027_v57 = vld [vmem:[%s9215_s4 + $0x10] sm:$0x3]  ;;  %v5185_v12 = vrot.slane %v5183_v54, 1 }
 0x32b   : > { %5244 = vrot.lane.b32.xlu0 %v5083_v22, %s6696_s11  ;;  %v5665_v7 = vunpack.c.l.b16 %v1027_v57  ;;  %v6634_v22 = vor.u32 %v6633_v61, %v8546_v39  ;;  %v5354_v61 = vrot.slane %v5043_v63, 1  ;;  %v5190_v57 = vrot.slane %v5188_v11, 1  ;;  %v6449_v63 = vld [vmem:[#allocation3 + $0x30] sm:$0xe] }
 0x32c   : > { %v8569_v58 = vpop.permute.xlu2 %4246  ;;  %v5186_v39 = vor.u32 %v5185_v12, %v5181_v14  ;;  %v3791_v12 = vld [vmem:[#allocation3 + $0x9c] sm:$0xff]  }
 0x32d   : > { %9305 = vst [vmem:[#allocation17_spill] sm:$0xff] %v8569_v58  ;;  %v4357_v36 = vpop.permute.xlu0 %4356  ;;  %v5668_v0 = vpack.c.b16 %v5665_v7, %v5665_v7  ;;  %v5353_v54 = vrot.slane %v6634_v22, 1  ;;  %v4580_v7 = vshll.u32 %v4523_v55, 16  ;;  %v6450_v22 = vor.u32 %v6449_v63, %v6448_v60 }
 0x32e   : > { %v8576_v40 = vsel %vm2764_vm13, %v5413_v47, %v4357_v36  ;;  %v6635_v47 = vld [vmem:[#allocation3 + $0x3c] sm:$0xf0]  ;;  %v5191_v5 = vsel %vm1353_vm8, %v5186_v39, %v5190_v57  ;;  %v5087_v39 = vshll.u32 %v8582_v53, 16 }
 0x32f   : > { %9306 = vst [vmem:[#allocation7_spill] sm:$0xff] %v8576_v40  ;;  %v5704_v48 = vsel %vm9307_vm0, %v5668_v0, 0  ;;  %v5355_v16 = vsel %vm1626_vm10, %v5353_v54, %v5354_v61  ;;  %v6111_v0 = vld [vmem:[%s9215_s4] sm:$0xff]  ;;  %v4582_v11 = vrot.slane %v4580_v7, 1  ;;  %v6636_v54 = vld [vmem:[#allocation3 + $0x3c] sm:$0xe] }
 0x330   : > { %6496 = vmatpush.bf16.msra.mxu3 %v5704_v48  ;;  %5711 = vmatpush.bf16.msra.mxu1 %v5704_v48  ;;  %v4817_v57 = vrot.slane %v6450_v22, 1  ;;  %v6637_v60 = vor.u32 %v6636_v54, %v6635_v47  ;;  %v3876_v54 = vld [vmem:[#allocation3 + $0xb0] sm:$0x1] }
 0x332   : > { %4750 = vrot.lane.b32.xlu1 %v4679_v45, %s6695_s10  ;;  %4878 = vrot.lane.b32.xlu2 %v4843_v49, %s6697_s12  ;;  %v5019_v45 = vunpack.c.l.b16 %v3867_v19  ;;  %v4583_v19 = vsel %vm1353_vm8, %v8556_v9, %v4582_v11  ;;  %v5329_v11 = vrot.slane %v6637_v60, 1 }
 0x333   : > { %4478 = vrot.lane.b32.xlu0 %v6411_v26, %s6694_s9  ;;  %v6112_v26 = vld [vmem:[%s9215_s4 + $0x8] sm:$0xff] }
 0x334   : > { %v8588_v23 = vpop.permute.xlu1 %4244  ;;  %v8590_v25 = vpop.permute.xlu2 %4360  ;;  %6497 = vmatpush.bf16.msra.mxu3 %v6112_v26  ;;  %5712 = vmatpush.bf16.msra.mxu1 %v6112_v26  ;;  %v5035_v61 = vpack.c.b16 %v5019_v45, %v5019_v45 }
 0x335   : > { %v8592_v36 = vpop.permute.xlu0 %4362 }
 0x336   : > { %v5092_v7 = vshll.u32 %v5035_v61, 16 }
 0x338   : > { %6498 = vmatpush.bf16.msra.mxu3 %v6111_v0  ;;  %5713 = vmatpush.bf16.msra.mxu1 %v6111_v0  ;;  %v5094_v47 = vrot.slane %v5092_v7, 1 }
 0x33a   : > { %5262 = vrot.lane.b32.xlu1 %v5191_v5, %s6696_s11  ;;  %5390 = vrot.lane.b32.xlu2 %v5355_v16, %s6699_s14  ;;  %v5089_v5 = vrot.slane %v5087_v39, 1  ;;  %v3811_v16 = vld [vmem:[#allocation3 + $0xa4] sm:$0x1]  ;;  %v5330_v39 = vrot.slane %v5035_v61, 1  ;;  %v6440_v61 = vld [vmem:[#allocation3 + $0x90] sm:$0xe] }
 0x33b   : > { %4990 = vrot.lane.b32.xlu0 %v8544_v6, %s6698_s13  ;;  %v4818_v6 = vrot.slane %v4523_v55, 1  ;;  %v5085_v55 = vshrl.u32 %v8582_v53, 16  ;;  %v4516_v0 = vunpack.c.l.b16 %v3811_v16  ;;  %v5028_v16 = vunpack.c.l.b16 %v3876_v54 }
 0x33c   : > { %v8608_v49 = vpop.permute.xlu1 %4358  ;;  %v8610_v48 = vpop.permute.xlu2 %4968 }
 0x33d   : > { %9308 = vst [vmem:[#allocation24_spill] sm:$0xff] %v8608_v49  ;;  %v8612_v14 = vpop.permute.xlu0 %4744  ;;  %v4819_v26 = vsel %vm1626_vm10, %v4817_v57, %v4818_v6  ;;  %v5090_v22 = vor.u32 %v5089_v5, %v5085_v55  ;;  %v4683_v6 = vshll.u32 %v3791_v12, 16  ;;  %v4532_v57 = vpack.c.b16 %v4516_v0, %v4516_v0  ;;  %v6639_v0 = vld [vmem:[#allocation3 + $0x9c] sm:$0xe] }
 0x33e   : > { %v4681_v55 = vshrl.u32 %v3791_v12, 16  ;;  %v8644_v54 = vpack.c.b16 %v5028_v16, %v5028_v16 }
 0x33f   : > { %v4685_v49 = vrot.slane %v4683_v6, 1  ;;  %v4688_v7 = vshll.u32 %v4532_v57, 16  ;;  %v4333_v6 = vrot.slane %v8289_v35, 1 }
 0x340   : > { %v5200_v40 = vshll.u32 %v8644_v54, 16 }
 0x342   : > { %4734 = vrot.lane.b32.xlu1 %v4583_v19, %s6695_s10  ;;  %4862 = vrot.lane.b32.xlu2 %v4819_v26, %s6697_s12  ;;  %v6439_v19 = vld [vmem:[#allocation3 + $0x90] sm:$0xf0]  ;;  %v5331_v26 = vsel %vm1626_vm10, %v5329_v11, %v5330_v39  ;;  %v8641_v39 = vld [vmem:[#allocation3 + $0xa8] sm:$0xff]  }
 0x343   : > { %4462 = vrot.lane.b32.xlu0 %v8535_v44, %s6694_s9  ;;  %v5095_v44 = vsel %vm1353_vm8, %v5090_v22, %v5094_v47  ;;  %v6441_v60 = vor.u32 %v6440_v61, %v6439_v19  ;;  %v4686_v47 = vor.u32 %v4685_v49, %v4681_v55  ;;  %v3803_v19 = vld [vmem:[#allocation3 + $0x44] sm:$0x1] }
 0x344   : > { %v8623_v63 = vpop.permute.xlu1 %5384  ;;  %v8625_v45 = vpop.permute.xlu2 %4474  ;;  %v4508_v16 = vunpack.c.l.b16 %v3803_v19 }
 0x345   : > { %v8627_v9 = vpop.permute.xlu0 %4230 }
 0x346   : > { %9309 = vst [vmem:[#allocation26_spill] sm:$0xff] %v8627_v9  ;;  %v6640_v9 = vor.u32 %v6639_v0, %v8606_v21  ;;  %v4587_v0 = vshll.u32 %v8632_v50, 16  ;;  %v4524_v19 = vpack.c.b16 %v4508_v16, %v4508_v16 }
 0x34a   : > { %5246 = vrot.lane.b32.xlu1 %v5095_v44, %s6696_s11  ;;  %5374 = vrot.lane.b32.xlu2 %v5331_v26, %s6699_s14  ;;  %v4332_v44 = vrot.slane %v6441_v60, 1  ;;  %v5195_v26 = vshll.u32 %v8641_v39, 16 }
 0x34b   : > { %4974 = vrot.lane.b32.xlu0 %v8582_v53, %s6698_s13  ;;  %v4690_v53 = vrot.slane %v4688_v7, 1  ;;  %v4845_v7 = vrot.slane %v4532_v57, 1 }
 0x34c   : > { %v4857_v5 = vpop.permute.xlu1 %4856  ;;  %v8639_v22 = vpop.permute.xlu2 %4986  ;;  %v4334_v61 = vsel %vm1626_vm10, %v4332_v44, %v4333_v6  ;;  %v5197_v49 = vrot.slane %v5195_v26, 1  ;;  %v5465_v6 = vsel %vm2797_vm14, %v8478_v42, %v8551_v56  ;;  %v5202_v44 = vrot.slane %v5200_v40, 1  ;;  %v6487_v56 = vld [vmem:[#allocation3 + $0xa8] sm:$0xf0] }
 0x34d   : > { %v5257_v11 = vpop.permute.xlu0 %5256  ;;  %v4691_v58 = vsel %vm1353_vm8, %v4686_v47, %v4690_v53  ;;  %v5193_v47 = vshrl.u32 %v8641_v39, 16  ;;  %v3868_v53 = vld [vmem:[#allocation3 + $0x50] sm:$0x1] }
 0x34f   : > { %v8670_v57 = vor.u32 %v5197_v49, %v5193_v47  ;;  %v6488_v49 = vld [vmem:[#allocation3 + $0xa8] sm:$0xe]  ;;  %v5357_v47 = vrot.slane %v8644_v54, 1 }
 0x352   : > { %4480 = vrot.lane.b32.xlu1 %v3791_v12, %s6694_s9  ;;  %4752 = vrot.lane.b32.xlu2 %v4691_v58, %s6695_s10  ;;  %v4844_v12 = vrot.slane %v6640_v9, 1 }
 0x353   : > { %4368 = vrot.lane.b32.xlu0 %v4334_v61, %s6693_s8  ;;  %v5020_v61 = vunpack.c.l.b16 %v3868_v53 }
 0x354   : > { %v4233_v35 = vpop.permute.xlu1 %4232  ;;  %v8656_v21 = vpop.permute.xlu2 %4458 }
 0x355   : > { %v5417_v60 = vsel %vm2731_vm12, %v8433_v59, %v4233_v35  ;;  %v4729_v55 = vpop.permute.xlu0 %4728  ;;  %v5203_v35 = vsel %vm1353_vm8, %v8670_v57, %v5202_v44  ;;  %v5036_v44 = vpack.c.b16 %v5020_v61, %v5020_v61 }
 0x356   : > { %v5449_v58 = vsel %vm2764_vm13, %v5417_v60, %v8590_v25  ;;  %v5497_v26 = vsel %vm2830_vm15, %v5465_v6, %v4729_v55  ;;  %v4589_v25 = vrot.slane %v4587_v0, 1  ;;  %v6489_v60 = vor.u32 %v6488_v49, %v6487_v56  ;;  %v8693_v6 = vld [vmem:[#allocation3 + $0x48] sm:$0xff]  }
 0x357   : > { %v5481_v59 = vsel %vm2797_vm14, %v5449_v58, %v8511_v4  ;;  %v5529_v40 = vsel %vm2863_vm1, %v5497_v26, %v4857_v5  ;;  %v4846_v4 = vsel %vm1626_vm10, %v4844_v12, %v4845_v7  ;;  %v4585_v55 = vshrl.u32 %v8632_v50, 16 }
 0x358   : > { %v5513_v9 = vsel %vm2830_vm15, %v5481_v59, %v8612_v14  ;;  %v4592_v12 = vshll.u32 %v4524_v19, 16  ;;  %v5356_v59 = vrot.slane %v6489_v60, 1  ;;  %v5104_v54 = vshll.u32 %v5036_v44, 16 }
 0x359   : > { %v5545_v42 = vsel %vm2863_vm1, %v5513_v9, %v8565_v43  ;;  %v5099_v9 = vshll.u32 %v8693_v6, 16 }
 0x35a   : > { %4992 = vrot.lane.b32.xlu1 %v8641_v39, %s6698_s13  ;;  %v5577_v14 = vsel %vm2896_vm2, %v5545_v42, %v8523_v17  ;;  %5264 = vrot.lane.b32.xlu2 %v5203_v35, %s6696_s11  ;;  %v5561_v17 = vsel %vm2896_vm2, %v5529_v40, %v8610_v48  ;;  %v4594_v26 = vrot.slane %v4592_v12, 1  ;;  %v5358_v48 = vsel %vm1626_vm10, %v5356_v59, %v5357_v47  ;;  %v6475_v12 = vld [vmem:[#allocation3 + $0x48] sm:$0xf0] }
 0x35b   : > { %4880 = vrot.lane.b32.xlu0 %v4846_v4, %s6697_s12  ;;  %v5609_v43 = vsel %vm2929_vm3, %v5577_v14, %v5257_v11  ;;  %v6642_v11 = vld [vmem:[#allocation3 + $0x3c] sm:$0xe]  ;;  %v5101_v40 = vrot.slane %v5099_v9, 1  ;;  %v4336_v9 = vrot.slane %v8332_v2, 1 }
 0x35c   : > { %v5369_v16 = vpop.permute.xlu1 %5368  ;;  %v5641_v5 = vsel %vm2962_vm6, %v5609_v43, %v8623_v63  ;;  %v8689_v7 = vpop.permute.xlu2 %4970  ;;  %v4590_v63 = vor.u32 %v4589_v25, %v4585_v55  ;;  %v6643_v56 = vor.u32 %v6642_v11, %v8634_v32  ;;  %v5419_v25 = vsel %vm2731_vm12, %v8145_v62, %v8377_v31  ;;  %v6645_v4 = vld [vmem:[#allocation3 + $0x9c] sm:$0xe]  ;;  %v3812_v62 = vld [vmem:[#allocation3 + $0xb0] sm:$0x1]  ;;  %v3858_v11 = vld [vmem:[#allocation3 + $0xb4] sm:$0xff]  }
 0x35d   : > { %6097 = vmatmul.msk.bf16.vlgmr.msra.gmra.mxu3 %vm3010_vm11, %v5641_v5  ;;  %v5241_v0 = vpop.permute.xlu0 %5240  ;;  %v5097_v32 = vshrl.u32 %v8693_v6, 16  ;;  %v5106_v5 = vrot.slane %v5104_v54, 1  ;;  %v6646_v55 = vor.u32 %v6645_v4, %v8320_v41  ;;  %v3877_v4 = vld [vmem:[#allocation3 + $0xbc] sm:$0x1] }
 0x35e   : > { %v5593_v58 = vsel %vm2929_vm3, %v5561_v17, %v5241_v0  ;;  %v4595_v42 = vsel %vm1353_vm8, %v4590_v63, %v4594_v26  ;;  %v4820_v49 = vrot.slane %v6643_v56, 1  ;;  %v6476_v0 = vld [vmem:[#allocation3 + $0x48] sm:$0xe] }
 0x35f   : > { %v5625_v53 = vsel %vm2962_vm6, %v5593_v58, %v5369_v16  ;;  %v4821_v16 = vrot.slane %v4524_v19, 1  ;;  %v8718_v31 = vor.u32 %v5101_v40, %v5097_v32  ;;  %v4517_v19 = vunpack.c.l.b16 %v3812_v62  ;;  %v6647_v58 = vld [vmem:[#allocation3 + $0xb4] sm:$0xf0] }
 0x360   : > { %6089 = vmatmul.msk.bf16.vlgmr.msra.gmra.mxu1 %vm3010_vm11, %v5625_v53  ;;  %v6477_v47 = vor.u32 %v6476_v0, %v6475_v12  ;;  %v4335_v26 = vrot.slane %v6646_v55, 1 }
 0x361   : > { %v4822_v17 = vsel %vm1626_vm10, %v4820_v49, %v4821_v16  ;;  %v4533_v56 = vpack.c.b16 %v4517_v19, %v4517_v19  ;;  %v5029_v49 = vunpack.c.l.b16 %v3877_v4 }
 0x362   : > { %4464 = vrot.lane.b32.xlu1 %v8632_v50, %s6694_s9  ;;  %4736 = vrot.lane.b32.xlu2 %v4595_v42, %s6695_s10  ;;  %v5451_v50 = vsel %vm2764_vm13, %v5419_v25, %v8592_v36  ;;  %v5332_v25 = vrot.slane %v6477_v47, 1  ;;  %v4337_v40 = vsel %vm1626_vm10, %v4335_v26, %v4336_v9  ;;  %v5205_v26 = vshrl.u32 %v3858_v11, 16 }
 0x363   : > { %5392 = vrot.lane.b32.xlu0 %v5358_v48, %s6699_s14  ;;  %v5483_v43 = vsel %vm2797_vm14, %v5451_v50, %v8625_v45  ;;  %v5107_v45 = vsel %vm1353_vm8, %v8718_v31, %v5106_v5  ;;  %v5333_v48 = vrot.slane %v5036_v44, 1  ;;  %v6464_v50 = vld [vmem:[#allocation3 + $0xa8] sm:$0xe]  ;;  %v5403_v44 = vsel %vm2731_vm12, %v7963_v10, %v8455_v20 }
 0x364   : > { %v4875_v61 = vpop.permute.xlu1 %4874  ;;  %v8712_v35 = vpop.permute.xlu2 %4476  ;;  %v5435_v16 = vsel %vm2764_vm13, %v5403_v44, %v8488_v33  ;;  %v4848_v62 = vrot.slane %v4533_v56, 1  ;;  %v5045_v10 = vpack.c.b16 %v5029_v49, %v5029_v49  ;;  %v8772_v44 = vld [vmem:[#allocation3 + $0xb4] sm:$0xff]  }
 0x365   : > { %v4747_v14 = vpop.permute.xlu0 %4746  ;;  %v5467_v55 = vsel %vm2797_vm14, %v5435_v16, %v8656_v21  ;;  %v8758_v21 = vld [vmem:[#allocation3 + $0x54] sm:$0xff]  }
 0x366   : > { %v5515_v60 = vsel %vm2830_vm15, %v5483_v43, %v4747_v14  ;;  %v4700_v14 = vshll.u32 %v4533_v56, 16  ;;  %v6648_v43 = vld [vmem:[#allocation3 + $0xb4] sm:$0xe]  ;;  %v5212_v9 = vshll.u32 %v5045_v10, 16 }
 0x367   : > { %v5547_v36 = vsel %vm2863_vm1, %v5515_v60, %v4875_v61  ;;  %v6463_v61 = vld [vmem:[#allocation3 + $0xa8] sm:$0xf0]  ;;  %v6649_v19 = vor.u32 %v6648_v43, %v6647_v58  ;;  %v6651_v16 = vld [vmem:[#allocation3 + $0x54] sm:$0xe] }
 0x368   : > { %v5579_v53 = vsel %vm2896_vm2, %v5547_v36, %v8639_v22  ;;  %v5334_v22 = vsel %vm1626_vm10, %v5332_v25, %v5333_v48  ;;  %v6465_v2 = vor.u32 %v6464_v50, %v6463_v61  ;;  %v4702_v12 = vrot.slane %v4700_v14, 1  ;;  %v3869_v50 = vld [vmem:[#allocation3 + $0x5c] sm:$0x1]  ;;  %v6452_v14 = vld [vmem:[#allocation3 + $0x48] sm:$0xe] }
 0x369   : > { %v5359_v56 = vrot.slane %v6649_v19, 1  ;;  %v5214_v4 = vrot.slane %v5212_v9, 1  ;;  %v5109_v9 = vshrl.u32 %v8758_v21, 16 }
 0x36a   : > { %4976 = vrot.lane.b32.xlu1 %v8693_v6, %s6698_s13  ;;  %5248 = vrot.lane.b32.xlu2 %v5107_v45, %s6696_s11  ;;  %v3804_v45 = vld [vmem:[#allocation3 + $0x50] sm:$0x1]  ;;  %v4703_v33 = vsel %vm1353_vm8, %v8670_v57, %v4702_v12  ;;  %v5360_v57 = vrot.slane %v5045_v10, 1 }
 0x36b   : > { %4864 = vrot.lane.b32.xlu0 %v4822_v17, %s6697_s12  ;;  %v4847_v17 = vrot.slane %v6465_v2, 1  ;;  %v4509_v47 = vunpack.c.l.b16 %v3804_v45 }
 0x36c   : > { %v5387_v41 = vpop.permute.xlu1 %5386  ;;  %v8729_v63 = vpop.permute.xlu2 %4988 }
 0x36d   : > { %v5259_v59 = vpop.permute.xlu0 %5258  ;;  %v4849_v20 = vsel %vm1626_vm10, %v4847_v17, %v4848_v62  ;;  %v4525_v61 = vpack.c.b16 %v4509_v47, %v4509_v47  ;;  %v5111_v17 = vshll.u32 %v8758_v21, 16 }
 0x36e   : > { %v5611_v42 = vsel %vm2929_vm3, %v5579_v53, %v5259_v59  ;;  %v6650_v53 = vld [vmem:[#allocation3 + $0x54] sm:$0xf0] }
 0x36f   : > { %v5643_v54 = vsel %vm2962_vm6, %v5611_v42, %v5387_v41  ;;  %v4604_v2 = vshll.u32 %v4525_v61, 16  ;;  %v4824_v12 = vrot.slane %v4525_v61, 1  ;;  %v6654_v61 = vld [vmem:[#allocation3 + $0xb4] sm:$0xe] }
 0x370   : > { %6098 = vmatmul.msk.bf16.gmra.mxu3 %vm3010_vm11, %v5643_v54 }
 0x372   : > { %4370 = vrot.lane.b32.xlu1 %v4337_v40, %s6693_s8  ;;  %4482 = vrot.lane.b32.xlu2 %v8641_v39, %s6694_s9  ;;  %v5207_v39 = vshll.u32 %v3858_v11, 16 }
 0x373   : > { %5376 = vrot.lane.b32.xlu0 %v5334_v22, %s6699_s14  ;;  %v6451_v22 = vld [vmem:[#allocation3 + $0x48] sm:$0xf0] }
 0x374   : > { %v4859_v32 = vpop.permute.xlu1 %4858  ;;  %v8748_v5 = vpop.permute.xlu2 %4460  ;;  %v5209_v41 = vrot.slane %v5207_v39, 1  ;;  %v6453_v43 = vor.u32 %v6452_v14, %v6451_v22  ;;  %v5485_v39 = vsel %vm2797_vm14, %v8538_v8, %v8712_v35  ;;  %v5113_v8 = vrot.slane %v5111_v17, 1  ;;  %v6443_v35 = vld [vmem:[#allocation3 + $0xa8] sm:$0xe]  ;;  %v8816_v17 = vld [vmem:[#allocation3 + $0xc0] sm:$0xff]  }
 0x375   : > { %v4731_v60 = vpop.permute.xlu0 %4730  ;;  %v4339_v22 = vrot.slane %v8367_v29, 1 }
 0x376   : > { %v5499_v36 = vsel %vm2830_vm15, %v5467_v55, %v4731_v60  ;;  %v5210_v25 = vor.u32 %v5209_v41, %v5205_v26  ;;  %v5021_v60 = vunpack.c.l.b16 %v3869_v50  ;;  %v4823_v10 = vrot.slane %v6453_v43, 1 }
 0x377   : > { %v5531_v0 = vsel %vm2863_vm1, %v5499_v36, %v4859_v32  ;;  %v8774_v32 = vld [vmem:[#allocation3 + $0xb4] sm:$0xf0]  ;;  %v4606_v36 = vrot.slane %v4604_v2, 1 }
 0x378   : > { %v5563_v48 = vsel %vm2896_vm2, %v5531_v0, %v8689_v7  ;;  %v5215_v7 = vsel %vm1353_vm8, %v5210_v25, %v5214_v4  ;;  %v4825_v19 = vsel %vm1626_vm10, %v4823_v10, %v4824_v12  ;;  %v6652_v0 = vor.u32 %v6651_v16, %v6650_v53 }
 0x379   : > { %v4607_v47 = vsel %vm1353_vm8, %v8718_v31, %v4606_v36  ;;  %v4707_v25 = vshll.u32 %v8772_v44, 16  ;;  %v5114_v4 = vor.u32 %v5113_v8, %v5109_v9  ;;  %v6655_v29 = vor.u32 %v6654_v61, %v8774_v32  ;;  %v3805_v8 = vld [vmem:[#allocation3 + $0x5c] sm:$0x1] }
 0x37a   : > { %4882 = vrot.lane.b32.xlu1 %v4849_v20, %s6697_s12  ;;  %4994 = vrot.lane.b32.xlu2 %v3858_v11, %s6698_s13  ;;  %v5361_v11 = vsel %vm1626_vm10, %v5359_v56, %v5360_v57  ;;  %v5037_v20 = vpack.c.b16 %v5021_v60, %v5021_v60  ;;  %v5335_v31 = vrot.slane %v6652_v0, 1  ;;  %v8809_v60 = vld [vmem:[#allocation3 + $0x54] sm:$0xff]   ;;  %v4705_v12 = vshrl.u32 %v8772_v44, 16 }
 0x37b   : > { %4754 = vrot.lane.b32.xlu0 %v4703_v33, %s6695_s10  ;;  %v6442_v33 = vld [vmem:[#allocation3 + $0xa8] sm:$0xf0]  ;;  %v4709_v2 = vrot.slane %v4707_v25, 1  ;;  %v5469_v32 = vsel %vm2797_vm14, %v8425_v27, %v8748_v5  ;;  %v6491_v5 = vld [vmem:[#allocation3 + $0xc0] sm:$0xe]  ;;  %v5217_v61 = vshrl.u32 %v8816_v17, 16 }
 0x37c   : > { %v5371_v59 = vpop.permute.xlu1 %5370  ;;  %v8762_v58 = vpop.permute.xlu2 %4972  ;;  %v5116_v53 = vshll.u32 %v5037_v20, 16  ;;  %v4609_v1 = vshrl.u32 %v8809_v60, 16 }
 0x37d   : > { %v5243_v42 = vpop.permute.xlu0 %5242 }
 0x37e   : > { %v5595_v54 = vsel %vm2929_vm3, %v5563_v48, %v5243_v42  ;;  %v6444_v48 = vor.u32 %v6443_v35, %v6442_v33 }
 0x37f   : > { %v5627_v40 = vsel %vm2962_vm6, %v5595_v54, %v5371_v59  ;;  %v5336_v54 = vrot.slane %v5037_v20, 1  ;;  %v4710_v20 = vor.u32 %v4709_v2, %v4705_v12 }
 0x380   : > { %6090 = vmatmul.msk.bf16.gmra.mxu1 %vm3010_vm11, %v5627_v40  ;;  %v4338_v14 = vrot.slane %v6444_v48, 1  ;;  %v4510_v48 = vunpack.c.l.b16 %v3805_v8 }
 0x382   : > { %5394 = vrot.lane.b32.xlu1 %v5361_v11, %s6699_s14  ;;  %4466 = vrot.lane.b32.xlu2 %v8693_v6, %s6694_s9  ;;  %v3813_v6 = vld [vmem:[#allocation3 + $0xbc] sm:$0x1]  ;;  %v3878_v11 = vld [vmem:[#allocation3 + $0xc8] sm:$0x1]  ;;  %v4340_v16 = vsel %vm1626_vm10, %v4338_v14, %v4339_v22  ;;  %v6657_v22 = vld [vmem:[#allocation3 + $0x54] sm:$0xe] }
 0x383   : > { %5266 = vrot.lane.b32.xlu0 %v5215_v7, %s6696_s11  ;;  %v4518_v59 = vunpack.c.l.b16 %v3813_v6  ;;  %v5118_v7 = vrot.slane %v5116_v53, 1  ;;  %v5030_v43 = vunpack.c.l.b16 %v3878_v11 }
 0x384   : > { %v4877_v49 = vpop.permute.xlu1 %4876  ;;  %v8779_v62 = vpop.permute.xlu2 %4366 }
 0x385   : > { %v4749_v55 = vpop.permute.xlu0 %4748  ;;  %v4534_v50 = vpack.c.b16 %v4518_v59, %v4518_v59  ;;  %v5046_v6 = vpack.c.b16 %v5030_v43, %v5030_v43 }
 0x386   : > { %v5517_v45 = vsel %vm2830_vm15, %v5485_v39, %v4749_v55  ;;  %v8811_v55 = vld [vmem:[#allocation3 + $0x54] sm:$0xf0] }
 0x387   : > { %v5549_v41 = vsel %vm2863_vm1, %v5517_v45, %v4877_v49  ;;  %v5119_v49 = vsel %vm1353_vm8, %v5114_v4, %v5118_v7  ;;  %v4712_v39 = vshll.u32 %v4534_v50, 16  ;;  %v4851_v0 = vrot.slane %v4534_v50, 1  ;;  %v460_v50 = vld [vmem:[#allocation3 + $0xcc] sm:$0x1] }
 0x388   : > { %v5581_v56 = vsel %vm2896_vm2, %v5549_v41, %v8729_v63  ;;  %v5337_v63 = vsel %vm1626_vm10, %v5335_v31, %v5336_v54  ;;  %v5224_v59 = vshll.u32 %v5046_v6, 16  ;;  %v4611_v4 = vshll.u32 %v8809_v60, 16 }
 0x389   : > { %v4714_v41 = vrot.slane %v4712_v39, 1  ;;  %v5363_v11 = vrot.slane %v5046_v6, 1  ;;  %v6658_v12 = vor.u32 %v6657_v22, %v8811_v55  ;;  %v5423_v6 = vsel %vm2731_vm12, %v8239_v30, %v8501_v28  ;;  %v3814_v30 = vld [vmem:[#allocation3 + $0xc8] sm:$0x1]  ;;  %v6478_v28 = vld [vmem:[#allocation3 + $0x60] sm:$0xf0] }
 0x38a   : > { %4866 = vrot.lane.b32.xlu1 %v4825_v19, %s6697_s12  ;;  %4978 = vrot.lane.b32.xlu2 %v8758_v21, %s6698_s13  ;;  %v4850_v19 = vrot.slane %v6655_v29, 1 }
 0x38b   : > { %4738 = vrot.lane.b32.xlu0 %v4607_v47, %s6695_s10  ;;  %v5219_v47 = vshll.u32 %v8816_v17, 16  ;;  %v4715_v35 = vsel %vm1353_vm8, %v4710_v20, %v4714_v41  ;;  %v514_v20 = vld [vmem:[#allocation3 + $0xd4] sm:$0x1]  ;;  %v5455_v41 = vsel %vm2764_vm13, %v5423_v6, %v8779_v62  ;;  %v4342_v6 = vrot.slane %v8410_v46, 1 }
 0x38c   : > { %v5389_v26 = vpop.permute.xlu1 %5388  ;;  %v8795_v42 = vpop.permute.xlu2 %4878  ;;  %v4852_v53 = vsel %vm1626_vm10, %v4850_v19, %v4851_v0 }
 0x38d   : > { %v5261_v57 = vpop.permute.xlu0 %5260  ;;  %v5221_v27 = vrot.slane %v5219_v47, 1  ;;  %v4826_v47 = vrot.slane %v6658_v12, 1 }
 0x38e   : > { %v5613_v40 = vsel %vm2929_vm3, %v5581_v56, %v5261_v57 }
 0x38f   : > { %v5645_v21 = vsel %vm2962_vm6, %v5613_v40, %v5389_v26  ;;  %v6490_v26 = vld [vmem:[#allocation3 + $0xc0] sm:$0xf0]  ;;  %v5226_v40 = vrot.slane %v5224_v59, 1  ;;  %v8840_v14 = vor.u32 %v5221_v27, %v5217_v61 }
 0x390   : > { %6099 = vmatmul.msk.bf16.gmra.mxu3 %vm3010_vm11, %v5645_v21  ;;  %v6492_v57 = vor.u32 %v6491_v5, %v6490_v26  ;;  %v3870_v21 = vld [vmem:[#allocation3 + $0x68] sm:$0x1] }
 0x391   : > { %v5227_v43 = vsel %vm1353_vm8, %v8840_v14, %v5226_v40 }
 0x392   : > { %5378 = vrot.lane.b32.xlu1 %v5337_v63, %s6699_s14  ;;  %4372 = vrot.lane.b32.xlu2 %v4340_v16, %s6693_s8  ;;  %v4526_v63 = vpack.c.b16 %v4510_v48, %v4510_v48  ;;  %v5362_v2 = vrot.slane %v6492_v57, 1  ;;  %v5022_v16 = vunpack.c.l.b16 %v3870_v21  ;;  %v6479_v48 = vld [vmem:[#allocation3 + $0x60] sm:$0xe] }
 0x393   : > { %5250 = vrot.lane.b32.xlu0 %v5119_v49, %s6696_s11  ;;  %v4613_v49 = vrot.slane %v4611_v4, 1 }
 0x394   : > { %v4861_v36 = vpop.permute.xlu1 %4860  ;;  %v8818_v45 = vpop.permute.xlu2 %5390  ;;  %v5364_v29 = vsel %vm1626_vm10, %v5362_v2, %v5363_v11  ;;  %v4616_v39 = vshll.u32 %v4526_v63, 16  ;;  %v5038_v0 = vpack.c.b16 %v5022_v16, %v5022_v16  ;;  %v4827_v8 = vrot.slane %v4526_v63, 1  ;;  %v6660_v11 = vld [vmem:[#allocation3 + $0xb4] sm:$0xe] }
 0x395   : > { %v4733_v10 = vpop.permute.xlu0 %4732  ;;  %v4614_v55 = vor.u32 %v4613_v49, %v4609_v1 }
 0x396   : > { %v5501_v33 = vsel %vm2830_vm15, %v5469_v32, %v4733_v10  ;;  %v8854_v10 = vld [vmem:[#allocation3 + $0x60] sm:$0xff]   ;;  %v4618_v59 = vrot.slane %v4616_v39, 1  ;;  %v4828_v62 = vsel %vm1626_vm10, %v4826_v47, %v4827_v8 }
 0x397   : > { %v5533_v9 = vsel %vm2863_vm1, %v5501_v33, %v4861_v36  ;;  %v515_v33 = vsel %vm6759_vm5, 0, %v514_v20  ;;  %v5123_v26 = vshll.u32 %v8854_v10, 16  ;;  %v5121_v22 = vshrl.u32 %v8854_v10, 16  ;;  %v6466_v8 = vld [vmem:[#allocation3 + $0xc0] sm:$0xf0] }
 0x398   : > { %v5565_v54 = vsel %vm2896_vm2, %v5533_v9, %v8762_v58  ;;  %v461_v58 = vsel %vm6753_vm4, 0, %v460_v50  ;;  %516 = vst [vmem:[#allocation3 + $0xd4] sm:$0x1] %v515_v33  ;;  %v4619_v9 = vsel %vm1353_vm8, %v4614_v55, %v4618_v59 }
 0x399   : > { %462 = vst [vmem:[#allocation3 + $0xcc] sm:$0x1] %v461_v58  ;;  %v5125_v57 = vrot.slane %v5123_v26, 1 }
 0x39a   : > { %4756 = vrot.lane.b32.xlu1 %v4715_v35, %s6695_s10  ;;  %4884 = vrot.lane.b32.xlu2 %v4852_v53, %s6697_s12  ;;  %v5128_v53 = vshll.u32 %v5038_v0, 16 }
 0x39b   : > { %4484 = vrot.lane.b32.xlu0 %v8772_v44, %s6694_s9  ;;  %v8884_v58 = vor.u32 %v5125_v57, %v5121_v22 }
 0x39c   : > { %v5373_v56 = vpop.permute.xlu1 %5372  ;;  %v8832_v31 = vpop.permute.xlu2 %4862 }
 0x39d   : > { %v5245_v25 = vpop.permute.xlu0 %5244 }
 0x39e   : > { %v5597_v44 = vsel %vm2929_vm3, %v5565_v54, %v5245_v25  ;;  %v6480_v54 = vor.u32 %v6479_v48, %v6478_v28  ;;  %v3846_v28 = vld [vmem:[#allocation3 + $0x6c] sm:$0xff]  }
 0x39f   : > { %v5629_v7 = vsel %vm2962_vm6, %v5597_v44, %v5373_v56  ;;  %v4519_v56 = vunpack.c.l.b16 %v3814_v30  ;;  %v5130_v44 = vrot.slane %v5128_v53, 1  ;;  %v3879_v21 = vld [vmem:[#allocation3 + $0xd4] sm:$0x1] }
 0x3a0   : > { %6091 = vmatmul.msk.bf16.gmra.mxu1 %vm3010_vm11, %v5629_v7  ;;  %v8868_v27 = vld [vmem:[#allocation3 + $0xcc] sm:$0xff]   ;;  %v5339_v7 = vrot.slane %v5038_v0, 1  ;;  %v5338_v2 = vrot.slane %v6480_v54, 1  ;;  %v5031_v49 = vunpack.c.l.b16 %v3879_v21  ;;  %v3806_v0 = vld [vmem:[#allocation3 + $0x68] sm:$0x1] }
 0x3a1   : > { %v4535_v63 = vpack.c.b16 %v4519_v56, %v4519_v56  ;;  %v5231_v39 = vshll.u32 %v8868_v27, 16  ;;  %v5229_v33 = vshrl.u32 %v8868_v27, 16  ;;  %v4511_v30 = vunpack.c.l.b16 %v3806_v0 }
 0x3a2   : > { %5268 = vrot.lane.b32.xlu1 %v5227_v43, %s6696_s11  ;;  %5396 = vrot.lane.b32.xlu2 %v5364_v29, %s6699_s14  ;;  %v5340_v16 = vsel %vm1626_vm10, %v5338_v2, %v5339_v7  ;;  %v6661_v29 = vor.u32 %v6660_v11, %v8400_v38 }
 0x3a3   : > { %4996 = vrot.lane.b32.xlu0 %v8816_v17, %s6698_s13  ;;  %v4724_v12 = vshll.u32 %v4535_v63, 16  ;;  %v4527_v54 = vpack.c.b16 %v4511_v30, %v4511_v30 }
 0x3a4   : > { %v4751_v36 = vpop.permute.xlu1 %4750  ;;  %v8859_v32 = vpop.permute.xlu2 %5374  ;;  %v4341_v20 = vrot.slane %v6661_v29, 1 }
 0x3a5   : > { %v4479_v19 = vpop.permute.xlu0 %4478 }
 0x3a6   : > { %v5487_v35 = vsel %vm2797_vm14, %v5455_v41, %v4479_v19  ;;  %v4726_v19 = vrot.slane %v4724_v12, 1  ;;  %v5233_v41 = vrot.slane %v5231_v39, 1  ;;  %v4343_v46 = vsel %vm1626_vm10, %v4341_v20, %v4342_v6  ;;  %v6454_v12 = vld [vmem:[#allocation3 + $0x60] sm:$0xf0] }
 0x3a7   : > { %v5519_v5 = vsel %vm2830_vm15, %v5487_v35, %v4751_v36  ;;  %v6663_v35 = vld [vmem:[#allocation3 + $0xcc] sm:$0xe] }
 0x3a8   : > { %v5551_v40 = vsel %vm2863_vm1, %v5519_v5, %v8795_v42  ;;  %v5131_v42 = vsel %vm1353_vm8, %v8884_v58, %v5130_v44  ;;  %v4727_v26 = vsel %vm1353_vm8, %v8840_v14, %v4726_v19  ;;  %v4854_v14 = vrot.slane %v4535_v63, 1 }
 0x3a9   : > { %v6664_v44 = vor.u32 %v6663_v35, %v8870_v3  ;;  %v5133_v19 = vshrl.u32 %v3846_v28, 16 }
 0x3aa   : > { %4740 = vrot.lane.b32.xlu1 %v4619_v9, %s6695_s10  ;;  %4868 = vrot.lane.b32.xlu2 %v4828_v62, %s6697_s12  ;;  %v6467_v9 = vld [vmem:[#allocation3 + $0xc0] sm:$0xe]  ;;  %v5234_v62 = vor.u32 %v5233_v41, %v5229_v33  ;;  %v6666_v33 = vld [vmem:[#allocation3 + $0x6c] sm:$0xe]  ;;  %v4830_v41 = vrot.slane %v4527_v54, 1 }
 0x3ab   : > { %4468 = vrot.lane.b32.xlu0 %v8809_v60, %s6694_s9  ;;  %v6468_v5 = vor.u32 %v6467_v9, %v6466_v8  ;;  %v5365_v7 = vrot.slane %v6664_v44, 1 }
 0x3ac   : > { %v5263_v25 = vpop.permute.xlu1 %5262  ;;  %v8878_v61 = vpop.permute.xlu2 %4752 }
 0x3ad   : > { %v4991_v4 = vpop.permute.xlu0 %4990 }
 0x3ae   : > { %v5583_v50 = vsel %vm2896_vm2, %v5551_v40, %v4991_v4  ;;  %v4853_v4 = vrot.slane %v6468_v5, 1 }
 0x3af   : > { %v5615_v60 = vsel %vm2929_vm3, %v5583_v50, %v5263_v25  ;;  %v4628_v50 = vshll.u32 %v4527_v54, 16 }
 0x3b0   : > { %v5647_v43 = vsel %vm2962_vm6, %v5615_v60, %v8818_v45  ;;  %v5047_v45 = vpack.c.b16 %v5031_v49, %v5031_v49  ;;  %v4855_v21 = vsel %vm1626_vm10, %v4853_v4, %v4854_v14  ;;  %v6537_v49 = vld [vmem:[#allocation3 + $0x90] sm:$0xff]   ;;  %v5795_v4 = vld [vmem:[%s6781_s29] sm:$0xff] }
 0x3b1   : > { %6100 = vmatmul.msk.bf16.gmra.mxu3 %vm3010_vm11, %v5647_v43  ;;  %v4630_v2 = vrot.slane %v4628_v50, 1  ;;  %v5135_v43 = vshll.u32 %v3846_v28, 16 }
 0x3b2   : > { %5252 = vrot.lane.b32.xlu1 %v5131_v42, %s6696_s11  ;;  %5380 = vrot.lane.b32.xlu2 %v5340_v16, %s6699_s14  ;;  %v5236_v47 = vshll.u32 %v5047_v45, 16  ;;  %v5366_v63 = vrot.slane %v5047_v45, 1  ;;  %v5425_v42 = vsel %vm2731_vm12, %v6537_v49, %v8486_v52  ;;  %v6455_v52 = vld [vmem:[#allocation3 + $0x60] sm:$0xe] }
 0x3b3   : > { %4980 = vrot.lane.b32.xlu0 %v8854_v10, %s6698_s13  ;;  %v5137_v45 = vrot.slane %v5135_v43, 1  ;;  %v6456_v6 = vor.u32 %v6455_v52, %v6454_v12 }
 0x3b4   : > { %v4735_v1 = vpop.permute.xlu1 %4734  ;;  %v8900_v55 = vpop.permute.xlu2 %5264  ;;  %v5238_v48 = vrot.slane %v5236_v47, 1  ;;  %v5367_v16 = vsel %vm1626_vm10, %v5365_v7, %v5366_v63 }
 0x3b5   : > { %v4463_v36 = vpop.permute.xlu0 %4462  ;;  %v4829_v8 = vrot.slane %v6456_v6, 1 }
 0x3b6   : > { %v5471_v38 = vsel %vm2797_vm14, %v8504_v51, %v4463_v36  ;;  %v8911_v51 = vld [vmem:[#allocation3 + $0x6c] sm:$0xf0]  ;;  %v5239_v22 = vsel %vm1353_vm8, %v5234_v62, %v5238_v48 }
 0x3b7   : > { %v5503_v59 = vsel %vm2830_vm15, %v5471_v38, %v4735_v1  ;;  %v4631_v1 = vsel %vm1353_vm8, %v8884_v58, %v4630_v2  ;;  %v5138_v58 = vor.u32 %v5137_v45, %v5133_v19  ;;  %v6667_v30 = vor.u32 %v6666_v33, %v8911_v51  ;;  %v8960_v51 = vld [vmem:[%s9216_s5] ss:$0 sm:$0xff] }
 0x3ba   : > { %4486 = vrot.lane.b32.xlu1 %v8816_v17, %s6694_s9  ;;  %4758 = vrot.lane.b32.xlu2 %v4727_v26, %s6695_s10  ;;  %v5535_v17 = vsel %vm2863_vm1, %v5503_v59, %v8832_v31  ;;  %v3871_v31 = vld [vmem:[#allocation3 + $0x74] sm:$0x1] }
 0x3bb   : > { %4374 = vrot.lane.b32.xlu0 %v4343_v46, %s6693_s8  ;;  %v5023_v60 = vunpack.c.l.b16 %v3871_v31  ;;  %v4831_v46 = vsel %vm1626_vm10, %v4829_v8, %v4830_v41 }
 0x3bc   : > { %v5247_v53 = vpop.permute.xlu1 %5246  ;;  %v8923_v11 = vpop.permute.xlu2 %4736 }
 0x3bd   : > { %v4975_v56 = vpop.permute.xlu0 %4974  ;;  %v5039_v29 = vpack.c.b16 %v5023_v60, %v5023_v60 }
 0x3be   : > { %v5567_v57 = vsel %vm2896_vm2, %v5535_v17, %v4975_v56 }
 0x3bf   : > { %v5599_v25 = vsel %vm2929_vm3, %v5567_v57, %v5247_v53  ;;  %v5140_v38 = vshll.u32 %v5039_v29, 16  ;;  %v5342_v48 = vrot.slane %v5039_v29, 1  ;;  %v8968_v57 = vld [vmem:[%s9217_s6] ss:$0 sm:$0xff] }
 0x3c0   : > { %v5631_v40 = vsel %vm2962_vm6, %v5599_v25, %v8859_v32 }
 0x3c1   : > { %6092 = vmatmul.msk.bf16.gmra.mxu1 %vm3010_vm11, %v5631_v40  ;;  %v5142_v35 = vrot.slane %v5140_v38, 1 }
 0x3c2   : > { %4998 = vrot.lane.b32.xlu1 %v8868_v27, %s6698_s13  ;;  %5270 = vrot.lane.b32.xlu2 %v5239_v22, %s6696_s11 }
 0x3c3   : > { %4886 = vrot.lane.b32.xlu0 %v4855_v21, %s6697_s12  ;;  %v5143_v26 = vsel %vm1353_vm8, %v5138_v58, %v5142_v35 }
 0x3c4   : > { %v4481_v32 = vpop.permute.xlu1 %4480  ;;  %v5249_v39 = vpop.permute.xlu2 %5248 }
 0x3c5   : > { %v4369_v3 = vpop.permute.xlu0 %4368 }
 0x3c6   : > { %v5457_v27 = vsel %vm2764_vm13, %v5425_v42, %v4369_v3 }
 0x3c7   : > { %v5489_v36 = vsel %vm2797_vm14, %v5457_v27, %v4481_v32  ;;  %v5811_v32 = vld [vmem:[%s6781_s29 + $0x80] sm:$0xff] }
 0x3ca   : > { %4470 = vrot.lane.b32.xlu1 %v8854_v10, %s6694_s9  ;;  %4742 = vrot.lane.b32.xlu2 %v4631_v1, %s6695_s10  ;;  %v5521_v10 = vsel %vm2830_vm15, %v5489_v36, %v8878_v61 }
 0x3cb   : > { %5398 = vrot.lane.b32.xlu0 %v5367_v16, %s6699_s14  ;;  %v5796_v16 = vld [vmem:[%s6781_s29 + $0x8] sm:$0xff] }
 0x3cc   : > { %v4993_v20 = vpop.permute.xlu1 %4992  ;;  %v4483_v9 = vpop.permute.xlu2 %4482 }
 0x3cd   : > { %v4881_v0 = vpop.permute.xlu0 %4880 }
 0x3ce   : > { %v5553_v47 = vsel %vm2863_vm1, %v5521_v10, %v4881_v0 }
 0x3cf   : > { %v5585_v59 = vsel %vm2896_vm2, %v5553_v47, %v4993_v20  ;;  %v5812_v20 = vld [vmem:[%s6781_s29 + $0x88] sm:$0xff] }
 0x3d0   : > { %v5617_v5 = vsel %vm2929_vm3, %v5585_v59, %v8900_v55 }
 0x3d2   : > { %4982 = vrot.lane.b32.xlu1 %v3846_v28, %s6698_s13  ;;  %5254 = vrot.lane.b32.xlu2 %v5143_v26, %s6696_s11  ;;  %v5341_v28 = vrot.slane %v6667_v30, 1 }
 0x3d3   : > { %4870 = vrot.lane.b32.xlu0 %v4831_v46, %s6697_s12  ;;  %v5813_v46 = vld [vmem:[%s6781_s29 + $0x90] sm:$0xff] }
 0x3d4   : > { %v4465_v61 = vpop.permute.xlu1 %4464  ;;  %v5343_v17 = vsel %vm1626_vm10, %v5341_v28, %v5342_v48  ;;  %v4995_v40 = vpop.permute.xlu2 %4994  ;;  %v5411_v28 = vsel %vm2731_vm12, %v8250_v24, %v8525_v15  ;;  %v5797_v15 = vld [vmem:[%s6781_s29 + $0x10] sm:$0xff] }
 0x3d5   : > { %v5393_v53 = vpop.permute.xlu0 %5392  ;;  %v5473_v55 = vsel %vm2797_vm14, %v8515_v37, %v4465_v61 }
 0x3d6   : > { %v5649_v62 = vsel %vm2962_vm6, %v5617_v5, %v5393_v53  ;;  %v5505_v22 = vsel %vm2830_vm15, %v5473_v55, %v8923_v11 }
 0x3d7   : > { %6101 = vmatmul.msk.bf16.gmra.mxu3 %vm3010_vm11, %v5649_v62 }
 0x3db   : > { %5382 = vrot.lane.b32.xlu0 %v5343_v17, %s6699_s14  ;;  %s8983_s14 = scalar_lea.vmem %s9218_s7, %s6107_s26 }
 0x3dc   : > { %v4977_v56 = vpop.permute.xlu1 %4976  ;;  %v4467_v45 = vpop.permute.xlu2 %4466 }
 0x3dd   : > { %v5715_v14 = vpop.f32.mrf.mxu1  ;;  %v4865_v25 = vpop.permute.xlu0 %4864 }
 0x3de   : > { %v5830_v54 = vmul.f32 %v8960_v51, %v5715_v14  ;;  %v5537_v31 = vsel %vm2863_vm1, %v5505_v22, %v4865_v25  ;;  %v5814_v14 = vld [vmem:[%s6781_s29 + $0x98] sm:$0xff]  ;;  %v5443_v25 = vsel %vm2764_vm13, %v5411_v28, %v8496_v34 }
 0x3df   : > { %v5569_v7 = vsel %vm2896_vm2, %v5537_v31, %v4977_v56  ;;  %v5475_v24 = vsel %vm2797_vm14, %v5443_v25, %v4467_v45 }
 0x3e0   : > { %v5865_v44 = vadd.f32 %v8968_v57, %v5830_v54  ;;  %v5755_v37 = vpop.f32.mrf.mxu3  ;;  %v5601_v42 = vsel %vm2929_vm3, %v5569_v7, %v5249_v39  ;;  %v5427_v39 = vsel %vm2731_vm12, %v8318_v13, %v8553_v18 }
 0x3e1   : > { %v5846_v21 = vmul.f32 %v8960_v51, %v5755_v37 }
 0x3e2   : > { %v5897_v50 = vadd.f32 %v5865_v44, %v5795_v4 }
 0x3e3   : > { %v5881_v11 = vadd.f32 %v8968_v57, %v5846_v21 }
 0x3e4   : > { %v5929_v63 = vmax.f32 %v5897_v50, 0.0  ;;  %v4371_v60 = vpop.permute.xlu1 %4370  ;;  %v4979_v8 = vpop.permute.xlu2 %4978 }
 0x3e5   : > { %v5913_v3 = vadd.f32 %v5881_v11, %v5811_v32  ;;  %v5717_v2 = vpop.f32.mrf.mxu1  ;;  %v5377_v49 = vpop.permute.xlu0 %5376  ;;  %v5459_v19 = vsel %vm2764_vm13, %v5427_v39, %v4371_v60 }
 0x3e6   : > { %5961 = vst.msk [vmem:[%s8983_s14] sm:$0xff] %vm2731_vm12, %v5929_v63  ;;  %v5831_v43 = vmul.f32 %v8960_v51, %v5717_v2  ;;  %v5633_v29 = vsel %vm2962_vm6, %v5601_v42, %v5377_v49  ;;  %v5491_v58 = vsel %vm2797_vm14, %v5459_v19, %v4483_v9 }
 0x3e7   : > { %v5945_v27 = vmax.f32 %v5913_v3, 0.0  ;;  %6093 = vmatmul.msk.bf16.gmra.mxu1 %vm3010_vm11, %v5633_v29 }
 0x3e8   : > { %v5866_v12 = vadd.f32 %v8968_v57, %v5831_v43  ;;  %v5757_v1 = vpop.f32.mrf.mxu3  ;;  %v5798_v43 = vld [vmem:[%s6781_s29 + $0x18] sm:$0xff] }
 0x3e9   : > { %5977 = vst.msk [vmem:[%s8983_s14 + $0x80] sm:$0xff] %vm2731_vm12, %v5945_v27  ;;  %v5847_v36 = vmul.f32 %v8960_v51, %v5757_v1  ;;  %v6538_v1 = vld [vmem:[#allocation3 + $0xa8] sm:$0xff]  }
 0x3ea   : > { %v5898_v52 = vadd.f32 %v5866_v12, %v5796_v16  ;;  %v5429_v45 = vsel %vm2731_vm12, %v6538_v1, %v8588_v23 }
 0x3eb   : > { %v5882_v6 = vadd.f32 %v8968_v57, %v5847_v36 }
 0x3ec   : > { %v5930_v38 = vmax.f32 %v5898_v52, 0.0  ;;  %v4883_v0 = vpop.permute.xlu1 %4882  ;;  %v4373_v56 = vpop.permute.xlu2 %4372 }
 0x3ed   : > { %v5914_v33 = vadd.f32 %v5882_v6, %v5812_v20  ;;  %v4755_v10 = vpop.permute.xlu0 %4754  ;;  %v5461_v52 = vsel %vm2764_vm13, %v5429_v45, %v4373_v56 }
 0x3ee   : > { %5962 = vst.msk [vmem:[%s8983_s14 + $0x8] sm:$0xff] %vm2731_vm12, %v5930_v38  ;;  %v5523_v47 = vsel %vm2830_vm15, %v5491_v58, %v4755_v10 }
 0x3ef   : > { %v5946_v41 = vmax.f32 %v5914_v33, 0.0  ;;  %v5555_v13 = vsel %vm2863_vm1, %v5523_v47, %v4883_v0  ;;  %v5815_v33 = vld [vmem:[%s6781_s29 + $0xa0] sm:$0xff] }
 0x3f0   : > { %v5587_v30 = vsel %vm2896_vm2, %v5555_v13, %v4995_v40 }
 0x3f1   : > { %5978 = vst.msk [vmem:[%s8983_s14 + $0x88] sm:$0xff] %vm2731_vm12, %v5946_v41 }
 0x3f3   : > { %v5760_v18 = vpop.f32.mrf.mxu3 }
 0x3f4   : > { %v5395_v35 = vpop.permute.xlu1 %5394  ;;  %v5848_v59 = vmul.f32 %v8960_v51, %v5760_v18  ;;  %v4885_v2 = vpop.permute.xlu2 %4884 }
 0x3f5   : > { %v5267_v61 = vpop.permute.xlu0 %5266 }
 0x3f6   : > { %v5883_v26 = vadd.f32 %v8968_v57, %v5848_v59  ;;  %v5619_v9 = vsel %vm2929_vm3, %v5587_v30, %v5267_v61  ;;  %v5816_v30 = vld [vmem:[%s6781_s29 + $0xa8] sm:$0xff] }
 0x3f7   : > { %v5651_v5 = vsel %vm2962_vm6, %v5619_v9, %v5395_v35 }
 0x3f8   : > { %v5915_v53 = vadd.f32 %v5883_v26, %v5813_v46  ;;  %6102 = vmatmul.msk.bf16.gmra.mxu3 %vm3010_vm11, %v5651_v5 }
 0x3fa   : > { %v5947_v62 = vmax.f32 %v5915_v53, 0.0 }
 0x3fb   : > { %v5762_v48 = vpop.f32.mrf.mxu3 }
 0x3fc   : > { %5979 = vst.msk [vmem:[%s8983_s14 + $0x90] sm:$0xff] %vm2731_vm12, %v5947_v62  ;;  %v4867_v17 = vpop.permute.xlu1 %4866  ;;  %v5849_v55 = vmul.f32 %v8960_v51, %v5762_v48  ;;  %v5397_v39 = vpop.permute.xlu2 %5396  ;;  %v5799_v62 = vld [vmem:[%s6781_s29 + $0x20] sm:$0xff] }
 0x3fd   : > { %v5720_v54 = vpop.f32.mrf.mxu1  ;;  %v4739_v22 = vpop.permute.xlu0 %4738 }
 0x3fe   : > { %v5884_v40 = vadd.f32 %v8968_v57, %v5849_v55  ;;  %v5832_v4 = vmul.f32 %v8960_v51, %v5720_v54  ;;  %v5507_v37 = vsel %vm2830_vm15, %v5475_v24, %v4739_v22 }
 0x3ff   : > { %v5539_v32 = vsel %vm2863_vm1, %v5507_v37, %v4867_v17  ;;  %v9310_v17 = vld [vmem:[#allocation7_spill] sm:$0xff] }
 0x400   : > { %v5916_v44 = vadd.f32 %v5884_v40, %v5814_v14  ;;  %v5867_v31 = vadd.f32 %v8968_v57, %v5832_v4  ;;  %v5571_v60 = vsel %vm2896_vm2, %v5539_v32, %v4979_v8 }
 0x402   : > { %v5948_v21 = vmax.f32 %v5916_v44, 0.0  ;;  %v5899_v50 = vadd.f32 %v5867_v31, %v5797_v15  ;;  %v5800_v31 = vld [vmem:[%s6781_s29 + $0x28] sm:$0xff] }
 0x404   : > { %5980 = vst.msk [vmem:[%s8983_s14 + $0x98] sm:$0xff] %vm2731_vm12, %v5948_v21  ;;  %v5931_v34 = vmax.f32 %v5899_v50, 0.0  ;;  %v5379_v7 = vpop.permute.xlu1 %5378  ;;  %v4869_v35 = vpop.permute.xlu2 %4868 }
 0x405   : > { %v5722_v11 = vpop.f32.mrf.mxu1  ;;  %v5251_v3 = vpop.permute.xlu0 %5250 }
 0x406   : > { %5963 = vst.msk [vmem:[%s8983_s14 + $0x10] sm:$0xff] %vm2731_vm12, %v5931_v34  ;;  %v5833_v63 = vmul.f32 %v8960_v51, %v5722_v11  ;;  %v5603_v49 = vsel %vm2929_vm3, %v5571_v60, %v5251_v3  ;;  %v9311_v3 = vld [vmem:[#allocation17_spill] sm:$0xff] }
 0x407   : > { %v5635_v27 = vsel %vm2962_vm6, %v5603_v49, %v5379_v7 }
 0x408   : > { %v5868_v42 = vadd.f32 %v8968_v57, %v5833_v63  ;;  %6094 = vmatmul.msk.bf16.gmra.mxu1 %vm3010_vm11, %v5635_v27 }
 0x40a   : > { %v5900_v16 = vadd.f32 %v5868_v42, %v5798_v43 }
 0x40c   : > { %v5932_v29 = vmax.f32 %v5900_v16, 0.0  ;;  %v4757_v12 = vpop.permute.xlu1 %4756  ;;  %v5381_v4 = vpop.permute.xlu2 %5380 }
 0x40d   : > { %v4485_v36 = vpop.permute.xlu0 %4484 }
 0x40e   : > { %5964 = vst.msk [vmem:[%s8983_s14 + $0x18] sm:$0xff] %vm2731_vm12, %v5932_v29  ;;  %v5493_v20 = vsel %vm2797_vm14, %v5461_v52, %v4485_v36 }
 0x40f   : > { %v5525_v6 = vsel %vm2830_vm15, %v5493_v20, %v4757_v12  ;;  %v5817_v12 = vld [vmem:[%s6781_s29 + $0xb0] sm:$0xff] }
 0x410   : > { %v5557_v23 = vsel %vm2863_vm1, %v5525_v6, %v4885_v2  ;;  %v9312_v2 = vld [vmem:[#allocation23_spill] sm:$0xff] }
 0x411   : > { %v5431_v43 = vsel %vm2731_vm12, %v9312_v2, %v9311_v3  ;;  %v5820_v2 = vld [vmem:[%s6781_s29 + $0xc8] sm:$0xff] }
 0x413   : > { %v5765_v19 = vpop.f32.mrf.mxu3 }
 0x414   : > { %v5269_v38 = vpop.permute.xlu1 %5268  ;;  %v5850_v0 = vmul.f32 %v8960_v51, %v5765_v19  ;;  %v4759_v60 = vpop.permute.xlu2 %4758 }
 0x415   : > { %v4997_v41 = vpop.permute.xlu0 %4996 }
 0x416   : > { %v5885_v10 = vadd.f32 %v8968_v57, %v5850_v0  ;;  %v5589_v58 = vsel %vm2896_vm2, %v5557_v23, %v4997_v41 }
 0x417   : > { %v5621_v8 = vsel %vm2929_vm3, %v5589_v58, %v5269_v38 }
 0x418   : > { %v5917_v47 = vadd.f32 %v5885_v10, %v5815_v33  ;;  %v5653_v13 = vsel %vm2962_vm6, %v5621_v8, %v5397_v39  ;;  %v5818_v33 = vld [vmem:[%s6781_s29 + $0xb8] sm:$0xff] }
 0x419   : > { %6103 = vmatmul.msk.bf16.gmra.mxu3 %vm3010_vm11, %v5653_v13  ;;  %v9313_v13 = vld [vmem:[#allocation26_spill] sm:$0xff] }
 0x41a   : > { %v5949_v18 = vmax.f32 %v5917_v47, 0.0 }
 0x41b   : > { %v5767_v59 = vpop.f32.mrf.mxu3 }
 0x41c   : > { %5981 = vst.msk [vmem:[%s8983_s14 + $0xa0] sm:$0xff] %vm2731_vm12, %v5949_v18  ;;  %v4741_v46 = vpop.permute.xlu1 %4740  ;;  %v5851_v26 = vmul.f32 %v8960_v51, %v5767_v59  ;;  %v5271_v20 = vpop.permute.xlu2 %5270  ;;  %v9314_v18 = vld [vmem:[#allocation22_spill] sm:$0xff] }
 0x41d   : > { %v5725_v61 = vpop.f32.mrf.mxu1  ;;  %v4469_v5 = vpop.permute.xlu0 %4468 }
 0x41e   : > { %v5886_v9 = vadd.f32 %v8968_v57, %v5851_v26  ;;  %v5834_v53 = vmul.f32 %v8960_v51, %v5725_v61  ;;  %v5477_v55 = vsel %vm2797_vm14, %v9310_v17, %v4469_v5 }
 0x41f   : > { %v5509_v54 = vsel %vm2830_vm15, %v5477_v55, %v4741_v46  ;;  %v5801_v46 = vld [vmem:[%s6781_s29 + $0x30] sm:$0xff] }
 0x420   : > { %v5918_v28 = vadd.f32 %v5886_v9, %v5816_v30  ;;  %v5869_v48 = vadd.f32 %v8968_v57, %v5834_v53  ;;  %v5541_v15 = vsel %vm2863_vm1, %v5509_v54, %v4869_v35  ;;  %v5415_v35 = vsel %vm2731_vm12, %v9314_v18, %v9313_v13  ;;  %v9315_v9 = vld [vmem:[#allocation24_spill] sm:$0xff] }
 0x421   : > { %v5447_v53 = vsel %vm2764_vm13, %v5415_v35, %v9315_v9 }
 0x422   : > { %v5950_v56 = vmax.f32 %v5918_v28, 0.0  ;;  %v5901_v14 = vadd.f32 %v5869_v48, %v5799_v62 }
 0x424   : > { %5982 = vst.msk [vmem:[%s8983_s14 + $0xa8] sm:$0xff] %vm2731_vm12, %v5950_v56  ;;  %v5933_v25 = vmax.f32 %v5901_v14, 0.0  ;;  %v5253_v40 = vpop.permute.xlu1 %5252  ;;  %v4743_v61 = vpop.permute.xlu2 %4742 }
 0x425   : > { %v5727_v22 = vpop.f32.mrf.mxu1  ;;  %v4981_v44 = vpop.permute.xlu0 %4980 }
 0x426   : > { %5965 = vst.msk [vmem:[%s8983_s14 + $0x20] sm:$0xff] %vm2731_vm12, %v5933_v25  ;;  %v5835_v24 = vmul.f32 %v8960_v51, %v5727_v22  ;;  %v5573_v37 = vsel %vm2896_vm2, %v5541_v15, %v4981_v44  ;;  %v5802_v25 = vld [vmem:[%s6781_s29 + $0x38] sm:$0xff] }
 0x427   : > { %v5605_v50 = vsel %vm2929_vm3, %v5573_v37, %v5253_v40 }
 0x428   : > { %v5870_v21 = vadd.f32 %v8968_v57, %v5835_v24  ;;  %v5637_v32 = vsel %vm2962_vm6, %v5605_v50, %v5381_v4 }
 0x429   : > { %6095 = vmatmul.msk.bf16.gmra.mxu1 %vm3010_vm11, %v5637_v32 }
 0x42a   : > { %v5902_v34 = vadd.f32 %v5870_v21, %v5800_v31 }
 0x42c   : > { %v5934_v7 = vmax.f32 %v5902_v34, 0.0  ;;  %v4487_v11 = vpop.permute.xlu1 %4486  ;;  %v5255_v15 = vpop.permute.xlu2 %5254  ;;  %v5819_v34 = vld [vmem:[%s6781_s29 + $0xc0] sm:$0xff] }
 0x42d   : > { %v4375_v63 = vpop.permute.xlu0 %4374 }
 0x42e   : > { %5966 = vst.msk [vmem:[%s8983_s14 + $0x28] sm:$0xff] %vm2731_vm12, %v5934_v7  ;;  %v5463_v49 = vsel %vm2764_vm13, %v5431_v43, %v4375_v63 }
 0x42f   : > { %v5495_v42 = vsel %vm2797_vm14, %v5463_v49, %v4487_v11 }
 0x430   : > { %v5527_v36 = vsel %vm2830_vm15, %v5495_v42, %v4759_v60 }
 0x434   : > { %v5770_v27 = vpop.f32.mrf.mxu3  ;;  %v4999_v29 = vpop.permute.xlu1 %4998 }
 0x435   : > { %v5852_v16 = vmul.f32 %v8960_v51, %v5770_v27  ;;  %v4887_v1 = vpop.permute.xlu0 %4886 }
 0x436   : > { %v5559_v52 = vsel %vm2863_vm1, %v5527_v36, %v4887_v1 }
 0x437   : > { %v5887_v45 = vadd.f32 %v8968_v57, %v5852_v16  ;;  %v5591_v19 = vsel %vm2896_vm2, %v5559_v52, %v4999_v29  ;;  %v5803_v16 = vld [vmem:[%s6781_s29 + $0x40] sm:$0xff] }
 0x438   : > { %v5623_v41 = vsel %vm2929_vm3, %v5591_v19, %v5271_v20  ;;  %v5804_v20 = vld [vmem:[%s6781_s29 + $0x48] sm:$0xff] }
 0x439   : > { %v5919_v39 = vadd.f32 %v5887_v45, %v5817_v12 }
 0x43b   : > { %v5951_v6 = vmax.f32 %v5919_v39, 0.0 }
 0x43c   : > { %v5772_v38 = vpop.f32.mrf.mxu3  ;;  %v4471_v59 = vpop.permute.xlu1 %4470 }
 0x43d   : > { %5983 = vst.msk [vmem:[%s8983_s14 + $0xb0] sm:$0xff] %vm2731_vm12, %v5951_v6  ;;  %v5853_v0 = vmul.f32 %v8960_v51, %v5772_v38  ;;  %v5399_v10 = vpop.permute.xlu0 %5398  ;;  %v5479_v28 = vsel %vm2797_vm14, %v5447_v53, %v4471_v59  ;;  %v5805_v59 = vld [vmem:[%s6781_s29 + $0x50] sm:$0xff] }
 0x43e   : > { %v5730_v23 = vpop.f32.mrf.mxu1  ;;  %v5655_v8 = vsel %vm2962_vm6, %v5623_v41, %v5399_v10  ;;  %v5511_v56 = vsel %vm2830_vm15, %v5479_v28, %v4743_v61 }
 0x43f   : > { %v5888_v58 = vadd.f32 %v8968_v57, %v5853_v0  ;;  %v5836_v47 = vmul.f32 %v8960_v51, %v5730_v23  ;;  %6104 = vmatmul.msk.bf16.gmra.mxu3 %vm3010_vm11, %v5655_v8  ;;  %v5822_v8 = vld [vmem:[%s6781_s29 + $0xd8] sm:$0xff] }
 0x441   : > { %v5920_v26 = vadd.f32 %v5888_v58, %v5818_v33  ;;  %v5871_v30 = vadd.f32 %v8968_v57, %v5836_v47  ;;  %v5821_v33 = vld [vmem:[%s6781_s29 + $0xd0] sm:$0xff] }
 0x443   : > { %v5952_v5 = vmax.f32 %v5920_v26, 0.0  ;;  %v5903_v62 = vadd.f32 %v5871_v30, %v5801_v46 }
 0x444   : > { %v4983_v4 = vpop.permute.xlu1 %4982 }
 0x445   : > { %5984 = vst.msk [vmem:[%s8983_s14 + $0xb8] sm:$0xff] %vm2731_vm12, %v5952_v5  ;;  %v5935_v48 = vmax.f32 %v5903_v62, 0.0  ;;  %v4871_v17 = vpop.permute.xlu0 %4870  ;;  %v5806_v62 = vld [vmem:[%s6781_s29 + $0x58] sm:$0xff] }
 0x446   : > { %v5732_v55 = vpop.f32.mrf.mxu1  ;;  %v5543_v54 = vsel %vm2863_vm1, %v5511_v56, %v4871_v17 }
 0x447   : > { %5967 = vst.msk [vmem:[%s8983_s14 + $0x30] sm:$0xff] %vm2731_vm12, %v5935_v48  ;;  %v5837_v14 = vmul.f32 %v8960_v51, %v5732_v55  ;;  %v5575_v22 = vsel %vm2896_vm2, %v5543_v54, %v4983_v4 }
 0x448   : > { %v5607_v37 = vsel %vm2929_vm3, %v5575_v22, %v5255_v15 }
 0x449   : > { %v5872_v40 = vadd.f32 %v8968_v57, %v5837_v14  ;;  %v5823_v14 = vld [vmem:[%s6781_s29 + $0xe0] sm:$0xff] }
 0x44b   : > { %v5904_v24 = vadd.f32 %v5872_v40, %v5802_v25 }
 0x44d   : > { %v5936_v44 = vmax.f32 %v5904_v24, 0.0  ;;  %v5383_v31 = vpop.permute.xlu0 %5382  ;;  %v5824_v24 = vld [vmem:[%s6781_s29 + $0xe8] sm:$0xff] }
 0x44e   : > { %v5639_v21 = vsel %vm2962_vm6, %v5607_v37, %v5383_v31  ;;  %v5807_v37 = vld [vmem:[%s6781_s29 + $0x60] sm:$0xff] }
 0x44f   : > { %5968 = vst.msk [vmem:[%s8983_s14 + $0x38] sm:$0xff] %vm2731_vm12, %v5936_v44  ;;  %6096 = vmatmul.msk.bf16.gmra.mxu1 %vm3010_vm11, %v5639_v21 }
 0x45a   : > { %v5775_v50 = vpop.f32.mrf.mxu3 }
 0x45b   : > { %v5854_v32 = vmul.f32 %v8960_v51, %v5775_v50 }
 0x45d   : > { %v5889_v7 = vadd.f32 %v8968_v57, %v5854_v32 }
 0x45f   : > { %v5921_v11 = vadd.f32 %v5889_v7, %v5819_v34 }
 0x461   : > { %v5953_v63 = vmax.f32 %v5921_v11, 0.0 }
 0x462   : > { %v5777_v60 = vpop.f32.mrf.mxu3 }
 0x463   : > { %5985 = vst.msk [vmem:[%s8983_s14 + $0xc0] sm:$0xff] %vm2731_vm12, %v5953_v63  ;;  %v5855_v3 = vmul.f32 %v8960_v51, %v5777_v60  ;;  %v5808_v60 = vld [vmem:[%s6781_s29 + $0x68] sm:$0xff] }
 0x464   : > { %v5735_v49 = vpop.f32.mrf.mxu1 }
 0x465   : > { %v5890_v43 = vadd.f32 %v8968_v57, %v5855_v3  ;;  %v5838_v42 = vmul.f32 %v8960_v51, %v5735_v49 }
 0x467   : > { %v5922_v27 = vadd.f32 %v5890_v43, %v5820_v2  ;;  %v5873_v29 = vadd.f32 %v8968_v57, %v5838_v42 }
 0x469   : > { %v5954_v12 = vmax.f32 %v5922_v27, 0.0  ;;  %v5905_v1 = vadd.f32 %v5873_v29, %v5803_v16  ;;  %v5825_v27 = vld [vmem:[%s6781_s29 + $0xf0] sm:$0xff] }
 0x46b   : > { %5986 = vst.msk [vmem:[%s8983_s14 + $0xc8] sm:$0xff] %vm2731_vm12, %v5954_v12  ;;  %v5937_v45 = vmax.f32 %v5905_v1, 0.0 }
 0x46c   : > { %v5737_v36 = vpop.f32.mrf.mxu1 }
 0x46d   : > { %5969 = vst.msk [vmem:[%s8983_s14 + $0x40] sm:$0xff] %vm2731_vm12, %v5937_v45  ;;  %v5839_v52 = vmul.f32 %v8960_v51, %v5737_v36  ;;  %v5826_v36 = vld [vmem:[%s6781_s29 + $0xf8] sm:$0xff] }
 0x46f   : > { %v5874_v39 = vadd.f32 %v8968_v57, %v5839_v52 }
 0x471   : > { %v5906_v6 = vadd.f32 %v5874_v39, %v5804_v20 }
 0x473   : > { %v5938_v19 = vmax.f32 %v5906_v6, 0.0  ;;  %v5809_v6 = vld [vmem:[%s6781_s29 + $0x70] sm:$0xff] }
 0x475   : > { %5970 = vst.msk [vmem:[%s8983_s14 + $0x48] sm:$0xff] %vm2731_vm12, %v5938_v19 }
 0x47b   : > { %v5780_v38 = vpop.f32.mrf.mxu3 }
 0x47c   : > { %v5856_v0 = vmul.f32 %v8960_v51, %v5780_v38 }
 0x47e   : > { %v5891_v10 = vadd.f32 %v8968_v57, %v5856_v0 }
 0x480   : > { %v5923_v23 = vadd.f32 %v5891_v10, %v5821_v33 }
 0x482   : > { %v5955_v41 = vmax.f32 %v5923_v23, 0.0 }
 0x483   : > { %v5782_v58 = vpop.f32.mrf.mxu3 }
 0x484   : > { %5987 = vst.msk [vmem:[%s8983_s14 + $0xd0] sm:$0xff] %vm2731_vm12, %v5955_v41  ;;  %v5857_v47 = vmul.f32 %v8960_v51, %v5782_v58  ;;  %v5810_v58 = vld [vmem:[%s6781_s29 + $0x78] sm:$0xff] }
 0x485   : > { %v5740_v13 = vpop.f32.mrf.mxu1 }
 0x486   : > { %v5892_v18 = vadd.f32 %v8968_v57, %v5857_v47  ;;  %v5840_v35 = vmul.f32 %v8960_v51, %v5740_v13 }
 0x488   : > { %v5924_v46 = vadd.f32 %v5892_v18, %v5822_v8  ;;  %v5875_v26 = vadd.f32 %v8968_v57, %v5840_v35 }
 0x48a   : > { %v5956_v30 = vmax.f32 %v5924_v46, 0.0  ;;  %v5907_v61 = vadd.f32 %v5875_v26, %v5805_v59 }
 0x48c   : > { %5988 = vst.msk [vmem:[%s8983_s14 + $0xd8] sm:$0xff] %vm2731_vm12, %v5956_v30  ;;  %v5939_v9 = vmax.f32 %v5907_v61, 0.0 }
 0x48d   : > { %v5742_v53 = vpop.f32.mrf.mxu1 }
 0x48e   : > { %5971 = vst.msk [vmem:[%s8983_s14 + $0x50] sm:$0xff] %vm2731_vm12, %v5939_v9  ;;  %v5841_v5 = vmul.f32 %v8960_v51, %v5742_v53 }
 0x490   : > { %v5876_v28 = vadd.f32 %v8968_v57, %v5841_v5 }
 0x492   : > { %v5908_v48 = vadd.f32 %v5876_v28, %v5806_v62 }
 0x494   : > { %v5940_v17 = vmax.f32 %v5908_v48, 0.0 }
 0x496   : > { %5972 = vst.msk [vmem:[%s8983_s14 + $0x58] sm:$0xff] %vm2731_vm12, %v5940_v17 }
 0x49c   : > { %v5785_v55 = vpop.f32.mrf.mxu3 }
 0x49d   : > { %v5858_v56 = vmul.f32 %v8960_v51, %v5785_v55 }
 0x49f   : > { %v5893_v54 = vadd.f32 %v8968_v57, %v5858_v56 }
 0x4a1   : > { %v5925_v25 = vadd.f32 %v5893_v54, %v5823_v14 }
 0x4a3   : > { %v5957_v40 = vmax.f32 %v5925_v25, 0.0 }
 0x4a4   : > { %v5787_v4 = vpop.f32.mrf.mxu3 }
 0x4a5   : > { %5989 = vst.msk [vmem:[%s8983_s14 + $0xe0] sm:$0xff] %vm2731_vm12, %v5957_v40  ;;  %v5859_v22 = vmul.f32 %v8960_v51, %v5787_v4 }
 0x4a6   : > { %v5745_v15 = vpop.f32.mrf.mxu1 }
 0x4a7   : > { %v5894_v44 = vadd.f32 %v8968_v57, %v5859_v22  ;;  %v5842_v31 = vmul.f32 %v8960_v51, %v5745_v15 }
 0x4a9   : > { %v5926_v21 = vadd.f32 %v5894_v44, %v5824_v24  ;;  %v5877_v50 = vadd.f32 %v8968_v57, %v5842_v31 }
 0x4ab   : > { %v5958_v32 = vmax.f32 %v5926_v21, 0.0  ;;  %v5909_v34 = vadd.f32 %v5877_v50, %v5807_v37 }
 0x4ad   : > { %5990 = vst.msk [vmem:[%s8983_s14 + $0xe8] sm:$0xff] %vm2731_vm12, %v5958_v32  ;;  %v5941_v7 = vmax.f32 %v5909_v34, 0.0 }
 0x4ae   : > { %v5747_v11 = vpop.f32.mrf.mxu1 }
 0x4af   : > { %5973 = vst.msk [vmem:[%s8983_s14 + $0x60] sm:$0xff] %vm2731_vm12, %v5941_v7  ;;  %v5843_v63 = vmul.f32 %v8960_v51, %v5747_v11 }
 0x4b1   : > { %v5878_v3 = vadd.f32 %v8968_v57, %v5843_v63 }
 0x4b3   : > { %v5910_v2 = vadd.f32 %v5878_v3, %v5808_v60 }
 0x4b5   : > { %v5942_v43 = vmax.f32 %v5910_v2, 0.0 }
 0x4b7   : > { %5974 = vst.msk [vmem:[%s8983_s14 + $0x68] sm:$0xff] %vm2731_vm12, %v5942_v43 }
 0x4c2   : > { %v5790_v49 = vpop.f32.mrf.mxu3 }
 0x4c3   : > { %v5860_v42 = vmul.f32 %v8960_v51, %v5790_v49 }
 0x4c5   : > { %v5895_v16 = vadd.f32 %v8968_v57, %v5860_v42 }
 0x4c7   : > { %v5927_v29 = vadd.f32 %v5895_v16, %v5825_v27 }
 0x4c9   : > { %v5959_v12 = vmax.f32 %v5927_v29, 0.0 }
 0x4ca   : > { %v5792_v1 = vpop.f32.mrf.mxu3 }
 0x4cb   : > { %5991 = vst.msk [vmem:[%s8983_s14 + $0xf0] sm:$0xff] %vm2731_vm12, %v5959_v12  ;;  %v5861_v45 = vmul.f32 %v8960_v51, %v5792_v1 }
 0x4cc   : > { %v5750_v52 = vpop.f32.mrf.mxu1 }
 0x4cd   : > { %v5896_v20 = vadd.f32 %v8968_v57, %v5861_v45  ;;  %v5844_v39 = vmul.f32 %v8960_v51, %v5750_v52 }
 0x4cf   : > { %v5928_v19 = vadd.f32 %v5896_v20, %v5826_v36  ;;  %v5879_v38 = vadd.f32 %v8968_v57, %v5844_v39 }
 0x4d1   : > { %v5960_v0 = vmax.f32 %v5928_v19, 0.0  ;;  %v5911_v33 = vadd.f32 %v5879_v38, %v5809_v6 }
 0x4d3   : > { %5992 = vst.msk [vmem:[%s8983_s14 + $0xf8] sm:$0xff] %vm2731_vm12, %v5960_v0  ;;  %v5943_v10 = vmax.f32 %v5911_v33, 0.0 }
 0x4d4   : > { %v5752_v23 = vpop.f32.mrf.mxu1 }
 0x4d5   : > { %5975 = vst.msk [vmem:[%s8983_s14 + $0x70] sm:$0xff] %vm2731_vm12, %v5943_v10  ;;  %v5845_v41 = vmul.f32 %v8960_v51, %v5752_v23 }
 0x4d7   : > { %v5880_v47 = vadd.f32 %v8968_v57, %v5845_v41 }
 0x4d9   : > { %v5912_v8 = vadd.f32 %v5880_v47, %v5810_v58 }
 0x4db   : > { %v5944_v13 = vmax.f32 %v5912_v8, 0.0 }
 0x4dd   : > { %5976 = vst.msk [vmem:[%s8983_s14 + $0x78] sm:$0xff] %vm2731_vm12, %v5944_v13 }
 0x4de PF: > { %s17_s24 = sadd.s32 1, %s6689_s24  }
 0x4df   : > { %p14_p4 = scmp.ge.s32.totalorder %s17_s24, 4  }
 0x4e1   :  { %16 = sbr.rel (!%p14_p4) target bundleno = 1 (0x1), region = 84 }

</bundles_post_ra>
